<compile_context>
chip_gen: v5e
topology: v5e:2x2
jax: 0.10.0
libtpu: 0.0.40
codegen_flags: <defaults>
</compile_context>

<pallas_src>
import functools
import math

import jax
import jax.numpy as jnp
from jax import lax
from jax.experimental import pallas as pl
from jax.experimental.pallas import tpu as pltpu

NEG_INF = -1e30   # finite "minus infinity" -> robust softmax even for fully-masked rows
LN_EPS = 1e-5     # nn.LayerNorm default


# ----------------------------------------------------------------------------
# In-kernel helpers (traced inside the Pallas kernels)
# ----------------------------------------------------------------------------
def _layer_norm(x, g, b, eps):
    mean = jnp.mean(x, axis=-1, keepdims=True)
    var = jnp.mean(jnp.square(x - mean), axis=-1, keepdims=True)
    return (x - mean) * lax.rsqrt(var + eps) * g + b


def _mm(x, w, b=None):
    # bf16 MXU matmul with f32 accumulation; bias (1, n) f32 added in f32.
    y = jnp.dot(x.astype(jnp.bfloat16), w, preferred_element_type=jnp.float32)
    return y if b is None else y + b


def _softmax(s):
    m = jnp.max(s, axis=-1, keepdims=True)
    p = jnp.exp(s - m)
    return p * pl.reciprocal(jnp.sum(p, axis=-1, keepdims=True), approx=True)


def _mha(q_all, k_all, v_all, *, H, Dh, key_bias=None, causal=False):
    """Multi-head attention on (Lq,E)/(Lk,E) activations.

    Per-head static loop with lane slices -> no in-kernel transposes, and the result is the
    lane-dense (Lq, E) concatenation of head outputs.
    """
    scale = 1.0 / math.sqrt(Dh)
    Lq, Lk = q_all.shape[0], k_all.shape[0]
    if causal:
        row = lax.broadcasted_iota(jnp.int32, (Lq, Lk), 0)
        col = lax.broadcasted_iota(jnp.int32, (Lq, Lk), 1)
        keep = row >= col                                  # built once, reused by all heads
    outs = []
    for h in range(H):
        sl = slice(h * Dh, (h + 1) * Dh)
        q = (q_all[:, sl] * scale).astype(jnp.bfloat16)    # fold 1/sqrt(Dh) into q
        k = k_all[:, sl].astype(jnp.bfloat16)
        v = v_all[:, sl].astype(jnp.bfloat16)
        s = lax.dot_general(q, k, (((1,), (1,)), ((), ())),
                            preferred_element_type=jnp.float32)        # (Lq, Lk)
        if key_bias is not None:
            s = s + key_bias                                           # (1, Lk) row bias
        if causal:
            s = jnp.where(keep, s, NEG_INF)                            # select, not add
        p = _softmax(s)
        outs.append(jnp.dot(p.astype(jnp.bfloat16), v,
                            preferred_element_type=jnp.float32))       # (Lq, Dh)
    return jnp.concatenate(outs, axis=-1)                              # (Lq, E)


# ----------------------------------------------------------------------------
# Pallas kernels
# ----------------------------------------------------------------------------
def _encoder_layer_kernel(x_ref, bias_ref,
                          wqkv_ref, bqkv_ref, wo_ref, bo_ref, g1_ref, be1_ref,
                          w1_ref, b1_ref, w2_ref, b2_ref, g2_ref, be2_ref,
                          o_ref, *, H, Dh, eps):
    E = H * Dh
    x = x_ref[0]                                   # (Ls, E) f32  (one batch element)
    key_bias = bias_ref[0]                         # (1, Ls) f32 additive pad bias
    qkv = _mm(x, wqkv_ref[...], bqkv_ref[...])     # (Ls, 3E)
    a = _mha(qkv[:, :E], qkv[:, E:2 * E], qkv[:, 2 * E:],
             H=H, Dh=Dh, key_bias=key_bias)
    x1 = _layer_norm(x + _mm(a, wo_ref[...], bo_ref[...]), g1_ref[...], be1_ref[...], eps)
    hid = jnp.maximum(_mm(x1, w1_ref[...], b1_ref[...]), 0.0)
    x2 = _layer_norm(x1 + _mm(hid, w2_ref[...], b2_ref[...]), g2_ref[...], be2_ref[...], eps)
    o_ref[0] = x2


def _decoder_layer_kernel(y_ref, mem_ref,
                          wqkv_ref, bqkv_ref, wo1_ref, bo1_ref, g1_ref, be1_ref,
                          wq_ref, bq_ref, wkv_ref, bkv_ref, wo2_ref, bo2_ref, g2_ref, be2_ref,
                          w1_ref, b1_ref, w2_ref, b2_ref, g3_ref, be3_ref,
                          o_ref, *, H, Dh, eps):
    E = H * Dh
    y = y_ref[0]                                   # (Lt, E)
    mem = mem_ref[0]                               # (Ls, E)

    # causal self-attention
    qkv = _mm(y, wqkv_ref[...], bqkv_ref[...])
    a = _mha(qkv[:, :E], qkv[:, E:2 * E], qkv[:, 2 * E:], H=H, Dh=Dh, causal=True)
    y1 = _layer_norm(y + _mm(a, wo1_ref[...], bo1_ref[...]), g1_ref[...], be1_ref[...], eps)

    # un-masked cross attention (memory_key_padding_mask is None in the reference forward)
    q = _mm(y1, wq_ref[...], bq_ref[...])          # (Lt, E)
    kv = _mm(mem, wkv_ref[...], bkv_ref[...])      # (Ls, 2E)
    c = _mha(q, kv[:, :E], kv[:, E:], H=H, Dh=Dh)
    y2 = _layer_norm(y1 + _mm(c, wo2_ref[...], bo2_ref[...]), g2_ref[...], be2_ref[...], eps)

    # FFN
    hid = jnp.maximum(_mm(y2, w1_ref[...], b1_ref[...]), 0.0)
    y3 = _layer_norm(y2 + _mm(hid, w2_ref[...], b2_ref[...]), g3_ref[...], be3_ref[...], eps)
    o_ref[0] = y3


def _ln3d_kernel(x_ref, g_ref, b_ref, o_ref, *, eps):
    # LayerNorm over the last dim of a (N, L, E) block; g/b are (1, 1, E).
    o_ref[...] = _layer_norm(x_ref[...], g_ref[...], b_ref[...], eps)


def _ln_fcout_kernel(x_ref, g_ref, b_ref, w_ref, bias_ref, o_ref, *, eps):
    # fc_out(LayerNorm(x)) for one 128-wide vocab column tile.
    xn = _layer_norm(x_ref[...], g_ref[...], b_ref[...], eps)
    o_ref[...] = _mm(xn, w_ref[...], bias_ref[...])


# ----------------------------------------------------------------------------
# pallas_call wrappers
# ----------------------------------------------------------------------------
def _bytes(*arrs):
    return int(sum(a.size * a.dtype.itemsize for a in arrs))


def _full_spec(a):
    nd = a.ndim
    return pl.BlockSpec(a.shape, lambda n, _nd=nd: (0,) * _nd)


def encoder_layer(x, pad_bias, p, *, H, eps=LN_EPS):
    """x: (N, Ls, E) f32, pad_bias: (N, 1, Ls) f32 additive key-padding bias."""
    N, Ls, E = x.shape
    Dh = E // H
    sa = p["self_attn"]
    weights = [sa["w_qkv"], sa["b_qkv"], sa["wo"], sa["bo"], p["norm1_g"], p["norm1_b"],
               p["w1"], p["b1"], p["w2"], p["b2"], p["norm2_g"], p["norm2_b"]]
    F = p["w1"].shape[1]
    M = N * Ls
    flops = 2 * M * E * 3 * E + 4 * N * H * Ls * Ls * Dh + 2 * M * E * E + 4 * M * E * F
    cost = pl.CostEstimate(flops=flops, transcendentals=N * H * Ls * Ls,
                           bytes_accessed=_bytes(x, pad_bias, *weights) + x.size * 4)
    row_spec = pl.BlockSpec((1, Ls, E), lambda n: (n, 0, 0))
    bias_spec = pl.BlockSpec((1, 1, Ls), lambda n: (n, 0, 0))
    return pl.pallas_call(
        functools.partial(_encoder_layer_kernel, H=H, Dh=Dh, eps=eps),
        grid=(N,),
        in_specs=[row_spec, bias_spec] + [_full_spec(w) for w in weights],
        out_specs=row_spec,
        out_shape=jax.ShapeDtypeStruct(x.shape, jnp.float32),
        compiler_params=pltpu.CompilerParams(dimension_semantics=("parallel",)),
        cost_estimate=cost,
    )(x, pad_bias, *weights)


def decoder_layer(y, memory, p, *, H, eps=LN_EPS):
    """y: (N, Lt, E) f32, memory: (N, Ls, E) f32."""
    N, Lt, E = y.shape
    _, Ls, _ = memory.shape
    Dh = E // H
    sa, ca = p["self_attn"], p["cross_attn"]
    weights = [sa["w_qkv"], sa["b_qkv"], sa["wo"], sa["bo"], p["norm1_g"], p["norm1_b"],
               ca["wq"], ca["bq"], ca["w_kv"], ca["b_kv"], ca["wo"], ca["bo"],
               p["norm2_g"], p["norm2_b"],
               p["w1"], p["b1"], p["w2"], p["b2"], p["norm3_g"], p["norm3_b"]]
    F = p["w1"].shape[1]
    Mt, Ms = N * Lt, N * Ls
    flops = (2 * Mt * E * 3 * E + 4 * N * H * Lt * Lt * Dh + 2 * Mt * E * E
             + 2 * Mt * E * E + 2 * Ms * E * 2 * E + 4 * N * H * Lt * Ls * Dh
             + 2 * Mt * E * E + 4 * Mt * E * F)
    cost = pl.CostEstimate(flops=flops,
                           transcendentals=N * H * (Lt * Lt + Lt * Ls),
                           bytes_accessed=_bytes(y, memory, *weights) + y.size * 4)
    y_spec = pl.BlockSpec((1, Lt, E), lambda n: (n, 0, 0))
    m_spec = pl.BlockSpec((1, Ls, E), lambda n: (n, 0, 0))
    return pl.pallas_call(
        functools.partial(_decoder_layer_kernel, H=H, Dh=Dh, eps=eps),
        grid=(N,),
        in_specs=[y_spec, m_spec] + [_full_spec(w) for w in weights],
        out_specs=y_spec,
        out_shape=jax.ShapeDtypeStruct(y.shape, jnp.float32),
        compiler_params=pltpu.CompilerParams(dimension_semantics=("parallel",)),
        cost_estimate=cost,
    )(y, memory, *weights)


def layernorm3d(x, g, b, eps=LN_EPS):
    """Final encoder-stack LayerNorm on the whole (N, Ls, E) activation."""
    return pl.pallas_call(
        functools.partial(_ln3d_kernel, eps=eps),
        out_shape=jax.ShapeDtypeStruct(x.shape, jnp.float32),
    )(x, g, b)


def ln_fc_out(x, g, b, w, bias, *, eps=LN_EPS, tile_v=128):
    """fc_out(LayerNorm(x)); x: (M, E) f32, w: (E, Vpad) bf16 with Vpad % tile_v == 0."""
    M, E = x.shape
    Vp = w.shape[1]
    cost = pl.CostEstimate(flops=2 * M * E * Vp + 10 * M * E, transcendentals=0,
                           bytes_accessed=_bytes(x, g, b, w, bias) + M * Vp * 4)
    return pl.pallas_call(
        functools.partial(_ln_fcout_kernel, eps=eps),
        grid=(Vp // tile_v,),
        in_specs=[pl.BlockSpec((M, E), lambda j: (0, 0)),
                  pl.BlockSpec((1, E), lambda j: (0, 0)),
                  pl.BlockSpec((1, E), lambda j: (0, 0)),
                  pl.BlockSpec((E, tile_v), lambda j: (0, j)),
                  pl.BlockSpec((1, tile_v), lambda j: (0, j))],
        out_specs=pl.BlockSpec((M, tile_v), lambda j: (0, j)),
        out_shape=jax.ShapeDtypeStruct((M, Vp), jnp.float32),
        compiler_params=pltpu.CompilerParams(dimension_semantics=("parallel",)),
        cost_estimate=cost,
    )(x, g, b, w, bias)


# ----------------------------------------------------------------------------
# Full forward pass
# ----------------------------------------------------------------------------
def transformer_nmt_forward(pp, src, trg, *, n_heads, src_pad_idx, trg_vocab):
    """src: (Ls, N) int32, trg: (Lt, N) int32 -> (Lt, N, trg_vocab) float32."""
    Ls, N = src.shape
    Lt, _ = trg.shape
    E = pp["src_tok_emb"].shape[1]

    # embeddings + positional embeddings (gathers stay in plain JAX; dropout = identity)
    src_emb = pp["src_tok_emb"][src] + pp["src_pos_emb"][jnp.arange(Ls)][:, None, :]
    trg_emb = pp["trg_tok_emb"][trg] + pp["trg_pos_emb"][jnp.arange(Lt)][:, None, :]

    # batch-major residual streams: (N, L, E)
    x = jnp.transpose(src_emb, (1, 0, 2)).astype(jnp.float32)
    y = jnp.transpose(trg_emb, (1, 0, 2)).astype(jnp.float32)

    # src key-padding mask -> compact additive bias, one row per batch element
    pad_bias = jnp.where(src.T == src_pad_idx, NEG_INF, 0.0).astype(jnp.float32)
    pad_bias = pad_bias.reshape(N, 1, Ls)

    # encoder (one fused kernel per layer) + final encoder-stack LayerNorm
    for p in pp["encoder_layers"]:
        x = encoder_layer(x, pad_bias, p, H=n_heads)
    memory = layernorm3d(x, pp["enc_norm_g"], pp["enc_norm_b"])

    # decoder (one fused kernel per layer)
    for p in pp["decoder_layers"]:
        y = decoder_layer(y, memory, p, H=n_heads)

    # final decoder LayerNorm fused with fc_out (vocab lane-padded to 128, sliced here)
    logits = ln_fc_out(y.reshape(N * Lt, E), pp["dec_norm_g"], pp["dec_norm_b"],
                       pp["fc_out_w"], pp["fc_out_b"])
    logits = logits.reshape(N, Lt, -1)[:, :, :trg_vocab]
    return jnp.transpose(logits, (1, 0, 2))


# ----------------------------------------------------------------------------
# Deterministic parameter construction + one-time preparation (outside jit)
# ----------------------------------------------------------------------------
def init_params(key, *, embedding_dim, src_vocab, trg_vocab, n_layers, ff_dim, max_len):
    E, F = embedding_dim, ff_dim
    keys = iter(jax.random.split(key, 256))

    def w(shape):
        return jax.random.normal(next(keys), shape, jnp.float32) * 0.02

    def attn_params():
        return {"wq": w((E, E)), "bq": jnp.zeros((E,), jnp.float32),
                "wk": w((E, E)), "bk": jnp.zeros((E,), jnp.float32),
                "wv": w((E, E)), "bv": jnp.zeros((E,), jnp.float32),
                "wo": w((E, E)), "bo": jnp.zeros((E,), jnp.float32)}

    def enc_layer():
        return {"self_attn": attn_params(),
                "w1": w((E, F)), "b1": jnp.zeros((F,), jnp.float32),
                "w2": w((F, E)), "b2": jnp.zeros((E,), jnp.float32),
                "norm1_g": jnp.ones((E,), jnp.float32), "norm1_b": jnp.zeros((E,), jnp.float32),
                "norm2_g": jnp.ones((E,), jnp.float32), "norm2_b": jnp.zeros((E,), jnp.float32)}

    def dec_layer():
        return {"self_attn": attn_params(), "cross_attn": attn_params(),
                "w1": w((E, F)), "b1": jnp.zeros((F,), jnp.float32),
                "w2": w((F, E)), "b2": jnp.zeros((E,), jnp.float32),
                "norm1_g": jnp.ones((E,), jnp.float32), "norm1_b": jnp.zeros((E,), jnp.float32),
                "norm2_g": jnp.ones((E,), jnp.float32), "norm2_b": jnp.zeros((E,), jnp.float32),
                "norm3_g": jnp.ones((E,), jnp.float32), "norm3_b": jnp.zeros((E,), jnp.float32)}

    return {"src_tok_emb": w((src_vocab, E)), "src_pos_emb": w((max_len, E)),
            "trg_tok_emb": w((trg_vocab, E)), "trg_pos_emb": w((max_len, E)),
            "encoder_layers": [enc_layer() for _ in range(n_layers)],
            "decoder_layers": [dec_layer() for _ in range(n_layers)],
            "enc_norm_g": jnp.ones((E,), jnp.float32), "enc_norm_b": jnp.zeros((E,), jnp.float32),
            "dec_norm_g": jnp.ones((E,), jnp.float32), "dec_norm_b": jnp.zeros((E,), jnp.float32),
            "fc_out_w": w((E, trg_vocab)), "fc_out_b": jnp.zeros((trg_vocab,), jnp.float32)}


def _pad_lanes(a, multiple=128):
    n = a.shape[-1]
    pad = (-n) % multiple
    if pad == 0:
        return a
    cfg = [(0, 0)] * (a.ndim - 1) + [(0, pad)]
    return jnp.pad(a, cfg)


def prepare_params(params):
    """One-time prep: concat QKV weights, bf16 weight cast, (1,n) f32 biases/LN params."""
    bf16 = jnp.bfloat16

    def row(b):
        return jnp.asarray(b, jnp.float32).reshape(1, -1)

    def prep_self(a):
        return {"w_qkv": jnp.concatenate([a["wq"], a["wk"], a["wv"]], axis=1).astype(bf16),
                "b_qkv": row(jnp.concatenate([a["bq"], a["bk"], a["bv"]])),
                "wo": a["wo"].astype(bf16), "bo": row(a["bo"])}

    def prep_cross(a):
        return {"wq": a["wq"].astype(bf16), "bq": row(a["bq"]),
                "w_kv": jnp.concatenate([a["wk"], a["wv"]], axis=1).astype(bf16),
                "b_kv": row(jnp.concatenate([a["bk"], a["bv"]])),
                "wo": a["wo"].astype(bf16), "bo": row(a["bo"])}

    def prep_enc(p):
        return {"self_attn": prep_self(p["self_attn"]),
                "w1": p["w1"].astype(bf16), "b1": row(p["b1"]),
                "w2": p["w2"].astype(bf16), "b2": row(p["b2"]),
                "norm1_g": row(p["norm1_g"]), "norm1_b": row(p["norm1_b"]),
                "norm2_g": row(p["norm2_g"]), "norm2_b": row(p["norm2_b"])}

    def prep_dec(p):
        d = prep_enc(p)
        d["cross_attn"] = prep_cross(p["cross_attn"])
        d["norm3_g"] = row(p["norm3_g"])
        d["norm3_b"] = row(p["norm3_b"])
        return d

    E = params["src_tok_emb"].shape[1]
    return {"src_tok_emb": params["src_tok_emb"], "src_pos_emb": params["src_pos_emb"],
            "trg_tok_emb": params["trg_tok_emb"], "trg_pos_emb": params["trg_pos_emb"],
            "encoder_layers": [prep_enc(p) for p in params["encoder_layers"]],
            "decoder_layers": [prep_dec(p) for p in params["decoder_layers"]],
            "enc_norm_g": params["enc_norm_g"].reshape(1, 1, E).astype(jnp.float32),
            "enc_norm_b": params["enc_norm_b"].reshape(1, 1, E).astype(jnp.float32),
            "dec_norm_g": row(params["dec_norm_g"]), "dec_norm_b": row(params["dec_norm_b"]),
            "fc_out_w": _pad_lanes(params["fc_out_w"]).astype(bf16),
            "fc_out_b": row(_pad_lanes(params["fc_out_b"]))}


# ----------------------------------------------------------------------------
if __name__ == "__main__":
    embedding_dim = 32
    src_vocab_size = 50
    trg_vocab_size = 40
    n_heads = 4
    n_layers = 2
    ff_dim = 64
    max_len = 16
    src_pad_idx = 0

    src_len, trg_len, batch = 8, 6, 2

    key = jax.random.PRNGKey(0)
    k_param, k_src, k_trg = jax.random.split(key, 3)

    raw_params = init_params(
        k_param, embedding_dim=embedding_dim, src_vocab=src_vocab_size,
        trg_vocab=trg_vocab_size, n_layers=n_layers, ff_dim=ff_dim, max_len=max_len)
    params = prepare_params(raw_params)   # one-time bf16 cast / concat / pad, outside jit

    # src tokens in [1, vocab), then pad the tail of each sequence (never all-pad)
    src = jax.random.randint(k_src, (src_len, batch), 1, src_vocab_size, dtype=jnp.int32)
    src = src.at[-2:, 0].set(src_pad_idx)
    src = src.at[-1:, 1].set(src_pad_idx)
    trg = jax.random.randint(k_trg, (trg_len, batch), 1, trg_vocab_size, dtype=jnp.int32)

    fwd = jax.jit(functools.partial(transformer_nmt_forward,
                                    n_heads=n_heads, src_pad_idx=src_pad_idx,
                                    trg_vocab=trg_vocab_size))
    out = fwd(params, src, trg)
    out = jax.block_until_ready(out)

    assert out.shape == (trg_len, batch, trg_vocab_size), out.shape
    assert bool(jnp.all(jnp.isfinite(out)))
    print("KERNEL_OK")
</pallas_src>

<mosaic_0001>
module attributes {stable_mosaic.version = 11 : i64} {
  func.func @_ln3d_kernel(%arg0: memref<2x8x32xf32, #tpu.memory_space<vmem>>, %arg1: memref<1x1x32xf32, #tpu.memory_space<vmem>>, %arg2: memref<1x1x32xf32, #tpu.memory_space<vmem>>, %arg3: memref<2x8x32xf32, #tpu.memory_space<vmem>>) attributes {dimension_semantics = [], scalar_prefetch = 0 : i64, scratch_operands = 0 : i64, tpu.core_type = #tpu.core_type<tc>} {
    %c0 = arith.constant 0 : index
    %c0_0 = arith.constant 0 : index
    %c0_1 = arith.constant 0 : index
    %0 = vector.load %arg0[%c0, %c0_0, %c0_1] : memref<2x8x32xf32, #tpu.memory_space<vmem>>, vector<2x8x32xf32>
    %c0_2 = arith.constant 0 : index
    %c0_3 = arith.constant 0 : index
    %c0_4 = arith.constant 0 : index
    %1 = vector.load %arg1[%c0_2, %c0_3, %c0_4] : memref<1x1x32xf32, #tpu.memory_space<vmem>>, vector<1x1x32xf32>
    %c0_5 = arith.constant 0 : index
    %c0_6 = arith.constant 0 : index
    %c0_7 = arith.constant 0 : index
    %2 = vector.load %arg2[%c0_5, %c0_6, %c0_7] : memref<1x1x32xf32, #tpu.memory_space<vmem>>, vector<1x1x32xf32>
    %cst = arith.constant dense<0.000000e+00> : vector<2x8xf32>
    %3 = vector.multi_reduction <add>, %0, %cst [2] : vector<2x8x32xf32> to vector<2x8xf32>
    %4 = vector.shape_cast %3 : vector<2x8xf32> to vector<2x8x1xf32>
    %cst_8 = arith.constant 3.200000e+01 : f32
    %5 = vector.broadcast %cst_8 : f32 to vector<2x8x1xf32>
    %6 = arith.divf %4, %5 : vector<2x8x1xf32>
    %7 = vector.broadcast %6 : vector<2x8x1xf32> to vector<2x8x32xf32>
    %8 = arith.subf %0, %7 : vector<2x8x32xf32>
    %9 = arith.mulf %8, %8 : vector<2x8x32xf32>
    %cst_9 = arith.constant dense<0.000000e+00> : vector<2x8xf32>
    %10 = vector.multi_reduction <add>, %9, %cst_9 [2] : vector<2x8x32xf32> to vector<2x8xf32>
    %11 = vector.shape_cast %10 : vector<2x8xf32> to vector<2x8x1xf32>
    %cst_10 = arith.constant 3.200000e+01 : f32
    %12 = vector.broadcast %cst_10 : f32 to vector<2x8x1xf32>
    %13 = arith.divf %11, %12 : vector<2x8x1xf32>
    %14 = vector.broadcast %6 : vector<2x8x1xf32> to vector<2x8x32xf32>
    %15 = arith.subf %0, %14 : vector<2x8x32xf32>
    %cst_11 = arith.constant 9.99999974E-6 : f32
    %16 = vector.broadcast %cst_11 : f32 to vector<2x8x1xf32>
    %17 = arith.addf %13, %16 : vector<2x8x1xf32>
    %18 = math.rsqrt %17 : vector<2x8x1xf32>
    %19 = vector.broadcast %18 : vector<2x8x1xf32> to vector<2x8x32xf32>
    %20 = arith.mulf %15, %19 : vector<2x8x32xf32>
    %21 = vector.broadcast %1 : vector<1x1x32xf32> to vector<2x8x32xf32>
    %22 = arith.mulf %20, %21 : vector<2x8x32xf32>
    %23 = vector.broadcast %2 : vector<1x1x32xf32> to vector<2x8x32xf32>
    %24 = arith.addf %22, %23 : vector<2x8x32xf32>
    %c0_12 = arith.constant 0 : index
    %c0_13 = arith.constant 0 : index
    %c0_14 = arith.constant 0 : index
    %25 = vector.load %arg3[%c0_12, %c0_13, %c0_14] : memref<2x8x32xf32, #tpu.memory_space<vmem>>, vector<2x8x32xf32>
    tpu.vector_store %arg3[%c0_12, %c0_13, %c0_14], %24 {strides = array<i32>} : memref<2x8x32xf32, #tpu.memory_space<vmem>>, vector<2x8x32xf32>,
    return
  }
}

module attributes {stable_mosaic.version = 11 : i64} {
  func.func @_encoder_layer_kernel(%arg0: i32, %arg1: memref<1x8x32xf32, #tpu.memory_space<vmem>>, %arg2: memref<1x1x8xf32, #tpu.memory_space<vmem>>, %arg3: memref<32x96xbf16, #tpu.memory_space<vmem>>, %arg4: memref<1x96xf32, #tpu.memory_space<vmem>>, %arg5: memref<32x32xbf16, #tpu.memory_space<vmem>>, %arg6: memref<1x32xf32, #tpu.memory_space<vmem>>, %arg7: memref<1x32xf32, #tpu.memory_space<vmem>>, %arg8: memref<1x32xf32, #tpu.memory_space<vmem>>, %arg9: memref<32x64xbf16, #tpu.memory_space<vmem>>, %arg10: memref<1x64xf32, #tpu.memory_space<vmem>>, %arg11: memref<64x32xbf16, #tpu.memory_space<vmem>>, %arg12: memref<1x32xf32, #tpu.memory_space<vmem>>, %arg13: memref<1x32xf32, #tpu.memory_space<vmem>>, %arg14: memref<1x32xf32, #tpu.memory_space<vmem>>, %arg15: memref<1x8x32xf32, #tpu.memory_space<vmem>>) attributes {dimension_semantics = [#tpu.dimension_semantics<parallel>], iteration_bounds = array<i64: 2>, scalar_prefetch = 0 : i64, scratch_operands = 0 : i64, tpu.core_type = #tpu.core_type<tc>, window_params = [{transform_indices = @transform_0, window_bounds = array<i64: 1, 8, 32>}, {transform_indices = @transform_1, window_bounds = array<i64: 1, 1, 8>}, {pipeline_mode = #tpu.pipeline_mode<synchronous>, transform_indices = @transform_2, window_bounds = array<i64: 32, 96>}, {pipeline_mode = #tpu.pipeline_mode<synchronous>, transform_indices = @transform_3, window_bounds = array<i64: 1, 96>}, {pipeline_mode = #tpu.pipeline_mode<synchronous>, transform_indices = @transform_4, window_bounds = array<i64: 32, 32>}, {pipeline_mode = #tpu.pipeline_mode<synchronous>, transform_indices = @transform_5, window_bounds = array<i64: 1, 32>}, {pipeline_mode = #tpu.pipeline_mode<synchronous>, transform_indices = @transform_6, window_bounds = array<i64: 1, 32>}, {pipeline_mode = #tpu.pipeline_mode<synchronous>, transform_indices = @transform_7, window_bounds = array<i64: 1, 32>}, {pipeline_mode = #tpu.pipeline_mode<synchronous>, transform_indices = @transform_8, window_bounds = array<i64: 32, 64>}, {pipeline_mode = #tpu.pipeline_mode<synchronous>, transform_indices = @transform_9, window_bounds = array<i64: 1, 64>}, {pipeline_mode = #tpu.pipeline_mode<synchronous>, transform_indices = @transform_10, window_bounds = array<i64: 64, 32>}, {pipeline_mode = #tpu.pipeline_mode<synchronous>, transform_indices = @transform_11, window_bounds = array<i64: 1, 32>}, {pipeline_mode = #tpu.pipeline_mode<synchronous>, transform_indices = @transform_12, window_bounds = array<i64: 1, 32>}, {pipeline_mode = #tpu.pipeline_mode<synchronous>, transform_indices = @transform_13, window_bounds = array<i64: 1, 32>}, {transform_indices = @transform_14, window_bounds = array<i64: 1, 8, 32>}]} {
    %c0 = arith.constant 0 : index
    %c0_0 = arith.constant 0 : index
    %c0_1 = arith.constant 0 : index
    %0 = vector.load %arg1[%c0, %c0_0, %c0_1] : memref<1x8x32xf32, #tpu.memory_space<vmem>>, vector<1x8x32xf32>
    %1 = vector.shape_cast %0 : vector<1x8x32xf32> to vector<8x32xf32>
    %c0_2 = arith.constant 0 : index
    %c0_3 = arith.constant 0 : index
    %c0_4 = arith.constant 0 : index
    %2 = vector.load %arg2[%c0_2, %c0_3, %c0_4] : memref<1x1x8xf32, #tpu.memory_space<vmem>>, vector<1x1x8xf32>
    %3 = vector.shape_cast %2 : vector<1x1x8xf32> to vector<1x8xf32>
    %c0_5 = arith.constant 0 : index
    %c0_6 = arith.constant 0 : index
    %4 = vector.load %arg3[%c0_5, %c0_6] : memref<32x96xbf16, #tpu.memory_space<vmem>>, vector<32x96xbf16>
    %c0_7 = arith.constant 0 : index
    %c0_8 = arith.constant 0 : index
    %5 = vector.load %arg4[%c0_7, %c0_8] : memref<1x96xf32, #tpu.memory_space<vmem>>, vector<1x96xf32>
    %6 = arith.truncf %1 : vector<8x32xf32> to vector<8x32xbf16>
    %cst = arith.constant dense<0.000000e+00> : vector<8x96xf32>
    %7 = tpu.matmul %6, %4, %cst {dimension_numbers = #tpu.dot_dimension_numbers<[1], [0], [0], [1], [0, 0, 1, 1], [], []>} : vector<8x32xbf16>, vector<32x96xbf16>, vector<8x96xf32> -> vector<8x96xf32>
    %8 = vector.broadcast %5 : vector<1x96xf32> to vector<8x96xf32>
    %9 = arith.addf %7, %8 : vector<8x96xf32>
    %10 = vector.extract_strided_slice %9 {offsets = [0, 0], sizes = [8, 32], strides = [1, 1]} : vector<8x96xf32> to vector<8x32xf32>
    %11 = vector.extract_strided_slice %9 {offsets = [0, 32], sizes = [8, 32], strides = [1, 1]} : vector<8x96xf32> to vector<8x32xf32>
    %12 = vector.extract_strided_slice %9 {offsets = [0, 64], sizes = [8, 32], strides = [1, 1]} : vector<8x96xf32> to vector<8x32xf32>
    %13 = vector.extract_strided_slice %10 {offsets = [0, 0], sizes = [8, 8], strides = [1, 1]} : vector<8x32xf32> to vector<8x8xf32>
    %cst_9 = arith.constant 0.353553385 : f32
    %14 = vector.broadcast %cst_9 : f32 to vector<8x8xf32>
    %15 = arith.mulf %13, %14 : vector<8x8xf32>
    %16 = arith.truncf %15 : vector<8x8xf32> to vector<8x8xbf16>
    %17 = vector.extract_strided_slice %11 {offsets = [0, 0], sizes = [8, 8], strides = [1, 1]} : vector<8x32xf32> to vector<8x8xf32>
    %18 = arith.truncf %17 : vector<8x8xf32> to vector<8x8xbf16>
    %19 = vector.extract_strided_slice %12 {offsets = [0, 0], sizes = [8, 8], strides = [1, 1]} : vector<8x32xf32> to vector<8x8xf32>
    %20 = arith.truncf %19 : vector<8x8xf32> to vector<8x8xbf16>
    %cst_10 = arith.constant dense<0.000000e+00> : vector<8x8xf32>
    %21 = tpu.matmul %16, %18, %cst_10 {dimension_numbers = #tpu.dot_dimension_numbers<[1], [1], [0], [0], [0, 0, 1, 0], [], []>} : vector<8x8xbf16>, vector<8x8xbf16>, vector<8x8xf32> -> vector<8x8xf32>
    %22 = vector.broadcast %3 : vector<1x8xf32> to vector<8x8xf32>
    %23 = arith.addf %21, %22 : vector<8x8xf32>
    %cst_11 = arith.constant dense<0xFF800000> : vector<8xf32>
    %24 = vector.multi_reduction <maximumf>, %23, %cst_11 [1] : vector<8x8xf32> to vector<8xf32>
    %25 = vector.shape_cast %24 : vector<8xf32> to vector<8x1xf32>
    %26 = vector.broadcast %25 : vector<8x1xf32> to vector<8x8xf32>
    %27 = arith.subf %23, %26 : vector<8x8xf32>
    %28 = math.exp %27 : vector<8x8xf32>
    %cst_12 = arith.constant dense<0.000000e+00> : vector<8xf32>
    %29 = vector.multi_reduction <add>, %28, %cst_12 [1] : vector<8x8xf32> to vector<8xf32>
    %30 = vector.shape_cast %29 : vector<8xf32> to vector<8x1xf32>
    %31 = tpu.reciprocal %30 {approx = true} : vector<8x1xf32> -> vector<8x1xf32>
    %32 = vector.broadcast %31 : vector<8x1xf32> to vector<8x8xf32>
    %33 = arith.mulf %28, %32 : vector<8x8xf32>
    %34 = arith.truncf %33 : vector<8x8xf32> to vector<8x8xbf16>
    %cst_13 = arith.constant dense<0.000000e+00> : vector<8x8xf32>
    %35 = tpu.matmul %34, %20, %cst_13 {dimension_numbers = #tpu.dot_dimension_numbers<[1], [0], [0], [1], [0, 0, 1, 1], [], []>} : vector<8x8xbf16>, vector<8x8xbf16>, vector<8x8xf32> -> vector<8x8xf32>
    %36 = vector.extract_strided_slice %10 {offsets = [0, 8], sizes = [8, 8], strides = [1, 1]} : vector<8x32xf32> to vector<8x8xf32>
    %cst_14 = arith.constant 0.353553385 : f32
    %37 = vector.broadcast %cst_14 : f32 to vector<8x8xf32>
    %38 = arith.mulf %36, %37 : vector<8x8xf32>
    %39 = arith.truncf %38 : vector<8x8xf32> to vector<8x8xbf16>
    %40 = vector.extract_strided_slice %11 {offsets = [0, 8], sizes = [8, 8], strides = [1, 1]} : vector<8x32xf32> to vector<8x8xf32>
    %41 = arith.truncf %40 : vector<8x8xf32> to vector<8x8xbf16>
    %42 = vector.extract_strided_slice %12 {offsets = [0, 8], sizes = [8, 8], strides = [1, 1]} : vector<8x32xf32> to vector<8x8xf32>
    %43 = arith.truncf %42 : vector<8x8xf32> to vector<8x8xbf16>
    %cst_15 = arith.constant dense<0.000000e+00> : vector<8x8xf32>
    %44 = tpu.matmul %39, %41, %cst_15 {dimension_numbers = #tpu.dot_dimension_numbers<[1], [1], [0], [0], [0, 0, 1, 0], [], []>} : vector<8x8xbf16>, vector<8x8xbf16>, vector<8x8xf32> -> vector<8x8xf32>
    %45 = vector.broadcast %3 : vector<1x8xf32> to vector<8x8xf32>
    %46 = arith.addf %44, %45 : vector<8x8xf32>
    %cst_16 = arith.constant dense<0xFF800000> : vector<8xf32>
    %47 = vector.multi_reduction <maximumf>, %46, %cst_16 [1] : vector<8x8xf32> to vector<8xf32>
    %48 = vector.shape_cast %47 : vector<8xf32> to vector<8x1xf32>
    %49 = vector.broadcast %48 : vector<8x1xf32> to vector<8x8xf32>
    %50 = arith.subf %46, %49 : vector<8x8xf32>
    %51 = math.exp %50 : vector<8x8xf32>
    %cst_17 = arith.constant dense<0.000000e+00> : vector<8xf32>
    %52 = vector.multi_reduction <add>, %51, %cst_17 [1] : vector<8x8xf32> to vector<8xf32>
    %53 = vector.shape_cast %52 : vector<8xf32> to vector<8x1xf32>
    %54 = tpu.reciprocal %53 {approx = true} : vector<8x1xf32> -> vector<8x1xf32>
    %55 = vector.broadcast %54 : vector<8x1xf32> to vector<8x8xf32>
    %56 = arith.mulf %51, %55 : vector<8x8xf32>
    %57 = arith.truncf %56 : vector<8x8xf32> to vector<8x8xbf16>
    %cst_18 = arith.constant dense<0.000000e+00> : vector<8x8xf32>
    %58 = tpu.matmul %57, %43, %cst_18 {dimension_numbers = #tpu.dot_dimension_numbers<[1], [0], [0], [1], [0, 0, 1, 1], [], []>} : vector<8x8xbf16>, vector<8x8xbf16>, vector<8x8xf32> -> vector<8x8xf32>
    %59 = vector.extract_strided_slice %10 {offsets = [0, 16], sizes = [8, 8], strides = [1, 1]} : vector<8x32xf32> to vector<8x8xf32>
    %cst_19 = arith.constant 0.353553385 : f32
    %60 = vector.broadcast %cst_19 : f32 to vector<8x8xf32>
    %61 = arith.mulf %59, %60 : vector<8x8xf32>
    %62 = arith.truncf %61 : vector<8x8xf32> to vector<8x8xbf16>
    %63 = vector.extract_strided_slice %11 {offsets = [0, 16], sizes = [8, 8], strides = [1, 1]} : vector<8x32xf32> to vector<8x8xf32>
    %64 = arith.truncf %63 : vector<8x8xf32> to vector<8x8xbf16>
    %65 = vector.extract_strided_slice %12 {offsets = [0, 16], sizes = [8, 8], strides = [1, 1]} : vector<8x32xf32> to vector<8x8xf32>
    %66 = arith.truncf %65 : vector<8x8xf32> to vector<8x8xbf16>
    %cst_20 = arith.constant dense<0.000000e+00> : vector<8x8xf32>
    %67 = tpu.matmul %62, %64, %cst_20 {dimension_numbers = #tpu.dot_dimension_numbers<[1], [1], [0], [0], [0, 0, 1, 0], [], []>} : vector<8x8xbf16>, vector<8x8xbf16>, vector<8x8xf32> -> vector<8x8xf32>
    %68 = vector.broadcast %3 : vector<1x8xf32> to vector<8x8xf32>
    %69 = arith.addf %67, %68 : vector<8x8xf32>
    %cst_21 = arith.constant dense<0xFF800000> : vector<8xf32>
    %70 = vector.multi_reduction <maximumf>, %69, %cst_21 [1] : vector<8x8xf32> to vector<8xf32>
    %71 = vector.shape_cast %70 : vector<8xf32> to vector<8x1xf32>
    %72 = vector.broadcast %71 : vector<8x1xf32> to vector<8x8xf32>
    %73 = arith.subf %69, %72 : vector<8x8xf32>
    %74 = math.exp %73 : vector<8x8xf32>
    %cst_22 = arith.constant dense<0.000000e+00> : vector<8xf32>
    %75 = vector.multi_reduction <add>, %74, %cst_22 [1] : vector<8x8xf32> to vector<8xf32>
    %76 = vector.shape_cast %75 : vector<8xf32> to vector<8x1xf32>
    %77 = tpu.reciprocal %76 {approx = true} : vector<8x1xf32> -> vector<8x1xf32>
    %78 = vector.broadcast %77 : vector<8x1xf32> to vector<8x8xf32>
    %79 = arith.mulf %74, %78 : vector<8x8xf32>
    %80 = arith.truncf %79 : vector<8x8xf32> to vector<8x8xbf16>
    %cst_23 = arith.constant dense<0.000000e+00> : vector<8x8xf32>
    %81 = tpu.matmul %80, %66, %cst_23 {dimension_numbers = #tpu.dot_dimension_numbers<[1], [0], [0], [1], [0, 0, 1, 1], [], []>} : vector<8x8xbf16>, vector<8x8xbf16>, vector<8x8xf32> -> vector<8x8xf32>
    %82 = vector.extract_strided_slice %10 {offsets = [0, 24], sizes = [8, 8], strides = [1, 1]} : vector<8x32xf32> to vector<8x8xf32>
    %cst_24 = arith.constant 0.353553385 : f32
    %83 = vector.broadcast %cst_24 : f32 to vector<8x8xf32>
    %84 = arith.mulf %82, %83 : vector<8x8xf32>
    %85 = arith.truncf %84 : vector<8x8xf32> to vector<8x8xbf16>
    %86 = vector.extract_strided_slice %11 {offsets = [0, 24], sizes = [8, 8], strides = [1, 1]} : vector<8x32xf32> to vector<8x8xf32>
    %87 = arith.truncf %86 : vector<8x8xf32> to vector<8x8xbf16>
    %88 = vector.extract_strided_slice %12 {offsets = [0, 24], sizes = [8, 8], strides = [1, 1]} : vector<8x32xf32> to vector<8x8xf32>
    %89 = arith.truncf %88 : vector<8x8xf32> to vector<8x8xbf16>
    %cst_25 = arith.constant dense<0.000000e+00> : vector<8x8xf32>
    %90 = tpu.matmul %85, %87, %cst_25 {dimension_numbers = #tpu.dot_dimension_numbers<[1], [1], [0], [0], [0, 0, 1, 0], [], []>} : vector<8x8xbf16>, vector<8x8xbf16>, vector<8x8xf32> -> vector<8x8xf32>
    %91 = vector.broadcast %3 : vector<1x8xf32> to vector<8x8xf32>
    %92 = arith.addf %90, %91 : vector<8x8xf32>
    %cst_26 = arith.constant dense<0xFF800000> : vector<8xf32>
    %93 = vector.multi_reduction <maximumf>, %92, %cst_26 [1] : vector<8x8xf32> to vector<8xf32>
    %94 = vector.shape_cast %93 : vector<8xf32> to vector<8x1xf32>
    %95 = vector.broadcast %94 : vector<8x1xf32> to vector<8x8xf32>
    %96 = arith.subf %92, %95 : vector<8x8xf32>
    %97 = math.exp %96 : vector<8x8xf32>
    %cst_27 = arith.constant dense<0.000000e+00> : vector<8xf32>
    %98 = vector.multi_reduction <add>, %97, %cst_27 [1] : vector<8x8xf32> to vector<8xf32>
    %99 = vector.shape_cast %98 : vector<8xf32> to vector<8x1xf32>
    %100 = tpu.reciprocal %99 {approx = true} : vector<8x1xf32> -> vector<8x1xf32>
    %101 = vector.broadcast %100 : vector<8x1xf32> to vector<8x8xf32>
    %102 = arith.mulf %97, %101 : vector<8x8xf32>
    %103 = arith.truncf %102 : vector<8x8xf32> to vector<8x8xbf16>
    %cst_28 = arith.constant dense<0.000000e+00> : vector<8x8xf32>
    %104 = tpu.matmul %103, %89, %cst_28 {dimension_numbers = #tpu.dot_dimension_numbers<[1], [0], [0], [1], [0, 0, 1, 1], [], []>} : vector<8x8xbf16>, vector<8x8xbf16>, vector<8x8xf32> -> vector<8x8xf32>
    %105 = tpu.concatenate %35, %58, %81, %104 in 1 : vector<8x8xf32>, vector<8x8xf32>, vector<8x8xf32>, vector<8x8xf32> -> vector<8x32xf32>
    %c0_29 = arith.constant 0 : index
    %c0_30 = arith.constant 0 : index
    %106 = vector.load %arg5[%c0_29, %c0_30] : memref<32x32xbf16, #tpu.memory_space<vmem>>, vector<32x32xbf16>
    %c0_31 = arith.constant 0 : index
    %c0_32 = arith.constant 0 : index
    %107 = vector.load %arg6[%c0_31, %c0_32] : memref<1x32xf32, #tpu.memory_space<vmem>>, vector<1x32xf32>
    %108 = arith.truncf %105 : vector<8x32xf32> to vector<8x32xbf16>
    %cst_33 = arith.constant dense<0.000000e+00> : vector<8x32xf32>
    %109 = tpu.matmul %108, %106, %cst_33 {dimension_numbers = #tpu.dot_dimension_numbers<[1], [0], [0], [1], [0, 0, 1, 1], [], []>} : vector<8x32xbf16>, vector<32x32xbf16>, vector<8x32xf32> -> vector<8x32xf32>
    %110 = vector.broadcast %107 : vector<1x32xf32> to vector<8x32xf32>
    %111 = arith.addf %109, %110 : vector<8x32xf32>
    %112 = arith.addf %1, %111 : vector<8x32xf32>
    %c0_34 = arith.constant 0 : index
    %c0_35 = arith.constant 0 : index
    %113 = vector.load %arg7[%c0_34, %c0_35] : memref<1x32xf32, #tpu.memory_space<vmem>>, vector<1x32xf32>
    %c0_36 = arith.constant 0 : index
    %c0_37 = arith.constant 0 : index
    %114 = vector.load %arg8[%c0_36, %c0_37] : memref<1x32xf32, #tpu.memory_space<vmem>>, vector<1x32xf32>
    %cst_38 = arith.constant dense<0.000000e+00> : vector<8xf32>
    %115 = vector.multi_reduction <add>, %112, %cst_38 [1] : vector<8x32xf32> to vector<8xf32>
    %116 = vector.shape_cast %115 : vector<8xf32> to vector<8x1xf32>
    %cst_39 = arith.constant 3.200000e+01 : f32
    %117 = vector.broadcast %cst_39 : f32 to vector<8x1xf32>
    %118 = arith.divf %116, %117 : vector<8x1xf32>
    %119 = vector.broadcast %118 : vector<8x1xf32> to vector<8x32xf32>
    %120 = arith.subf %112, %119 : vector<8x32xf32>
    %121 = arith.mulf %120, %120 : vector<8x32xf32>
    %cst_40 = arith.constant dense<0.000000e+00> : vector<8xf32>
    %122 = vector.multi_reduction <add>, %121, %cst_40 [1] : vector<8x32xf32> to vector<8xf32>
    %123 = vector.shape_cast %122 : vector<8xf32> to vector<8x1xf32>
    %cst_41 = arith.constant 3.200000e+01 : f32
    %124 = vector.broadcast %cst_41 : f32 to vector<8x1xf32>
    %125 = arith.divf %123, %124 : vector<8x1xf32>
    %126 = vector.broadcast %118 : vector<8x1xf32> to vector<8x32xf32>
    %127 = arith.subf %112, %126 : vector<8x32xf32>
    %cst_42 = arith.constant 9.99999974E-6 : f32
    %128 = vector.broadcast %cst_42 : f32 to vector<8x1xf32>
    %129 = arith.addf %125, %128 : vector<8x1xf32>
    %130 = math.rsqrt %129 : vector<8x1xf32>
    %131 = vector.broadcast %130 : vector<8x1xf32> to vector<8x32xf32>
    %132 = arith.mulf %127, %131 : vector<8x32xf32>
    %133 = vector.broadcast %113 : vector<1x32xf32> to vector<8x32xf32>
    %134 = arith.mulf %132, %133 : vector<8x32xf32>
    %135 = vector.broadcast %114 : vector<1x32xf32> to vector<8x32xf32>
    %136 = arith.addf %134, %135 : vector<8x32xf32>
    %c0_43 = arith.constant 0 : index
    %c0_44 = arith.constant 0 : index
    %137 = vector.load %arg9[%c0_43, %c0_44] : memref<32x64xbf16, #tpu.memory_space<vmem>>, vector<32x64xbf16>
    %c0_45 = arith.constant 0 : index
    %c0_46 = arith.constant 0 : index
    %138 = vector.load %arg10[%c0_45, %c0_46] : memref<1x64xf32, #tpu.memory_space<vmem>>, vector<1x64xf32>
    %139 = arith.truncf %136 : vector<8x32xf32> to vector<8x32xbf16>
    %cst_47 = arith.constant dense<0.000000e+00> : vector<8x64xf32>
    %140 = tpu.matmul %139, %137, %cst_47 {dimension_numbers = #tpu.dot_dimension_numbers<[1], [0], [0], [1], [0, 0, 1, 1], [], []>} : vector<8x32xbf16>, vector<32x64xbf16>, vector<8x64xf32> -> vector<8x64xf32>
    %141 = vector.broadcast %138 : vector<1x64xf32> to vector<8x64xf32>
    %142 = arith.addf %140, %141 : vector<8x64xf32>
    %cst_48 = arith.constant 0.000000e+00 : f32
    %143 = vector.broadcast %cst_48 : f32 to vector<8x64xf32>
    %144 = arith.maximumf %142, %143 : vector<8x64xf32>
    %c0_49 = arith.constant 0 : index
    %c0_50 = arith.constant 0 : index
    %145 = vector.load %arg11[%c0_49, %c0_50] : memref<64x32xbf16, #tpu.memory_space<vmem>>, vector<64x32xbf16>
    %c0_51 = arith.constant 0 : index
    %c0_52 = arith.constant 0 : index
    %146 = vector.load %arg12[%c0_51, %c0_52] : memref<1x32xf32, #tpu.memory_space<vmem>>, vector<1x32xf32>
    %147 = arith.truncf %144 : vector<8x64xf32> to vector<8x64xbf16>
    %cst_53 = arith.constant dense<0.000000e+00> : vector<8x32xf32>
    %148 = tpu.matmul %147, %145, %cst_53 {dimension_numbers = #tpu.dot_dimension_numbers<[1], [0], [0], [1], [0, 0, 1, 1], [], []>} : vector<8x64xbf16>, vector<64x32xbf16>, vector<8x32xf32> -> vector<8x32xf32>
    %149 = vector.broadcast %146 : vector<1x32xf32> to vector<8x32xf32>
    %150 = arith.addf %148, %149 : vector<8x32xf32>
    %151 = arith.addf %136, %150 : vector<8x32xf32>
    %c0_54 = arith.constant 0 : index
    %c0_55 = arith.constant 0 : index
    %152 = vector.load %arg13[%c0_54, %c0_55] : memref<1x32xf32, #tpu.memory_space<vmem>>, vector<1x32xf32>
    %c0_56 = arith.constant 0 : index
    %c0_57 = arith.constant 0 : index
    %153 = vector.load %arg14[%c0_56, %c0_57] : memref<1x32xf32, #tpu.memory_space<vmem>>, vector<1x32xf32>
    %cst_58 = arith.constant dense<0.000000e+00> : vector<8xf32>
    %154 = vector.multi_reduction <add>, %151, %cst_58 [1] : vector<8x32xf32> to vector<8xf32>
    %155 = vector.shape_cast %154 : vector<8xf32> to vector<8x1xf32>
    %cst_59 = arith.constant 3.200000e+01 : f32
    %156 = vector.broadcast %cst_59 : f32 to vector<8x1xf32>
    %157 = arith.divf %155, %156 : vector<8x1xf32>
    %158 = vector.broadcast %157 : vector<8x1xf32> to vector<8x32xf32>
    %159 = arith.subf %151, %158 : vector<8x32xf32>
    %160 = arith.mulf %159, %159 : vector<8x32xf32>
    %cst_60 = arith.constant dense<0.000000e+00> : vector<8xf32>
    %161 = vector.multi_reduction <add>, %160, %cst_60 [1] : vector<8x32xf32> to vector<8xf32>
    %162 = vector.shape_cast %161 : vector<8xf32> to vector<8x1xf32>
    %cst_61 = arith.constant 3.200000e+01 : f32
    %163 = vector.broadcast %cst_61 : f32 to vector<8x1xf32>
    %164 = arith.divf %162, %163 : vector<8x1xf32>
    %165 = vector.broadcast %157 : vector<8x1xf32> to vector<8x32xf32>
    %166 = arith.subf %151, %165 : vector<8x32xf32>
    %cst_62 = arith.constant 9.99999974E-6 : f32
    %167 = vector.broadcast %cst_62 : f32 to vector<8x1xf32>
    %168 = arith.addf %164, %167 : vector<8x1xf32>
    %169 = math.rsqrt %168 : vector<8x1xf32>
    %170 = vector.broadcast %169 : vector<8x1xf32> to vector<8x32xf32>
    %171 = arith.mulf %166, %170 : vector<8x32xf32>
    %172 = vector.broadcast %152 : vector<1x32xf32> to vector<8x32xf32>
    %173 = arith.mulf %171, %172 : vector<8x32xf32>
    %174 = vector.broadcast %153 : vector<1x32xf32> to vector<8x32xf32>
    %175 = arith.addf %173, %174 : vector<8x32xf32>
    %c0_63 = arith.constant 0 : index
    %c0_64 = arith.constant 0 : index
    %c0_65 = arith.constant 0 : index
    %176 = vector.load %arg15[%c0_63, %c0_64, %c0_65] : memref<1x8x32xf32, #tpu.memory_space<vmem>>, vector<1x8x32xf32>
    %177 = vector.shape_cast %176 : vector<1x8x32xf32> to vector<8x32xf32>
    %178 = vector.shape_cast %175 : vector<8x32xf32> to vector<1x8x32xf32>
    tpu.vector_store %arg15[%c0_63, %c0_64, %c0_65], %178 {strides = array<i32>} : memref<1x8x32xf32, #tpu.memory_space<vmem>>, vector<1x8x32xf32>,
    return
  }
  func.func @transform_0(%arg0: i32) -> (i32, i32, i32) {
    %c0_i32 = arith.constant 0 : i32
    %c0_i32_0 = arith.constant 0 : i32
    %c0_i32_1 = arith.constant 0 : i32
    return %arg0, %c0_i32, %c0_i32_0 : i32, i32, i32
  }
  func.func @transform_1(%arg0: i32) -> (i32, i32, i32) {
    %c0_i32 = arith.constant 0 : i32
    %c0_i32_0 = arith.constant 0 : i32
    %c0_i32_1 = arith.constant 0 : i32
    return %arg0, %c0_i32, %c0_i32_0 : i32, i32, i32
  }
  func.func @transform_2(%arg0: i32) -> (i32, i32) {
    %c0_i32 = arith.constant 0 : i32
    %c0_i32_0 = arith.constant 0 : i32
    %c0_i32_1 = arith.constant 0 : i32
    return %c0_i32, %c0_i32_0 : i32, i32
  }
  func.func @transform_3(%arg0: i32) -> (i32, i32) {
    %c0_i32 = arith.constant 0 : i32
    %c0_i32_0 = arith.constant 0 : i32
    %c0_i32_1 = arith.constant 0 : i32
    return %c0_i32, %c0_i32_0 : i32, i32
  }
  func.func @transform_4(%arg0: i32) -> (i32, i32) {
    %c0_i32 = arith.constant 0 : i32
    %c0_i32_0 = arith.constant 0 : i32
    %c0_i32_1 = arith.constant 0 : i32
    return %c0_i32, %c0_i32_0 : i32, i32
  }
  func.func @transform_5(%arg0: i32) -> (i32, i32) {
    %c0_i32 = arith.constant 0 : i32
    %c0_i32_0 = arith.constant 0 : i32
    %c0_i32_1 = arith.constant 0 : i32
    return %c0_i32, %c0_i32_0 : i32, i32
  }
  func.func @transform_6(%arg0: i32) -> (i32, i32) {
    %c0_i32 = arith.constant 0 : i32
    %c0_i32_0 = arith.constant 0 : i32
    %c0_i32_1 = arith.constant 0 : i32
    return %c0_i32, %c0_i32_0 : i32, i32
  }
  func.func @transform_7(%arg0: i32) -> (i32, i32) {
    %c0_i32 = arith.constant 0 : i32
    %c0_i32_0 = arith.constant 0 : i32
    %c0_i32_1 = arith.constant 0 : i32
    return %c0_i32, %c0_i32_0 : i32, i32
  }
  func.func @transform_8(%arg0: i32) -> (i32, i32) {
    %c0_i32 = arith.constant 0 : i32
    %c0_i32_0 = arith.constant 0 : i32
    %c0_i32_1 = arith.constant 0 : i32
    return %c0_i32, %c0_i32_0 : i32, i32
  }
  func.func @transform_9(%arg0: i32) -> (i32, i32) {
    %c0_i32 = arith.constant 0 : i32
    %c0_i32_0 = arith.constant 0 : i32
    %c0_i32_1 = arith.constant 0 : i32
    return %c0_i32, %c0_i32_0 : i32, i32
  }
  func.func @transform_10(%arg0: i32) -> (i32, i32) {
    %c0_i32 = arith.constant 0 : i32
    %c0_i32_0 = arith.constant 0 : i32
    %c0_i32_1 = arith.constant 0 : i32
    return %c0_i32, %c0_i32_0 : i32, i32
  }
  func.func @transform_11(%arg0: i32) -> (i32, i32) {
    %c0_i32 = arith.constant 0 : i32
    %c0_i32_0 = arith.constant 0 : i32
    %c0_i32_1 = arith.constant 0 : i32
    return %c0_i32, %c0_i32_0 : i32, i32
  }
  func.func @transform_12(%arg0: i32) -> (i32, i32) {
    %c0_i32 = arith.constant 0 : i32
    %c0_i32_0 = arith.constant 0 : i32
    %c0_i32_1 = arith.constant 0 : i32
    return %c0_i32, %c0_i32_0 : i32, i32
  }
  func.func @transform_13(%arg0: i32) -> (i32, i32) {
    %c0_i32 = arith.constant 0 : i32
    %c0_i32_0 = arith.constant 0 : i32
    %c0_i32_1 = arith.constant 0 : i32
    return %c0_i32, %c0_i32_0 : i32, i32
  }
  func.func @transform_14(%arg0: i32) -> (i32, i32, i32) {
    %c0_i32 = arith.constant 0 : i32
    %c0_i32_0 = arith.constant 0 : i32
    %c0_i32_1 = arith.constant 0 : i32
    return %arg0, %c0_i32, %c0_i32_0 : i32, i32, i32
  }
}

module attributes {stable_mosaic.version = 11 : i64} {
  func.func @_ln_fcout_kernel(%arg0: i32, %arg1: memref<12x32xf32, #tpu.memory_space<vmem>>, %arg2: memref<1x32xf32, #tpu.memory_space<vmem>>, %arg3: memref<1x32xf32, #tpu.memory_space<vmem>>, %arg4: memref<32x128xbf16, #tpu.memory_space<vmem>>, %arg5: memref<1x128xf32, #tpu.memory_space<vmem>>, %arg6: memref<12x128xf32, #tpu.memory_space<vmem>>) attributes {dimension_semantics = [#tpu.dimension_semantics<parallel>], iteration_bounds = array<i64: 1>, scalar_prefetch = 0 : i64, scratch_operands = 0 : i64, tpu.core_type = #tpu.core_type<tc>, window_params = [{pipeline_mode = #tpu.pipeline_mode<synchronous>, transform_indices = @transform_0, window_bounds = array<i64: 12, 32>}, {pipeline_mode = #tpu.pipeline_mode<synchronous>, transform_indices = @transform_1, window_bounds = array<i64: 1, 32>}, {pipeline_mode = #tpu.pipeline_mode<synchronous>, transform_indices = @transform_2, window_bounds = array<i64: 1, 32>}, {transform_indices = @transform_3, window_bounds = array<i64: 32, 128>}, {transform_indices = @transform_4, window_bounds = array<i64: 1, 128>}, {transform_indices = @transform_5, window_bounds = array<i64: 12, 128>}]} {
    %c0 = arith.constant 0 : index
    %c0_0 = arith.constant 0 : index
    %0 = vector.load %arg1[%c0, %c0_0] : memref<12x32xf32, #tpu.memory_space<vmem>>, vector<12x32xf32>
    %c0_1 = arith.constant 0 : index
    %c0_2 = arith.constant 0 : index
    %1 = vector.load %arg2[%c0_1, %c0_2] : memref<1x32xf32, #tpu.memory_space<vmem>>, vector<1x32xf32>
    %c0_3 = arith.constant 0 : index
    %c0_4 = arith.constant 0 : index
    %2 = vector.load %arg3[%c0_3, %c0_4] : memref<1x32xf32, #tpu.memory_space<vmem>>, vector<1x32xf32>
    %cst = arith.constant dense<0.000000e+00> : vector<12xf32>
    %3 = vector.multi_reduction <add>, %0, %cst [1] : vector<12x32xf32> to vector<12xf32>
    %4 = vector.shape_cast %3 : vector<12xf32> to vector<12x1xf32>
    %cst_5 = arith.constant 3.200000e+01 : f32
    %5 = vector.broadcast %cst_5 : f32 to vector<12x1xf32>
    %6 = arith.divf %4, %5 : vector<12x1xf32>
    %7 = vector.broadcast %6 : vector<12x1xf32> to vector<12x32xf32>
    %8 = arith.subf %0, %7 : vector<12x32xf32>
    %9 = arith.mulf %8, %8 : vector<12x32xf32>
    %cst_6 = arith.constant dense<0.000000e+00> : vector<12xf32>
    %10 = vector.multi_reduction <add>, %9, %cst_6 [1] : vector<12x32xf32> to vector<12xf32>
    %11 = vector.shape_cast %10 : vector<12xf32> to vector<12x1xf32>
    %cst_7 = arith.constant 3.200000e+01 : f32
    %12 = vector.broadcast %cst_7 : f32 to vector<12x1xf32>
    %13 = arith.divf %11, %12 : vector<12x1xf32>
    %14 = vector.broadcast %6 : vector<12x1xf32> to vector<12x32xf32>
    %15 = arith.subf %0, %14 : vector<12x32xf32>
    %cst_8 = arith.constant 9.99999974E-6 : f32
    %16 = vector.broadcast %cst_8 : f32 to vector<12x1xf32>
    %17 = arith.addf %13, %16 : vector<12x1xf32>
    %18 = math.rsqrt %17 : vector<12x1xf32>
    %19 = vector.broadcast %18 : vector<12x1xf32> to vector<12x32xf32>
    %20 = arith.mulf %15, %19 : vector<12x32xf32>
    %21 = vector.broadcast %1 : vector<1x32xf32> to vector<12x32xf32>
    %22 = arith.mulf %20, %21 : vector<12x32xf32>
    %23 = vector.broadcast %2 : vector<1x32xf32> to vector<12x32xf32>
    %24 = arith.addf %22, %23 : vector<12x32xf32>
    %c0_9 = arith.constant 0 : index
    %c0_10 = arith.constant 0 : index
    %25 = vector.load %arg4[%c0_9, %c0_10] : memref<32x128xbf16, #tpu.memory_space<vmem>>, vector<32x128xbf16>
    %c0_11 = arith.constant 0 : index
    %c0_12 = arith.constant 0 : index
    %26 = vector.load %arg5[%c0_11, %c0_12] : memref<1x128xf32, #tpu.memory_space<vmem>>, vector<1x128xf32>
    %27 = arith.truncf %24 : vector<12x32xf32> to vector<12x32xbf16>
    %cst_13 = arith.constant dense<0.000000e+00> : vector<12x128xf32>
    %28 = tpu.matmul %27, %25, %cst_13 {dimension_numbers = #tpu.dot_dimension_numbers<[1], [0], [0], [1], [0, 0, 1, 1], [], []>} : vector<12x32xbf16>, vector<32x128xbf16>, vector<12x128xf32> -> vector<12x128xf32>
    %29 = vector.broadcast %26 : vector<1x128xf32> to vector<12x128xf32>
    %30 = arith.addf %28, %29 : vector<12x128xf32>
    %c0_14 = arith.constant 0 : index
    %c0_15 = arith.constant 0 : index
    %31 = vector.load %arg6[%c0_14, %c0_15] : memref<12x128xf32, #tpu.memory_space<vmem>>, vector<12x128xf32>
    tpu.vector_store %arg6[%c0_14, %c0_15], %30 {strides = array<i32>} : memref<12x128xf32, #tpu.memory_space<vmem>>, vector<12x128xf32>,
    return
  }
  func.func @transform_0(%arg0: i32) -> (i32, i32) {
    %c0_i32 = arith.constant 0 : i32
    %c0_i32_0 = arith.constant 0 : i32
    %c0_i32_1 = arith.constant 0 : i32
    return %c0_i32, %c0_i32_0 : i32, i32
  }
  func.func @transform_1(%arg0: i32) -> (i32, i32) {
    %c0_i32 = arith.constant 0 : i32
    %c0_i32_0 = arith.constant 0 : i32
    %c0_i32_1 = arith.constant 0 : i32
    return %c0_i32, %c0_i32_0 : i32, i32
  }
  func.func @transform_2(%arg0: i32) -> (i32, i32) {
    %c0_i32 = arith.constant 0 : i32
    %c0_i32_0 = arith.constant 0 : i32
    %c0_i32_1 = arith.constant 0 : i32
    return %c0_i32, %c0_i32_0 : i32, i32
  }
  func.func @transform_3(%arg0: i32) -> (i32, i32) {
    %c0_i32 = arith.constant 0 : i32
    %c0_i32_0 = arith.constant 0 : i32
    return %c0_i32, %arg0 : i32, i32
  }
  func.func @transform_4(%arg0: i32) -> (i32, i32) {
    %c0_i32 = arith.constant 0 : i32
    %c0_i32_0 = arith.constant 0 : i32
    return %c0_i32, %arg0 : i32, i32
  }
  func.func @transform_5(%arg0: i32) -> (i32, i32) {
    %c0_i32 = arith.constant 0 : i32
    %c0_i32_0 = arith.constant 0 : i32
    return %c0_i32, %arg0 : i32, i32
  }
}

module attributes {stable_mosaic.version = 11 : i64} {
  func.func @_decoder_layer_kernel(%arg0: i32, %arg1: memref<1x6x32xf32, #tpu.memory_space<vmem>>, %arg2: memref<1x8x32xf32, #tpu.memory_space<vmem>>, %arg3: memref<32x96xbf16, #tpu.memory_space<vmem>>, %arg4: memref<1x96xf32, #tpu.memory_space<vmem>>, %arg5: memref<32x32xbf16, #tpu.memory_space<vmem>>, %arg6: memref<1x32xf32, #tpu.memory_space<vmem>>, %arg7: memref<1x32xf32, #tpu.memory_space<vmem>>, %arg8: memref<1x32xf32, #tpu.memory_space<vmem>>, %arg9: memref<32x32xbf16, #tpu.memory_space<vmem>>, %arg10: memref<1x32xf32, #tpu.memory_space<vmem>>, %arg11: memref<32x64xbf16, #tpu.memory_space<vmem>>, %arg12: memref<1x64xf32, #tpu.memory_space<vmem>>, %arg13: memref<32x32xbf16, #tpu.memory_space<vmem>>, %arg14: memref<1x32xf32, #tpu.memory_space<vmem>>, %arg15: memref<1x32xf32, #tpu.memory_space<vmem>>, %arg16: memref<1x32xf32, #tpu.memory_space<vmem>>, %arg17: memref<32x64xbf16, #tpu.memory_space<vmem>>, %arg18: memref<1x64xf32, #tpu.memory_space<vmem>>, %arg19: memref<64x32xbf16, #tpu.memory_space<vmem>>, %arg20: memref<1x32xf32, #tpu.memory_space<vmem>>, %arg21: memref<1x32xf32, #tpu.memory_space<vmem>>, %arg22: memref<1x32xf32, #tpu.memory_space<vmem>>, %arg23: memref<1x6x32xf32, #tpu.memory_space<vmem>>) attributes {dimension_semantics = [#tpu.dimension_semantics<parallel>], iteration_bounds = array<i64: 2>, scalar_prefetch = 0 : i64, scratch_operands = 0 : i64, tpu.core_type = #tpu.core_type<tc>, window_params = [{transform_indices = @transform_0, window_bounds = array<i64: 1, 6, 32>}, {transform_indices = @transform_1, window_bounds = array<i64: 1, 8, 32>}, {pipeline_mode = #tpu.pipeline_mode<synchronous>, transform_indices = @transform_2, window_bounds = array<i64: 32, 96>}, {pipeline_mode = #tpu.pipeline_mode<synchronous>, transform_indices = @transform_3, window_bounds = array<i64: 1, 96>}, {pipeline_mode = #tpu.pipeline_mode<synchronous>, transform_indices = @transform_4, window_bounds = array<i64: 32, 32>}, {pipeline_mode = #tpu.pipeline_mode<synchronous>, transform_indices = @transform_5, window_bounds = array<i64: 1, 32>}, {pipeline_mode = #tpu.pipeline_mode<synchronous>, transform_indices = @transform_6, window_bounds = array<i64: 1, 32>}, {pipeline_mode = #tpu.pipeline_mode<synchronous>, transform_indices = @transform_7, window_bounds = array<i64: 1, 32>}, {pipeline_mode = #tpu.pipeline_mode<synchronous>, transform_indices = @transform_8, window_bounds = array<i64: 32, 32>}, {pipeline_mode = #tpu.pipeline_mode<synchronous>, transform_indices = @transform_9, window_bounds = array<i64: 1, 32>}, {pipeline_mode = #tpu.pipeline_mode<synchronous>, transform_indices = @transform_10, window_bounds = array<i64: 32, 64>}, {pipeline_mode = #tpu.pipeline_mode<synchronous>, transform_indices = @transform_11, window_bounds = array<i64: 1, 64>}, {pipeline_mode = #tpu.pipeline_mode<synchronous>, transform_indices = @transform_12, window_bounds = array<i64: 32, 32>}, {pipeline_mode = #tpu.pipeline_mode<synchronous>, transform_indices = @transform_13, window_bounds = array<i64: 1, 32>}, {pipeline_mode = #tpu.pipeline_mode<synchronous>, transform_indices = @transform_14, window_bounds = array<i64: 1, 32>}, {pipeline_mode = #tpu.pipeline_mode<synchronous>, transform_indices = @transform_15, window_bounds = array<i64: 1, 32>}, {pipeline_mode = #tpu.pipeline_mode<synchronous>, transform_indices = @transform_16, window_bounds = array<i64: 32, 64>}, {pipeline_mode = #tpu.pipeline_mode<synchronous>, transform_indices = @transform_17, window_bounds = array<i64: 1, 64>}, {pipeline_mode = #tpu.pipeline_mode<synchronous>, transform_indices = @transform_18, window_bounds = array<i64: 64, 32>}, {pipeline_mode = #tpu.pipeline_mode<synchronous>, transform_indices = @transform_19, window_bounds = array<i64: 1, 32>}, {pipeline_mode = #tpu.pipeline_mode<synchronous>, transform_indices = @transform_20, window_bounds = array<i64: 1, 32>}, {pipeline_mode = #tpu.pipeline_mode<synchronous>, transform_indices = @transform_21, window_bounds = array<i64: 1, 32>}, {transform_indices = @transform_22, window_bounds = array<i64: 1, 6, 32>}]} {
    %c0 = arith.constant 0 : index
    %c0_0 = arith.constant 0 : index
    %c0_1 = arith.constant 0 : index
    %0 = vector.load %arg1[%c0, %c0_0, %c0_1] : memref<1x6x32xf32, #tpu.memory_space<vmem>>, vector<1x6x32xf32>
    %1 = vector.shape_cast %0 : vector<1x6x32xf32> to vector<6x32xf32>
    %c0_2 = arith.constant 0 : index
    %c0_3 = arith.constant 0 : index
    %c0_4 = arith.constant 0 : index
    %2 = vector.load %arg2[%c0_2, %c0_3, %c0_4] : memref<1x8x32xf32, #tpu.memory_space<vmem>>, vector<1x8x32xf32>
    %3 = vector.shape_cast %2 : vector<1x8x32xf32> to vector<8x32xf32>
    %c0_5 = arith.constant 0 : index
    %c0_6 = arith.constant 0 : index
    %4 = vector.load %arg3[%c0_5, %c0_6] : memref<32x96xbf16, #tpu.memory_space<vmem>>, vector<32x96xbf16>
    %c0_7 = arith.constant 0 : index
    %c0_8 = arith.constant 0 : index
    %5 = vector.load %arg4[%c0_7, %c0_8] : memref<1x96xf32, #tpu.memory_space<vmem>>, vector<1x96xf32>
    %6 = arith.truncf %1 : vector<6x32xf32> to vector<6x32xbf16>
    %cst = arith.constant dense<0.000000e+00> : vector<6x96xf32>
    %7 = tpu.matmul %6, %4, %cst {dimension_numbers = #tpu.dot_dimension_numbers<[1], [0], [0], [1], [0, 0, 1, 1], [], []>} : vector<6x32xbf16>, vector<32x96xbf16>, vector<6x96xf32> -> vector<6x96xf32>
    %8 = vector.broadcast %5 : vector<1x96xf32> to vector<6x96xf32>
    %9 = arith.addf %7, %8 : vector<6x96xf32>
    %10 = vector.extract_strided_slice %9 {offsets = [0, 0], sizes = [6, 32], strides = [1, 1]} : vector<6x96xf32> to vector<6x32xf32>
    %11 = vector.extract_strided_slice %9 {offsets = [0, 32], sizes = [6, 32], strides = [1, 1]} : vector<6x96xf32> to vector<6x32xf32>
    %12 = vector.extract_strided_slice %9 {offsets = [0, 64], sizes = [6, 32], strides = [1, 1]} : vector<6x96xf32> to vector<6x32xf32>
    %13 = tpu.iota {dimensions = array<i32: 0>} : vector<6x6xi32>
    %14 = tpu.iota {dimensions = array<i32: 1>} : vector<6x6xi32>
    %15 = arith.cmpi sge, %13, %14 : vector<6x6xi32>
    %16 = vector.extract_strided_slice %10 {offsets = [0, 0], sizes = [6, 8], strides = [1, 1]} : vector<6x32xf32> to vector<6x8xf32>
    %cst_9 = arith.constant 0.353553385 : f32
    %17 = vector.broadcast %cst_9 : f32 to vector<6x8xf32>
    %18 = arith.mulf %16, %17 : vector<6x8xf32>
    %19 = arith.truncf %18 : vector<6x8xf32> to vector<6x8xbf16>
    %20 = vector.extract_strided_slice %11 {offsets = [0, 0], sizes = [6, 8], strides = [1, 1]} : vector<6x32xf32> to vector<6x8xf32>
    %21 = arith.truncf %20 : vector<6x8xf32> to vector<6x8xbf16>
    %22 = vector.extract_strided_slice %12 {offsets = [0, 0], sizes = [6, 8], strides = [1, 1]} : vector<6x32xf32> to vector<6x8xf32>
    %23 = arith.truncf %22 : vector<6x8xf32> to vector<6x8xbf16>
    %cst_10 = arith.constant dense<0.000000e+00> : vector<6x6xf32>
    %24 = tpu.matmul %19, %21, %cst_10 {dimension_numbers = #tpu.dot_dimension_numbers<[1], [1], [0], [0], [0, 0, 1, 0], [], []>} : vector<6x8xbf16>, vector<6x8xbf16>, vector<6x6xf32> -> vector<6x6xf32>
    %cst_11 = arith.constant -1.000000e+30 : f32
    %25 = vector.broadcast %cst_11 : f32 to vector<6x6xf32>
    %26 = arith.select %15, %24, %25 : vector<6x6xi1>, vector<6x6xf32>
    %cst_12 = arith.constant dense<0xFF800000> : vector<6xf32>
    %27 = vector.multi_reduction <maximumf>, %26, %cst_12 [1] : vector<6x6xf32> to vector<6xf32>
    %28 = vector.shape_cast %27 : vector<6xf32> to vector<6x1xf32>
    %29 = vector.broadcast %28 : vector<6x1xf32> to vector<6x6xf32>
    %30 = arith.subf %26, %29 : vector<6x6xf32>
    %31 = math.exp %30 : vector<6x6xf32>
    %cst_13 = arith.constant dense<0.000000e+00> : vector<6xf32>
    %32 = vector.multi_reduction <add>, %31, %cst_13 [1] : vector<6x6xf32> to vector<6xf32>
    %33 = vector.shape_cast %32 : vector<6xf32> to vector<6x1xf32>
    %34 = tpu.reciprocal %33 {approx = true} : vector<6x1xf32> -> vector<6x1xf32>
    %35 = vector.broadcast %34 : vector<6x1xf32> to vector<6x6xf32>
    %36 = arith.mulf %31, %35 : vector<6x6xf32>
    %37 = arith.truncf %36 : vector<6x6xf32> to vector<6x6xbf16>
    %cst_14 = arith.constant dense<0.000000e+00> : vector<6x8xf32>
    %38 = tpu.matmul %37, %23, %cst_14 {dimension_numbers = #tpu.dot_dimension_numbers<[1], [0], [0], [1], [0, 0, 1, 1], [], []>} : vector<6x6xbf16>, vector<6x8xbf16>, vector<6x8xf32> -> vector<6x8xf32>
    %39 = vector.extract_strided_slice %10 {offsets = [0, 8], sizes = [6, 8], strides = [1, 1]} : vector<6x32xf32> to vector<6x8xf32>
    %cst_15 = arith.constant 0.353553385 : f32
    %40 = vector.broadcast %cst_15 : f32 to vector<6x8xf32>
    %41 = arith.mulf %39, %40 : vector<6x8xf32>
    %42 = arith.truncf %41 : vector<6x8xf32> to vector<6x8xbf16>
    %43 = vector.extract_strided_slice %11 {offsets = [0, 8], sizes = [6, 8], strides = [1, 1]} : vector<6x32xf32> to vector<6x8xf32>
    %44 = arith.truncf %43 : vector<6x8xf32> to vector<6x8xbf16>
    %45 = vector.extract_strided_slice %12 {offsets = [0, 8], sizes = [6, 8], strides = [1, 1]} : vector<6x32xf32> to vector<6x8xf32>
    %46 = arith.truncf %45 : vector<6x8xf32> to vector<6x8xbf16>
    %cst_16 = arith.constant dense<0.000000e+00> : vector<6x6xf32>
    %47 = tpu.matmul %42, %44, %cst_16 {dimension_numbers = #tpu.dot_dimension_numbers<[1], [1], [0], [0], [0, 0, 1, 0], [], []>} : vector<6x8xbf16>, vector<6x8xbf16>, vector<6x6xf32> -> vector<6x6xf32>
    %cst_17 = arith.constant -1.000000e+30 : f32
    %48 = vector.broadcast %cst_17 : f32 to vector<6x6xf32>
    %49 = arith.select %15, %47, %48 : vector<6x6xi1>, vector<6x6xf32>
    %cst_18 = arith.constant dense<0xFF800000> : vector<6xf32>
    %50 = vector.multi_reduction <maximumf>, %49, %cst_18 [1] : vector<6x6xf32> to vector<6xf32>
    %51 = vector.shape_cast %50 : vector<6xf32> to vector<6x1xf32>
    %52 = vector.broadcast %51 : vector<6x1xf32> to vector<6x6xf32>
    %53 = arith.subf %49, %52 : vector<6x6xf32>
    %54 = math.exp %53 : vector<6x6xf32>
    %cst_19 = arith.constant dense<0.000000e+00> : vector<6xf32>
    %55 = vector.multi_reduction <add>, %54, %cst_19 [1] : vector<6x6xf32> to vector<6xf32>
    %56 = vector.shape_cast %55 : vector<6xf32> to vector<6x1xf32>
    %57 = tpu.reciprocal %56 {approx = true} : vector<6x1xf32> -> vector<6x1xf32>
    %58 = vector.broadcast %57 : vector<6x1xf32> to vector<6x6xf32>
    %59 = arith.mulf %54, %58 : vector<6x6xf32>
    %60 = arith.truncf %59 : vector<6x6xf32> to vector<6x6xbf16>
    %cst_20 = arith.constant dense<0.000000e+00> : vector<6x8xf32>
    %61 = tpu.matmul %60, %46, %cst_20 {dimension_numbers = #tpu.dot_dimension_numbers<[1], [0], [0], [1], [0, 0, 1, 1], [], []>} : vector<6x6xbf16>, vector<6x8xbf16>, vector<6x8xf32> -> vector<6x8xf32>
    %62 = vector.extract_strided_slice %10 {offsets = [0, 16], sizes = [6, 8], strides = [1, 1]} : vector<6x32xf32> to vector<6x8xf32>
    %cst_21 = arith.constant 0.353553385 : f32
    %63 = vector.broadcast %cst_21 : f32 to vector<6x8xf32>
    %64 = arith.mulf %62, %63 : vector<6x8xf32>
    %65 = arith.truncf %64 : vector<6x8xf32> to vector<6x8xbf16>
    %66 = vector.extract_strided_slice %11 {offsets = [0, 16], sizes = [6, 8], strides = [1, 1]} : vector<6x32xf32> to vector<6x8xf32>
    %67 = arith.truncf %66 : vector<6x8xf32> to vector<6x8xbf16>
    %68 = vector.extract_strided_slice %12 {offsets = [0, 16], sizes = [6, 8], strides = [1, 1]} : vector<6x32xf32> to vector<6x8xf32>
    %69 = arith.truncf %68 : vector<6x8xf32> to vector<6x8xbf16>
    %cst_22 = arith.constant dense<0.000000e+00> : vector<6x6xf32>
    %70 = tpu.matmul %65, %67, %cst_22 {dimension_numbers = #tpu.dot_dimension_numbers<[1], [1], [0], [0], [0, 0, 1, 0], [], []>} : vector<6x8xbf16>, vector<6x8xbf16>, vector<6x6xf32> -> vector<6x6xf32>
    %cst_23 = arith.constant -1.000000e+30 : f32
    %71 = vector.broadcast %cst_23 : f32 to vector<6x6xf32>
    %72 = arith.select %15, %70, %71 : vector<6x6xi1>, vector<6x6xf32>
    %cst_24 = arith.constant dense<0xFF800000> : vector<6xf32>
    %73 = vector.multi_reduction <maximumf>, %72, %cst_24 [1] : vector<6x6xf32> to vector<6xf32>
    %74 = vector.shape_cast %73 : vector<6xf32> to vector<6x1xf32>
    %75 = vector.broadcast %74 : vector<6x1xf32> to vector<6x6xf32>
    %76 = arith.subf %72, %75 : vector<6x6xf32>
    %77 = math.exp %76 : vector<6x6xf32>
    %cst_25 = arith.constant dense<0.000000e+00> : vector<6xf32>
    %78 = vector.multi_reduction <add>, %77, %cst_25 [1] : vector<6x6xf32> to vector<6xf32>
    %79 = vector.shape_cast %78 : vector<6xf32> to vector<6x1xf32>
    %80 = tpu.reciprocal %79 {approx = true} : vector<6x1xf32> -> vector<6x1xf32>
    %81 = vector.broadcast %80 : vector<6x1xf32> to vector<6x6xf32>
    %82 = arith.mulf %77, %81 : vector<6x6xf32>
    %83 = arith.truncf %82 : vector<6x6xf32> to vector<6x6xbf16>
    %cst_26 = arith.constant dense<0.000000e+00> : vector<6x8xf32>
    %84 = tpu.matmul %83, %69, %cst_26 {dimension_numbers = #tpu.dot_dimension_numbers<[1], [0], [0], [1], [0, 0, 1, 1], [], []>} : vector<6x6xbf16>, vector<6x8xbf16>, vector<6x8xf32> -> vector<6x8xf32>
    %85 = vector.extract_strided_slice %10 {offsets = [0, 24], sizes = [6, 8], strides = [1, 1]} : vector<6x32xf32> to vector<6x8xf32>
    %cst_27 = arith.constant 0.353553385 : f32
    %86 = vector.broadcast %cst_27 : f32 to vector<6x8xf32>
    %87 = arith.mulf %85, %86 : vector<6x8xf32>
    %88 = arith.truncf %87 : vector<6x8xf32> to vector<6x8xbf16>
    %89 = vector.extract_strided_slice %11 {offsets = [0, 24], sizes = [6, 8], strides = [1, 1]} : vector<6x32xf32> to vector<6x8xf32>
    %90 = arith.truncf %89 : vector<6x8xf32> to vector<6x8xbf16>
    %91 = vector.extract_strided_slice %12 {offsets = [0, 24], sizes = [6, 8], strides = [1, 1]} : vector<6x32xf32> to vector<6x8xf32>
    %92 = arith.truncf %91 : vector<6x8xf32> to vector<6x8xbf16>
    %cst_28 = arith.constant dense<0.000000e+00> : vector<6x6xf32>
    %93 = tpu.matmul %88, %90, %cst_28 {dimension_numbers = #tpu.dot_dimension_numbers<[1], [1], [0], [0], [0, 0, 1, 0], [], []>} : vector<6x8xbf16>, vector<6x8xbf16>, vector<6x6xf32> -> vector<6x6xf32>
    %cst_29 = arith.constant -1.000000e+30 : f32
    %94 = vector.broadcast %cst_29 : f32 to vector<6x6xf32>
    %95 = arith.select %15, %93, %94 : vector<6x6xi1>, vector<6x6xf32>
    %cst_30 = arith.constant dense<0xFF800000> : vector<6xf32>
    %96 = vector.multi_reduction <maximumf>, %95, %cst_30 [1] : vector<6x6xf32> to vector<6xf32>
    %97 = vector.shape_cast %96 : vector<6xf32> to vector<6x1xf32>
    %98 = vector.broadcast %97 : vector<6x1xf32> to vector<6x6xf32>
    %99 = arith.subf %95, %98 : vector<6x6xf32>
    %100 = math.exp %99 : vector<6x6xf32>
    %cst_31 = arith.constant dense<0.000000e+00> : vector<6xf32>
    %101 = vector.multi_reduction <add>, %100, %cst_31 [1] : vector<6x6xf32> to vector<6xf32>
    %102 = vector.shape_cast %101 : vector<6xf32> to vector<6x1xf32>
    %103 = tpu.reciprocal %102 {approx = true} : vector<6x1xf32> -> vector<6x1xf32>
    %104 = vector.broadcast %103 : vector<6x1xf32> to vector<6x6xf32>
    %105 = arith.mulf %100, %104 : vector<6x6xf32>
    %106 = arith.truncf %105 : vector<6x6xf32> to vector<6x6xbf16>
    %cst_32 = arith.constant dense<0.000000e+00> : vector<6x8xf32>
    %107 = tpu.matmul %106, %92, %cst_32 {dimension_numbers = #tpu.dot_dimension_numbers<[1], [0], [0], [1], [0, 0, 1, 1], [], []>} : vector<6x6xbf16>, vector<6x8xbf16>, vector<6x8xf32> -> vector<6x8xf32>
    %108 = tpu.concatenate %38, %61, %84, %107 in 1 : vector<6x8xf32>, vector<6x8xf32>, vector<6x8xf32>, vector<6x8xf32> -> vector<6x32xf32>
    %c0_33 = arith.constant 0 : index
    %c0_34 = arith.constant 0 : index
    %109 = vector.load %arg5[%c0_33, %c0_34] : memref<32x32xbf16, #tpu.memory_space<vmem>>, vector<32x32xbf16>
    %c0_35 = arith.constant 0 : index
    %c0_36 = arith.constant 0 : index
    %110 = vector.load %arg6[%c0_35, %c0_36] : memref<1x32xf32, #tpu.memory_space<vmem>>, vector<1x32xf32>
    %111 = arith.truncf %108 : vector<6x32xf32> to vector<6x32xbf16>
    %cst_37 = arith.constant dense<0.000000e+00> : vector<6x32xf32>
    %112 = tpu.matmul %111, %109, %cst_37 {dimension_numbers = #tpu.dot_dimension_numbers<[1], [0], [0], [1], [0, 0, 1, 1], [], []>} : vector<6x32xbf16>, vector<32x32xbf16>, vector<6x32xf32> -> vector<6x32xf32>
    %113 = vector.broadcast %110 : vector<1x32xf32> to vector<6x32xf32>
    %114 = arith.addf %112, %113 : vector<6x32xf32>
    %115 = arith.addf %1, %114 : vector<6x32xf32>
    %c0_38 = arith.constant 0 : index
    %c0_39 = arith.constant 0 : index
    %116 = vector.load %arg7[%c0_38, %c0_39] : memref<1x32xf32, #tpu.memory_space<vmem>>, vector<1x32xf32>
    %c0_40 = arith.constant 0 : index
    %c0_41 = arith.constant 0 : index
    %117 = vector.load %arg8[%c0_40, %c0_41] : memref<1x32xf32, #tpu.memory_space<vmem>>, vector<1x32xf32>
    %cst_42 = arith.constant dense<0.000000e+00> : vector<6xf32>
    %118 = vector.multi_reduction <add>, %115, %cst_42 [1] : vector<6x32xf32> to vector<6xf32>
    %119 = vector.shape_cast %118 : vector<6xf32> to vector<6x1xf32>
    %cst_43 = arith.constant 3.200000e+01 : f32
    %120 = vector.broadcast %cst_43 : f32 to vector<6x1xf32>
    %121 = arith.divf %119, %120 : vector<6x1xf32>
    %122 = vector.broadcast %121 : vector<6x1xf32> to vector<6x32xf32>
    %123 = arith.subf %115, %122 : vector<6x32xf32>
    %124 = arith.mulf %123, %123 : vector<6x32xf32>
    %cst_44 = arith.constant dense<0.000000e+00> : vector<6xf32>
    %125 = vector.multi_reduction <add>, %124, %cst_44 [1] : vector<6x32xf32> to vector<6xf32>
    %126 = vector.shape_cast %125 : vector<6xf32> to vector<6x1xf32>
    %cst_45 = arith.constant 3.200000e+01 : f32
    %127 = vector.broadcast %cst_45 : f32 to vector<6x1xf32>
    %128 = arith.divf %126, %127 : vector<6x1xf32>
    %129 = vector.broadcast %121 : vector<6x1xf32> to vector<6x32xf32>
    %130 = arith.subf %115, %129 : vector<6x32xf32>
    %cst_46 = arith.constant 9.99999974E-6 : f32
    %131 = vector.broadcast %cst_46 : f32 to vector<6x1xf32>
    %132 = arith.addf %128, %131 : vector<6x1xf32>
    %133 = math.rsqrt %132 : vector<6x1xf32>
    %134 = vector.broadcast %133 : vector<6x1xf32> to vector<6x32xf32>
    %135 = arith.mulf %130, %134 : vector<6x32xf32>
    %136 = vector.broadcast %116 : vector<1x32xf32> to vector<6x32xf32>
    %137 = arith.mulf %135, %136 : vector<6x32xf32>
    %138 = vector.broadcast %117 : vector<1x32xf32> to vector<6x32xf32>
    %139 = arith.addf %137, %138 : vector<6x32xf32>
    %c0_47 = arith.constant 0 : index
    %c0_48 = arith.constant 0 : index
    %140 = vector.load %arg9[%c0_47, %c0_48] : memref<32x32xbf16, #tpu.memory_space<vmem>>, vector<32x32xbf16>
    %c0_49 = arith.constant 0 : index
    %c0_50 = arith.constant 0 : index
    %141 = vector.load %arg10[%c0_49, %c0_50] : memref<1x32xf32, #tpu.memory_space<vmem>>, vector<1x32xf32>
    %142 = arith.truncf %139 : vector<6x32xf32> to vector<6x32xbf16>
    %cst_51 = arith.constant dense<0.000000e+00> : vector<6x32xf32>
    %143 = tpu.matmul %142, %140, %cst_51 {dimension_numbers = #tpu.dot_dimension_numbers<[1], [0], [0], [1], [0, 0, 1, 1], [], []>} : vector<6x32xbf16>, vector<32x32xbf16>, vector<6x32xf32> -> vector<6x32xf32>
    %144 = vector.broadcast %141 : vector<1x32xf32> to vector<6x32xf32>
    %145 = arith.addf %143, %144 : vector<6x32xf32>
    %c0_52 = arith.constant 0 : index
    %c0_53 = arith.constant 0 : index
    %146 = vector.load %arg11[%c0_52, %c0_53] : memref<32x64xbf16, #tpu.memory_space<vmem>>, vector<32x64xbf16>
    %c0_54 = arith.constant 0 : index
    %c0_55 = arith.constant 0 : index
    %147 = vector.load %arg12[%c0_54, %c0_55] : memref<1x64xf32, #tpu.memory_space<vmem>>, vector<1x64xf32>
    %148 = arith.truncf %3 : vector<8x32xf32> to vector<8x32xbf16>
    %cst_56 = arith.constant dense<0.000000e+00> : vector<8x64xf32>
    %149 = tpu.matmul %148, %146, %cst_56 {dimension_numbers = #tpu.dot_dimension_numbers<[1], [0], [0], [1], [0, 0, 1, 1], [], []>} : vector<8x32xbf16>, vector<32x64xbf16>, vector<8x64xf32> -> vector<8x64xf32>
    %150 = vector.broadcast %147 : vector<1x64xf32> to vector<8x64xf32>
    %151 = arith.addf %149, %150 : vector<8x64xf32>
    %152 = vector.extract_strided_slice %151 {offsets = [0, 0], sizes = [8, 32], strides = [1, 1]} : vector<8x64xf32> to vector<8x32xf32>
    %153 = vector.extract_strided_slice %151 {offsets = [0, 32], sizes = [8, 32], strides = [1, 1]} : vector<8x64xf32> to vector<8x32xf32>
    %154 = vector.extract_strided_slice %145 {offsets = [0, 0], sizes = [6, 8], strides = [1, 1]} : vector<6x32xf32> to vector<6x8xf32>
    %cst_57 = arith.constant 0.353553385 : f32
    %155 = vector.broadcast %cst_57 : f32 to vector<6x8xf32>
    %156 = arith.mulf %154, %155 : vector<6x8xf32>
    %157 = arith.truncf %156 : vector<6x8xf32> to vector<6x8xbf16>
    %158 = vector.extract_strided_slice %152 {offsets = [0, 0], sizes = [8, 8], strides = [1, 1]} : vector<8x32xf32> to vector<8x8xf32>
    %159 = arith.truncf %158 : vector<8x8xf32> to vector<8x8xbf16>
    %160 = vector.extract_strided_slice %153 {offsets = [0, 0], sizes = [8, 8], strides = [1, 1]} : vector<8x32xf32> to vector<8x8xf32>
    %161 = arith.truncf %160 : vector<8x8xf32> to vector<8x8xbf16>
    %cst_58 = arith.constant dense<0.000000e+00> : vector<6x8xf32>
    %162 = tpu.matmul %157, %159, %cst_58 {dimension_numbers = #tpu.dot_dimension_numbers<[1], [1], [0], [0], [0, 0, 1, 0], [], []>} : vector<6x8xbf16>, vector<8x8xbf16>, vector<6x8xf32> -> vector<6x8xf32>
    %cst_59 = arith.constant dense<0xFF800000> : vector<6xf32>
    %163 = vector.multi_reduction <maximumf>, %162, %cst_59 [1] : vector<6x8xf32> to vector<6xf32>
    %164 = vector.shape_cast %163 : vector<6xf32> to vector<6x1xf32>
    %165 = vector.broadcast %164 : vector<6x1xf32> to vector<6x8xf32>
    %166 = arith.subf %162, %165 : vector<6x8xf32>
    %167 = math.exp %166 : vector<6x8xf32>
    %cst_60 = arith.constant dense<0.000000e+00> : vector<6xf32>
    %168 = vector.multi_reduction <add>, %167, %cst_60 [1] : vector<6x8xf32> to vector<6xf32>
    %169 = vector.shape_cast %168 : vector<6xf32> to vector<6x1xf32>
    %170 = tpu.reciprocal %169 {approx = true} : vector<6x1xf32> -> vector<6x1xf32>
    %171 = vector.broadcast %170 : vector<6x1xf32> to vector<6x8xf32>
    %172 = arith.mulf %167, %171 : vector<6x8xf32>
    %173 = arith.truncf %172 : vector<6x8xf32> to vector<6x8xbf16>
    %cst_61 = arith.constant dense<0.000000e+00> : vector<6x8xf32>
    %174 = tpu.matmul %173, %161, %cst_61 {dimension_numbers = #tpu.dot_dimension_numbers<[1], [0], [0], [1], [0, 0, 1, 1], [], []>} : vector<6x8xbf16>, vector<8x8xbf16>, vector<6x8xf32> -> vector<6x8xf32>
    %175 = vector.extract_strided_slice %145 {offsets = [0, 8], sizes = [6, 8], strides = [1, 1]} : vector<6x32xf32> to vector<6x8xf32>
    %cst_62 = arith.constant 0.353553385 : f32
    %176 = vector.broadcast %cst_62 : f32 to vector<6x8xf32>
    %177 = arith.mulf %175, %176 : vector<6x8xf32>
    %178 = arith.truncf %177 : vector<6x8xf32> to vector<6x8xbf16>
    %179 = vector.extract_strided_slice %152 {offsets = [0, 8], sizes = [8, 8], strides = [1, 1]} : vector<8x32xf32> to vector<8x8xf32>
    %180 = arith.truncf %179 : vector<8x8xf32> to vector<8x8xbf16>
    %181 = vector.extract_strided_slice %153 {offsets = [0, 8], sizes = [8, 8], strides = [1, 1]} : vector<8x32xf32> to vector<8x8xf32>
    %182 = arith.truncf %181 : vector<8x8xf32> to vector<8x8xbf16>
    %cst_63 = arith.constant dense<0.000000e+00> : vector<6x8xf32>
    %183 = tpu.matmul %178, %180, %cst_63 {dimension_numbers = #tpu.dot_dimension_numbers<[1], [1], [0], [0], [0, 0, 1, 0], [], []>} : vector<6x8xbf16>, vector<8x8xbf16>, vector<6x8xf32> -> vector<6x8xf32>
    %cst_64 = arith.constant dense<0xFF800000> : vector<6xf32>
    %184 = vector.multi_reduction <maximumf>, %183, %cst_64 [1] : vector<6x8xf32> to vector<6xf32>
    %185 = vector.shape_cast %184 : vector<6xf32> to vector<6x1xf32>
    %186 = vector.broadcast %185 : vector<6x1xf32> to vector<6x8xf32>
    %187 = arith.subf %183, %186 : vector<6x8xf32>
    %188 = math.exp %187 : vector<6x8xf32>
    %cst_65 = arith.constant dense<0.000000e+00> : vector<6xf32>
    %189 = vector.multi_reduction <add>, %188, %cst_65 [1] : vector<6x8xf32> to vector<6xf32>
    %190 = vector.shape_cast %189 : vector<6xf32> to vector<6x1xf32>
    %191 = tpu.reciprocal %190 {approx = true} : vector<6x1xf32> -> vector<6x1xf32>
    %192 = vector.broadcast %191 : vector<6x1xf32> to vector<6x8xf32>
    %193 = arith.mulf %188, %192 : vector<6x8xf32>
    %194 = arith.truncf %193 : vector<6x8xf32> to vector<6x8xbf16>
    %cst_66 = arith.constant dense<0.000000e+00> : vector<6x8xf32>
    %195 = tpu.matmul %194, %182, %cst_66 {dimension_numbers = #tpu.dot_dimension_numbers<[1], [0], [0], [1], [0, 0, 1, 1], [], []>} : vector<6x8xbf16>, vector<8x8xbf16>, vector<6x8xf32> -> vector<6x8xf32>
    %196 = vector.extract_strided_slice %145 {offsets = [0, 16], sizes = [6, 8], strides = [1, 1]} : vector<6x32xf32> to vector<6x8xf32>
    %cst_67 = arith.constant 0.353553385 : f32
    %197 = vector.broadcast %cst_67 : f32 to vector<6x8xf32>
    %198 = arith.mulf %196, %197 : vector<6x8xf32>
    %199 = arith.truncf %198 : vector<6x8xf32> to vector<6x8xbf16>
    %200 = vector.extract_strided_slice %152 {offsets = [0, 16], sizes = [8, 8], strides = [1, 1]} : vector<8x32xf32> to vector<8x8xf32>
    %201 = arith.truncf %200 : vector<8x8xf32> to vector<8x8xbf16>
    %202 = vector.extract_strided_slice %153 {offsets = [0, 16], sizes = [8, 8], strides = [1, 1]} : vector<8x32xf32> to vector<8x8xf32>
    %203 = arith.truncf %202 : vector<8x8xf32> to vector<8x8xbf16>
    %cst_68 = arith.constant dense<0.000000e+00> : vector<6x8xf32>
    %204 = tpu.matmul %199, %201, %cst_68 {dimension_numbers = #tpu.dot_dimension_numbers<[1], [1], [0], [0], [0, 0, 1, 0], [], []>} : vector<6x8xbf16>, vector<8x8xbf16>, vector<6x8xf32> -> vector<6x8xf32>
    %cst_69 = arith.constant dense<0xFF800000> : vector<6xf32>
    %205 = vector.multi_reduction <maximumf>, %204, %cst_69 [1] : vector<6x8xf32> to vector<6xf32>
    %206 = vector.shape_cast %205 : vector<6xf32> to vector<6x1xf32>
    %207 = vector.broadcast %206 : vector<6x1xf32> to vector<6x8xf32>
    %208 = arith.subf %204, %207 : vector<6x8xf32>
    %209 = math.exp %208 : vector<6x8xf32>
    %cst_70 = arith.constant dense<0.000000e+00> : vector<6xf32>
    %210 = vector.multi_reduction <add>, %209, %cst_70 [1] : vector<6x8xf32> to vector<6xf32>
    %211 = vector.shape_cast %210 : vector<6xf32> to vector<6x1xf32>
    %212 = tpu.reciprocal %211 {approx = true} : vector<6x1xf32> -> vector<6x1xf32>
    %213 = vector.broadcast %212 : vector<6x1xf32> to vector<6x8xf32>
    %214 = arith.mulf %209, %213 : vector<6x8xf32>
    %215 = arith.truncf %214 : vector<6x8xf32> to vector<6x8xbf16>
    %cst_71 = arith.constant dense<0.000000e+00> : vector<6x8xf32>
    %216 = tpu.matmul %215, %203, %cst_71 {dimension_numbers = #tpu.dot_dimension_numbers<[1], [0], [0], [1], [0, 0, 1, 1], [], []>} : vector<6x8xbf16>, vector<8x8xbf16>, vector<6x8xf32> -> vector<6x8xf32>
    %217 = vector.extract_strided_slice %145 {offsets = [0, 24], sizes = [6, 8], strides = [1, 1]} : vector<6x32xf32> to vector<6x8xf32>
    %cst_72 = arith.constant 0.353553385 : f32
    %218 = vector.broadcast %cst_72 : f32 to vector<6x8xf32>
    %219 = arith.mulf %217, %218 : vector<6x8xf32>
    %220 = arith.truncf %219 : vector<6x8xf32> to vector<6x8xbf16>
    %221 = vector.extract_strided_slice %152 {offsets = [0, 24], sizes = [8, 8], strides = [1, 1]} : vector<8x32xf32> to vector<8x8xf32>
    %222 = arith.truncf %221 : vector<8x8xf32> to vector<8x8xbf16>
    %223 = vector.extract_strided_slice %153 {offsets = [0, 24], sizes = [8, 8], strides = [1, 1]} : vector<8x32xf32> to vector<8x8xf32>
    %224 = arith.truncf %223 : vector<8x8xf32> to vector<8x8xbf16>
    %cst_73 = arith.constant dense<0.000000e+00> : vector<6x8xf32>
    %225 = tpu.matmul %220, %222, %cst_73 {dimension_numbers = #tpu.dot_dimension_numbers<[1], [1], [0], [0], [0, 0, 1, 0], [], []>} : vector<6x8xbf16>, vector<8x8xbf16>, vector<6x8xf32> -> vector<6x8xf32>
    %cst_74 = arith.constant dense<0xFF800000> : vector<6xf32>
    %226 = vector.multi_reduction <maximumf>, %225, %cst_74 [1] : vector<6x8xf32> to vector<6xf32>
    %227 = vector.shape_cast %226 : vector<6xf32> to vector<6x1xf32>
    %228 = vector.broadcast %227 : vector<6x1xf32> to vector<6x8xf32>
    %229 = arith.subf %225, %228 : vector<6x8xf32>
    %230 = math.exp %229 : vector<6x8xf32>
    %cst_75 = arith.constant dense<0.000000e+00> : vector<6xf32>
    %231 = vector.multi_reduction <add>, %230, %cst_75 [1] : vector<6x8xf32> to vector<6xf32>
    %232 = vector.shape_cast %231 : vector<6xf32> to vector<6x1xf32>
    %233 = tpu.reciprocal %232 {approx = true} : vector<6x1xf32> -> vector<6x1xf32>
    %234 = vector.broadcast %233 : vector<6x1xf32> to vector<6x8xf32>
    %235 = arith.mulf %230, %234 : vector<6x8xf32>
    %236 = arith.truncf %235 : vector<6x8xf32> to vector<6x8xbf16>
    %cst_76 = arith.constant dense<0.000000e+00> : vector<6x8xf32>
    %237 = tpu.matmul %236, %224, %cst_76 {dimension_numbers = #tpu.dot_dimension_numbers<[1], [0], [0], [1], [0, 0, 1, 1], [], []>} : vector<6x8xbf16>, vector<8x8xbf16>, vector<6x8xf32> -> vector<6x8xf32>
    %238 = tpu.concatenate %174, %195, %216, %237 in 1 : vector<6x8xf32>, vector<6x8xf32>, vector<6x8xf32>, vector<6x8xf32> -> vector<6x32xf32>
    %c0_77 = arith.constant 0 : index
    %c0_78 = arith.constant 0 : index
    %239 = vector.load %arg13[%c0_77, %c0_78] : memref<32x32xbf16, #tpu.memory_space<vmem>>, vector<32x32xbf16>
    %c0_79 = arith.constant 0 : index
    %c0_80 = arith.constant 0 : index
    %240 = vector.load %arg14[%c0_79, %c0_80] : memref<1x32xf32, #tpu.memory_space<vmem>>, vector<1x32xf32>
    %241 = arith.truncf %238 : vector<6x32xf32> to vector<6x32xbf16>
    %cst_81 = arith.constant dense<0.000000e+00> : vector<6x32xf32>
    %242 = tpu.matmul %241, %239, %cst_81 {dimension_numbers = #tpu.dot_dimension_numbers<[1], [0], [0], [1], [0, 0, 1, 1], [], []>} : vector<6x32xbf16>, vector<32x32xbf16>, vector<6x32xf32> -> vector<6x32xf32>
    %243 = vector.broadcast %240 : vector<1x32xf32> to vector<6x32xf32>
    %244 = arith.addf %242, %243 : vector<6x32xf32>
    %245 = arith.addf %139, %244 : vector<6x32xf32>
    %c0_82 = arith.constant 0 : index
    %c0_83 = arith.constant 0 : index
    %246 = vector.load %arg15[%c0_82, %c0_83] : memref<1x32xf32, #tpu.memory_space<vmem>>, vector<1x32xf32>
    %c0_84 = arith.constant 0 : index
    %c0_85 = arith.constant 0 : index
    %247 = vector.load %arg16[%c0_84, %c0_85] : memref<1x32xf32, #tpu.memory_space<vmem>>, vector<1x32xf32>
    %cst_86 = arith.constant dense<0.000000e+00> : vector<6xf32>
    %248 = vector.multi_reduction <add>, %245, %cst_86 [1] : vector<6x32xf32> to vector<6xf32>
    %249 = vector.shape_cast %248 : vector<6xf32> to vector<6x1xf32>
    %cst_87 = arith.constant 3.200000e+01 : f32
    %250 = vector.broadcast %cst_87 : f32 to vector<6x1xf32>
    %251 = arith.divf %249, %250 : vector<6x1xf32>
    %252 = vector.broadcast %251 : vector<6x1xf32> to vector<6x32xf32>
    %253 = arith.subf %245, %252 : vector<6x32xf32>
    %254 = arith.mulf %253, %253 : vector<6x32xf32>
    %cst_88 = arith.constant dense<0.000000e+00> : vector<6xf32>
    %255 = vector.multi_reduction <add>, %254, %cst_88 [1] : vector<6x32xf32> to vector<6xf32>
    %256 = vector.shape_cast %255 : vector<6xf32> to vector<6x1xf32>
    %cst_89 = arith.constant 3.200000e+01 : f32
    %257 = vector.broadcast %cst_89 : f32 to vector<6x1xf32>
    %258 = arith.divf %256, %257 : vector<6x1xf32>
    %259 = vector.broadcast %251 : vector<6x1xf32> to vector<6x32xf32>
    %260 = arith.subf %245, %259 : vector<6x32xf32>
    %cst_90 = arith.constant 9.99999974E-6 : f32
    %261 = vector.broadcast %cst_90 : f32 to vector<6x1xf32>
    %262 = arith.addf %258, %261 : vector<6x1xf32>
    %263 = math.rsqrt %262 : vector<6x1xf32>
    %264 = vector.broadcast %263 : vector<6x1xf32> to vector<6x32xf32>
    %265 = arith.mulf %260, %264 : vector<6x32xf32>
    %266 = vector.broadcast %246 : vector<1x32xf32> to vector<6x32xf32>
    %267 = arith.mulf %265, %266 : vector<6x32xf32>
    %268 = vector.broadcast %247 : vector<1x32xf32> to vector<6x32xf32>
    %269 = arith.addf %267, %268 : vector<6x32xf32>
    %c0_91 = arith.constant 0 : index
    %c0_92 = arith.constant 0 : index
    %270 = vector.load %arg17[%c0_91, %c0_92] : memref<32x64xbf16, #tpu.memory_space<vmem>>, vector<32x64xbf16>
    %c0_93 = arith.constant 0 : index
    %c0_94 = arith.constant 0 : index
    %271 = vector.load %arg18[%c0_93, %c0_94] : memref<1x64xf32, #tpu.memory_space<vmem>>, vector<1x64xf32>
    %272 = arith.truncf %269 : vector<6x32xf32> to vector<6x32xbf16>
    %cst_95 = arith.constant dense<0.000000e+00> : vector<6x64xf32>
    %273 = tpu.matmul %272, %270, %cst_95 {dimension_numbers = #tpu.dot_dimension_numbers<[1], [0], [0], [1], [0, 0, 1, 1], [], []>} : vector<6x32xbf16>, vector<32x64xbf16>, vector<6x64xf32> -> vector<6x64xf32>
    %274 = vector.broadcast %271 : vector<1x64xf32> to vector<6x64xf32>
    %275 = arith.addf %273, %274 : vector<6x64xf32>
    %cst_96 = arith.constant 0.000000e+00 : f32
    %276 = vector.broadcast %cst_96 : f32 to vector<6x64xf32>
    %277 = arith.maximumf %275, %276 : vector<6x64xf32>
    %c0_97 = arith.constant 0 : index
    %c0_98 = arith.constant 0 : index
    %278 = vector.load %arg19[%c0_97, %c0_98] : memref<64x32xbf16, #tpu.memory_space<vmem>>, vector<64x32xbf16>
    %c0_99 = arith.constant 0 : index
    %c0_100 = arith.constant 0 : index
    %279 = vector.load %arg20[%c0_99, %c0_100] : memref<1x32xf32, #tpu.memory_space<vmem>>, vector<1x32xf32>
    %280 = arith.truncf %277 : vector<6x64xf32> to vector<6x64xbf16>
    %cst_101 = arith.constant dense<0.000000e+00> : vector<6x32xf32>
    %281 = tpu.matmul %280, %278, %cst_101 {dimension_numbers = #tpu.dot_dimension_numbers<[1], [0], [0], [1], [0, 0, 1, 1], [], []>} : vector<6x64xbf16>, vector<64x32xbf16>, vector<6x32xf32> -> vector<6x32xf32>
    %282 = vector.broadcast %279 : vector<1x32xf32> to vector<6x32xf32>
    %283 = arith.addf %281, %282 : vector<6x32xf32>
    %284 = arith.addf %269, %283 : vector<6x32xf32>
    %c0_102 = arith.constant 0 : index
    %c0_103 = arith.constant 0 : index
    %285 = vector.load %arg21[%c0_102, %c0_103] : memref<1x32xf32, #tpu.memory_space<vmem>>, vector<1x32xf32>
    %c0_104 = arith.constant 0 : index
    %c0_105 = arith.constant 0 : index
    %286 = vector.load %arg22[%c0_104, %c0_105] : memref<1x32xf32, #tpu.memory_space<vmem>>, vector<1x32xf32>
    %cst_106 = arith.constant dense<0.000000e+00> : vector<6xf32>
    %287 = vector.multi_reduction <add>, %284, %cst_106 [1] : vector<6x32xf32> to vector<6xf32>
    %288 = vector.shape_cast %287 : vector<6xf32> to vector<6x1xf32>
    %cst_107 = arith.constant 3.200000e+01 : f32
    %289 = vector.broadcast %cst_107 : f32 to vector<6x1xf32>
    %290 = arith.divf %288, %289 : vector<6x1xf32>
    %291 = vector.broadcast %290 : vector<6x1xf32> to vector<6x32xf32>
    %292 = arith.subf %284, %291 : vector<6x32xf32>
    %293 = arith.mulf %292, %292 : vector<6x32xf32>
    %cst_108 = arith.constant dense<0.000000e+00> : vector<6xf32>
    %294 = vector.multi_reduction <add>, %293, %cst_108 [1] : vector<6x32xf32> to vector<6xf32>
    %295 = vector.shape_cast %294 : vector<6xf32> to vector<6x1xf32>
    %cst_109 = arith.constant 3.200000e+01 : f32
    %296 = vector.broadcast %cst_109 : f32 to vector<6x1xf32>
    %297 = arith.divf %295, %296 : vector<6x1xf32>
    %298 = vector.broadcast %290 : vector<6x1xf32> to vector<6x32xf32>
    %299 = arith.subf %284, %298 : vector<6x32xf32>
    %cst_110 = arith.constant 9.99999974E-6 : f32
    %300 = vector.broadcast %cst_110 : f32 to vector<6x1xf32>
    %301 = arith.addf %297, %300 : vector<6x1xf32>
    %302 = math.rsqrt %301 : vector<6x1xf32>
    %303 = vector.broadcast %302 : vector<6x1xf32> to vector<6x32xf32>
    %304 = arith.mulf %299, %303 : vector<6x32xf32>
    %305 = vector.broadcast %285 : vector<1x32xf32> to vector<6x32xf32>
    %306 = arith.mulf %304, %305 : vector<6x32xf32>
    %307 = vector.broadcast %286 : vector<1x32xf32> to vector<6x32xf32>
    %308 = arith.addf %306, %307 : vector<6x32xf32>
    %c0_111 = arith.constant 0 : index
    %c0_112 = arith.constant 0 : index
    %c0_113 = arith.constant 0 : index
    %309 = vector.load %arg23[%c0_111, %c0_112, %c0_113] : memref<1x6x32xf32, #tpu.memory_space<vmem>>, vector<1x6x32xf32>
    %310 = vector.shape_cast %309 : vector<1x6x32xf32> to vector<6x32xf32>
    %311 = vector.shape_cast %308 : vector<6x32xf32> to vector<1x6x32xf32>
    tpu.vector_store %arg23[%c0_111, %c0_112, %c0_113], %311 {strides = array<i32>} : memref<1x6x32xf32, #tpu.memory_space<vmem>>, vector<1x6x32xf32>,
    return
  }
  func.func @transform_0(%arg0: i32) -> (i32, i32, i32) {
    %c0_i32 = arith.constant 0 : i32
    %c0_i32_0 = arith.constant 0 : i32
    %c0_i32_1 = arith.constant 0 : i32
    return %arg0, %c0_i32, %c0_i32_0 : i32, i32, i32
  }
  func.func @transform_1(%arg0: i32) -> (i32, i32, i32) {
    %c0_i32 = arith.constant 0 : i32
    %c0_i32_0 = arith.constant 0 : i32
    %c0_i32_1 = arith.constant 0 : i32
    return %arg0, %c0_i32, %c0_i32_0 : i32, i32, i32
  }
  func.func @transform_2(%arg0: i32) -> (i32, i32) {
    %c0_i32 = arith.constant 0 : i32
    %c0_i32_0 = arith.constant 0 : i32
    %c0_i32_1 = arith.constant 0 : i32
    return %c0_i32, %c0_i32_0 : i32, i32
  }
  func.func @transform_3(%arg0: i32) -> (i32, i32) {
    %c0_i32 = arith.constant 0 : i32
    %c0_i32_0 = arith.constant 0 : i32
    %c0_i32_1 = arith.constant 0 : i32
    return %c0_i32, %c0_i32_0 : i32, i32
  }
  func.func @transform_4(%arg0: i32) -> (i32, i32) {
    %c0_i32 = arith.constant 0 : i32
    %c0_i32_0 = arith.constant 0 : i32
    %c0_i32_1 = arith.constant 0 : i32
    return %c0_i32, %c0_i32_0 : i32, i32
  }
  func.func @transform_5(%arg0: i32) -> (i32, i32) {
    %c0_i32 = arith.constant 0 : i32
    %c0_i32_0 = arith.constant 0 : i32
    %c0_i32_1 = arith.constant 0 : i32
    return %c0_i32, %c0_i32_0 : i32, i32
  }
  func.func @transform_6(%arg0: i32) -> (i32, i32) {
    %c0_i32 = arith.constant 0 : i32
    %c0_i32_0 = arith.constant 0 : i32
    %c0_i32_1 = arith.constant 0 : i32
    return %c0_i32, %c0_i32_0 : i32, i32
  }
  func.func @transform_7(%arg0: i32) -> (i32, i32) {
    %c0_i32 = arith.constant 0 : i32
    %c0_i32_0 = arith.constant 0 : i32
    %c0_i32_1 = arith.constant 0 : i32
    return %c0_i32, %c0_i32_0 : i32, i32
  }
  func.func @transform_8(%arg0: i32) -> (i32, i32) {
    %c0_i32 = arith.constant 0 : i32
    %c0_i32_0 = arith.constant 0 : i32
    %c0_i32_1 = arith.constant 0 : i32
    return %c0_i32, %c0_i32_0 : i32, i32
  }
  func.func @transform_9(%arg0: i32) -> (i32, i32) {
    %c0_i32 = arith.constant 0 : i32
    %c0_i32_0 = arith.constant 0 : i32
    %c0_i32_1 = arith.constant 0 : i32
    return %c0_i32, %c0_i32_0 : i32, i32
  }
  func.func @transform_10(%arg0: i32) -> (i32, i32) {
    %c0_i32 = arith.constant 0 : i32
    %c0_i32_0 = arith.constant 0 : i32
    %c0_i32_1 = arith.constant 0 : i32
    return %c0_i32, %c0_i32_0 : i32, i32
  }
  func.func @transform_11(%arg0: i32) -> (i32, i32) {
    %c0_i32 = arith.constant 0 : i32
    %c0_i32_0 = arith.constant 0 : i32
    %c0_i32_1 = arith.constant 0 : i32
    return %c0_i32, %c0_i32_0 : i32, i32
  }
  func.func @transform_12(%arg0: i32) -> (i32, i32) {
    %c0_i32 = arith.constant 0 : i32
    %c0_i32_0 = arith.constant 0 : i32
    %c0_i32_1 = arith.constant 0 : i32
    return %c0_i32, %c0_i32_0 : i32, i32
  }
  func.func @transform_13(%arg0: i32) -> (i32, i32) {
    %c0_i32 = arith.constant 0 : i32
    %c0_i32_0 = arith.constant 0 : i32
    %c0_i32_1 = arith.constant 0 : i32
    return %c0_i32, %c0_i32_0 : i32, i32
  }
  func.func @transform_14(%arg0: i32) -> (i32, i32) {
    %c0_i32 = arith.constant 0 : i32
    %c0_i32_0 = arith.constant 0 : i32
    %c0_i32_1 = arith.constant 0 : i32
    return %c0_i32, %c0_i32_0 : i32, i32
  }
  func.func @transform_15(%arg0: i32) -> (i32, i32) {
    %c0_i32 = arith.constant 0 : i32
    %c0_i32_0 = arith.constant 0 : i32
    %c0_i32_1 = arith.constant 0 : i32
    return %c0_i32, %c0_i32_0 : i32, i32
  }
  func.func @transform_16(%arg0: i32) -> (i32, i32) {
    %c0_i32 = arith.constant 0 : i32
    %c0_i32_0 = arith.constant 0 : i32
    %c0_i32_1 = arith.constant 0 : i32
    return %c0_i32, %c0_i32_0 : i32, i32
  }
  func.func @transform_17(%arg0: i32) -> (i32, i32) {
    %c0_i32 = arith.constant 0 : i32
    %c0_i32_0 = arith.constant 0 : i32
    %c0_i32_1 = arith.constant 0 : i32
    return %c0_i32, %c0_i32_0 : i32, i32
  }
  func.func @transform_18(%arg0: i32) -> (i32, i32) {
    %c0_i32 = arith.constant 0 : i32
    %c0_i32_0 = arith.constant 0 : i32
    %c0_i32_1 = arith.constant 0 : i32
    return %c0_i32, %c0_i32_0 : i32, i32
  }
  func.func @transform_19(%arg0: i32) -> (i32, i32) {
    %c0_i32 = arith.constant 0 : i32
    %c0_i32_0 = arith.constant 0 : i32
    %c0_i32_1 = arith.constant 0 : i32
    return %c0_i32, %c0_i32_0 : i32, i32
  }
  func.func @transform_20(%arg0: i32) -> (i32, i32) {
    %c0_i32 = arith.constant 0 : i32
    %c0_i32_0 = arith.constant 0 : i32
    %c0_i32_1 = arith.constant 0 : i32
    return %c0_i32, %c0_i32_0 : i32, i32
  }
  func.func @transform_21(%arg0: i32) -> (i32, i32) {
    %c0_i32 = arith.constant 0 : i32
    %c0_i32_0 = arith.constant 0 : i32
    %c0_i32_1 = arith.constant 0 : i32
    return %c0_i32, %c0_i32_0 : i32, i32
  }
  func.func @transform_22(%arg0: i32) -> (i32, i32, i32) {
    %c0_i32 = arith.constant 0 : i32
    %c0_i32_0 = arith.constant 0 : i32
    %c0_i32_1 = arith.constant 0 : i32
    return %arg0, %c0_i32, %c0_i32_0 : i32, i32, i32
  }
}

</mosaic_0001>

<bundles_post_ra>
// kernel: transformer_nmt_forward.8
= control target key start
LH: loop header
LB: loop body
LE: loop exit
PB: predicated region body
PF: predicated region fallthrough
CT: control target
= control target key end

     0   :  { %vm18_vm0 = vcmask 261120   ;;  %v95_v4 = vmov 32.0   ;;  %s140_s0 = inlined_call_operand.vmem [shape: f32[2,8,32], index: 0, kind: input, shape index: {}]   ;;  %s141_s1 = inlined_call_operand.vmem [shape: f32[1,1,32], index: 1, kind: input, shape index: {}]   ;;  %s142_s2 = inlined_call_operand.vmem [shape: f32[1,1,32], index: 2, kind: input, shape index: {}]   ;;  %s143_s3 = inlined_call_operand.vmem [shape: f32[2,8,32], index: 3, kind: output, shape index: {}]  }
   0x1   :  { %v14_v0 = vld [vmem:[%s140_s0] sm:$0xff]  ;;  %v15_v2 = vld [vmem:[%s140_s0 + $0x8] sm:$0xff]  ;;  %89 = vrcp.f32 %v95_v4 }
   0x2   :  { %v19_v1 = vsel %vm18_vm0, %v14_v0, 0.0  ;;  %v22_v3 = vsel %vm18_vm0, %v15_v2, 0.0  ;;  %v87_v35 = vld [vmem:[%s141_s1] ss:$0 sm:$0xff] }
   0x3   :  { %20 = vadd.xlane.f32.xlu0 %v19_v1  ;;  %v88_v38 = vld [vmem:[%s142_s2] ss:$0 sm:$0xff] }
   0x7   :  { %v90_v5 = vpop.eup %89 }
   0x8   :  { %v26_v6 = vmul.f32 32.0, %v90_v5  ;;  %vm30_vm1 = vweird.f32 %v90_v5 }
   0xa   :  { %v27_v7 = vsub.f32 1.0, %v26_v6 }
   0xb   :  { %23 = vadd.xlane.f32.xlu0 %v22_v3 }
   0xc   :  { %v28_v8 = vmul.f32 %v90_v5, %v27_v7 }
   0xe   :  { %v29_v9 = vadd.f32 %v90_v5, %v28_v8 }
  0x10   :  { %v31_v10 = vsel %vm30_vm1, %v90_v5, %v29_v9 }
  0x76   :  { %v21_v11 = vpop.xlane.xlu0 %20 }
  0x77   :  { %v32_v12 = vmul.f32 %v31_v10, %v21_v11 }
  0x79   :  { %v34_v13 = vsub.f32 %v14_v0, %v32_v12 }
  0x7b   :  { %v36_v14 = vmul.f32 %v34_v13, %v34_v13 }
  0x7d   :  { %v38_v15 = vsel %vm18_vm0, %v36_v14, 0.0 }
  0x7e   :  { %39 = vadd.xlane.f32.xlu1 %v38_v15  ;;  %v24_v16 = vpop.xlane.xlu0 %23 }
  0x7f   :  { %v33_v17 = vmul.f32 %v31_v10, %v24_v16 }
  0x81   :  { %v35_v18 = vsub.f32 %v15_v2, %v33_v17 }
  0x83   :  { %v37_v19 = vmul.f32 %v35_v18, %v35_v18 }
  0x85   :  { %v41_v20 = vsel %vm18_vm0, %v37_v19, 0.0 }
  0x86   :  { %42 = vadd.xlane.f32.xlu1 %v41_v20 }
  0xf1   :  { %v40_v21 = vpop.xlane.xlu1 %39 }
  0xf2   :  { %v44_v22 = vmul.f32 %v40_v21, %v31_v10 }
  0xf4   :  { %v46_v23 = vadd.f32 1e-05, %v44_v22 }
  0xf6   :  { %91 = vrsqrt.f32 %v46_v23  ;;  %vm54_vm3 = vweird.f32 %v46_v23 }
  0xf9   :  { %v43_v24 = vpop.xlane.xlu1 %42 }
  0xfa   :  { %v45_v25 = vmul.f32 %v43_v24, %v31_v10 }
  0xfc   :  { %v92_v26 = vpop.eup %91  ;;  %v47_v27 = vadd.f32 1e-05, %v45_v25 }
  0xfd   :  { %v49_v28 = vmul.f32 %v92_v26, %v46_v23  ;;  %vm55_vm2 = vweird.f32 %v92_v26 }
  0xfe   :  { %93 = vrsqrt.f32 %v47_v27  ;;  %vm56_vm4 = vmor %vm54_vm3, %vm55_vm2  ;;  %vm64_vm6 = vweird.f32 %v47_v27 }
  0xff   :  { %v50_v29 = vmul.f32 %v92_v26, %v49_v28 }
 0x101   :  { %v51_v30 = vmul.f32 0.5, %v50_v29 }
 0x103   :  { %v52_v31 = vsub.f32 1.5, %v51_v30 }
 0x104   :  { %v94_v32 = vpop.eup %93 }
 0x105   :  { %v53_v33 = vmul.f32 %v92_v26, %v52_v31  ;;  %v59_v34 = vmul.f32 %v94_v32, %v47_v27  ;;  %vm65_vm5 = vweird.f32 %v94_v32 }
 0x106   :  { %vm66_vm7 = vmor %vm64_vm6, %vm65_vm5 }
 0x107   :  { %v57_v36 = vsel %vm56_vm4, %v92_v26, %v53_v33  ;;  %v60_v37 = vmul.f32 %v94_v32, %v59_v34 }
 0x108   :  { %v68_v39 = vmul.f32 %v57_v36, %v34_v13 }
 0x109   :  { %v61_v40 = vmul.f32 0.5, %v60_v37 }
 0x10a   :  { %v73_v41 = vmul.f32 %v87_v35, %v68_v39 }
 0x10b   :  { %v62_v42 = vsub.f32 1.5, %v61_v40 }
 0x10c   :  { %v78_v43 = vadd.f32 %v88_v38, %v73_v41 }
 0x10d   :  { %v63_v44 = vmul.f32 %v94_v32, %v62_v42 }
 0x10e   :  { %80 = vst.msk [vmem:[%s143_s3] sm:$0xff] %vm18_vm0, %v78_v43 }
 0x10f   :  { %v67_v45 = vsel %vm66_vm7, %v94_v32, %v63_v44 }
 0x110   :  { %v69_v46 = vmul.f32 %v67_v45, %v35_v18 }
 0x112   :  { %v74_v47 = vmul.f32 %v87_v35, %v69_v46 }
 0x114   :  { %v79_v48 = vadd.f32 %v88_v38, %v74_v47 }
 0x116   :  { %81 = vst.msk [vmem:[%s143_s3 + $0x8] sm:$0xff] %vm18_vm0, %v79_v48 }

// kernel: transformer_nmt_forward.11
= control target key start
LH: loop header
LB: loop body
LE: loop exit
PB: predicated region body
PF: predicated region fallthrough
CT: control target
= control target key end

     0   :  { %vm25_vm0 = vcmask 261120   ;;  %vm29_vm1 = vcmask 257024   ;;  %v153_v4 = vmov 32.0   ;;  %s216_s0 = inlined_call_operand.vmem [shape: f32[12,32], index: 0, kind: input, shape index: {}]   ;;  %s217_s1 = inlined_call_operand.vmem [shape: f32[1,32], index: 1, kind: input, shape index: {}]   ;;  %s218_s2 = inlined_call_operand.vmem [shape: f32[1,32], index: 2, kind: input, shape index: {}]   ;;  %s219_s4 = inlined_call_operand.vmem [shape: f32[1,128], index: 4, kind: input, shape index: {}]   ;;  %s220_s3 = inlined_call_operand.vmem [shape: bf16[32,128], index: 3, kind: input, shape index: {}]   ;;  %s221_s5 = inlined_call_operand.vmem [shape: f32[12,128], index: 5, kind: output, shape index: {}]  }
   0x1   :  { %v21_v0 = vld [vmem:[%s216_s0] sm:$0xff]  ;;  %v22_v2 = vld [vmem:[%s216_s0 + $0x8] sm:$0xf]  ;;  %147 = vrcp.f32 %v153_v4 }
   0x2   :  { %v26_v1 = vsel %vm25_vm0, %v21_v0, 0.0  ;;  %v30_v3 = vsel %vm29_vm1, %v22_v2, 0.0  ;;  %v142_v21 = vld [vmem:[%s220_s3 + $0x8] sm:$0xff]  ;;  %v141_v23 = vld [vmem:[%s220_s3] sm:$0xff] }
   0x3   :  { %27 = vadd.xlane.f32.xlu0 %v26_v1  ;;  %118 = vmatpush.bf16.msra.mxu0 %v142_v21  ;;  %v144_v42 = vld [vmem:[%s217_s1] ss:$0 sm:$0xff] }
   0x4   :  { %v145_v47 = vld [vmem:[%s218_s2] ss:$0 sm:$0xff] }
   0x5   :  { %v146_v52 = vld [vmem:[%s219_s4] ss:$0 sm:$0xff] }
   0x7   :  { %v148_v5 = vpop.eup %147  ;;  %119 = vmatpush.bf16.msra.mxu0 %v141_v23 }
   0x8   :  { %v34_v6 = vmul.f32 32.0, %v148_v5  ;;  %vm38_vm2 = vweird.f32 %v148_v5 }
   0xa   :  { %v35_v7 = vsub.f32 1.0, %v34_v6 }
   0xb   :  { %31 = vadd.xlane.f32.xlu0 %v30_v3 }
   0xc   :  { %v36_v8 = vmul.f32 %v148_v5, %v35_v7 }
   0xe   :  { %v37_v9 = vadd.f32 %v148_v5, %v36_v8 }
  0x10   :  { %v39_v10 = vsel %vm38_vm2, %v148_v5, %v37_v9 }
  0x76   :  { %v28_v11 = vpop.xlane.xlu0 %27 }
  0x77   :  { %v40_v12 = vmul.f32 %v39_v10, %v28_v11 }
  0x79   :  { %v42_v13 = vsub.f32 %v21_v0, %v40_v12 }
  0x7b   :  { %v44_v14 = vmul.f32 %v42_v13, %v42_v13 }
  0x7d   :  { %v46_v15 = vsel %vm25_vm0, %v44_v14, 0.0 }
  0x7e   :  { %47 = vadd.xlane.f32.xlu1 %v46_v15  ;;  %v32_v16 = vpop.xlane.xlu0 %31 }
  0x7f   :  { %v41_v17 = vmul.f32 %v39_v10, %v32_v16 }
  0x81   :  { %v43_v18 = vsub.f32 %v22_v2, %v41_v17 }
  0x83   :  { %v45_v19 = vmul.f32 %v43_v18, %v43_v18 }
  0x85   :  { %v49_v20 = vsel %vm29_vm1, %v45_v19, 0.0 }
  0x86   :  { %50 = vadd.xlane.f32.xlu1 %v49_v20 }
  0xf1   :  { %v48_v22 = vpop.xlane.xlu1 %47 }
  0xf2   :  { %v52_v24 = vmul.f32 %v48_v22, %v39_v10 }
  0xf4   :  { %v54_v25 = vadd.f32 1e-05, %v52_v24 }
  0xf6   :  { %149 = vrsqrt.f32 %v54_v25  ;;  %vm62_vm4 = vweird.f32 %v54_v25 }
  0xf9   :  { %v51_v26 = vpop.xlane.xlu1 %50 }
  0xfa   :  { %v53_v27 = vmul.f32 %v51_v26, %v39_v10 }
  0xfc   :  { %v150_v28 = vpop.eup %149  ;;  %v55_v29 = vadd.f32 1e-05, %v53_v27 }
  0xfd   :  { %v57_v30 = vmul.f32 %v150_v28, %v54_v25  ;;  %vm63_vm3 = vweird.f32 %v150_v28 }
  0xfe   :  { %151 = vrsqrt.f32 %v55_v29  ;;  %vm64_vm5 = vmor %vm62_vm4, %vm63_vm3  ;;  %vm72_vm7 = vweird.f32 %v55_v29 }
  0xff   :  { %v58_v31 = vmul.f32 %v150_v28, %v57_v30 }
 0x101   :  { %v59_v32 = vmul.f32 0.5, %v58_v31 }
 0x103   :  { %v60_v33 = vsub.f32 1.5, %v59_v32 }
 0x104   :  { %v152_v34 = vpop.eup %151 }
 0x105   :  { %v61_v35 = vmul.f32 %v150_v28, %v60_v33  ;;  %v67_v36 = vmul.f32 %v152_v34, %v55_v29  ;;  %vm73_vm6 = vweird.f32 %v152_v34 }
 0x106   :  { %vm74_vm8 = vmor %vm72_vm7, %vm73_vm6 }
 0x107   :  { %v68_v37 = vmul.f32 %v152_v34, %v67_v36  ;;  %v65_v38 = vsel %vm64_vm5, %v150_v28, %v61_v35 }
 0x108   :  { %v76_v41 = vmul.f32 %v65_v38, %v42_v13 }
 0x109   :  { %v69_v39 = vmul.f32 0.5, %v68_v37 }
 0x10a   :  { %v81_v46 = vmul.f32 %v144_v42, %v76_v41 }
 0x10b   :  { %v70_v40 = vsub.f32 1.5, %v69_v39 }
 0x10c   :  { %v86_v49 = vadd.f32 %v145_v47, %v81_v46 }
 0x10d   :  { %v71_v43 = vmul.f32 %v152_v34, %v70_v40 }
 0x10f   :  { %v75_v44 = vsel %vm74_vm8, %v152_v34, %v71_v43 }
 0x110   :  { %v77_v45 = vmul.f32 %v75_v44, %v43_v18 }
 0x112   :  { %v82_v48 = vmul.f32 %v144_v42, %v77_v45 }
 0x114   :  { %v87_v50 = vadd.f32 %v145_v47, %v82_v48 }
 0x116   :  { %v93_v51 = vpack.c.bf16 %v87_v50, %v86_v49 }
 0x118   :  { %140 = vmatmul.msk.bf16.vlgmr.msra.gmra.mxu0 %vm25_vm0, %v93_v51 }
 0x195   :  { %v121_v53 = vpop.f32.mrf.mxu0 }
 0x196   :  { %v122_v54 = vadd.f32 %v146_v52, %v121_v53 }
 0x198   :  { %126 = vst [vmem:[%s221_s5] sm:$0xff] %v122_v54 }
 0x19d   :  { %v123_v55 = vpop.f32.mrf.mxu0 }
 0x19e   :  { %v124_v56 = vadd.f32 %v146_v52, %v123_v55 }
 0x1a0   :  { %127 = vst [vmem:[%s221_s5 + $0x8] sm:$0xf] %v124_v56 }

// kernel: transformer_nmt_forward.6
= control target key start
LH: loop header
LB: loop body
LE: loop exit
PB: predicated region body
PF: predicated region fallthrough
CT: control target
= control target key end

     0   :  { %s1255_s29 = smov 0   ;;  %s1385_s0 = inlined_call_operand.vmem [shape: f32[2,8,32], index: 0, kind: input, shape index: {}]   ;;  %s1386_s1 = inlined_call_operand.vmem [shape: f32[2,1,8], index: 1, kind: input, shape index: {}]   ;;  %s1387_s2 = inlined_call_operand.vmem [shape: bf16[32,96], index: 2, kind: input, shape index: {}]   ;;  %s1388_s3 = inlined_call_operand.vmem [shape: f32[1,96], index: 3, kind: input, shape index: {}]   ;;  %s1389_s4 = inlined_call_operand.vmem [shape: bf16[32,32], index: 4, kind: input, shape index: {}]   ;;  %s1390_s5 = inlined_call_operand.vmem [shape: f32[1,32], index: 5, kind: input, shape index: {}]   ;;  %s1391_s6 = inlined_call_operand.vmem [shape: f32[1,32], index: 6, kind: input, shape index: {}]   ;;  %s1392_s7 = inlined_call_operand.vmem [shape: f32[1,32], index: 7, kind: input, shape index: {}]   ;;  %s1393_s8 = inlined_call_operand.vmem [shape: bf16[32,64], index: 8, kind: input, shape index: {}]   ;;  %s1394_s9 = inlined_call_operand.vmem [shape: f32[1,64], index: 9, kind: input, shape index: {}]   ;;  %s1395_s10 = inlined_call_operand.vmem [shape: bf16[64,32], index: 10, kind: input, shape index: {}]   ;;  %s1396_s11 = inlined_call_operand.vmem [shape: f32[1,32], index: 11, kind: input, shape index: {}]   ;;  %s1397_s12 = inlined_call_operand.vmem [shape: f32[1,32], index: 12, kind: input, shape index: {}]   ;;  %s1398_s13 = inlined_call_operand.vmem [shape: f32[1,32], index: 13, kind: input, shape index: {}]   ;;  %s1399_s14 = inlined_call_operand.vmem [shape: f32[2,8,32], index: 14, kind: output, shape index: {}]  }
   0x1 LB: > { %s1032_s30 = sadd.s32 4294967295, %s1163_s29   ;;  %p1036_p0 = scmp.ge.s32.totalorder %s1163_s29, 1  ;;  %s1163_s29 = sphi %s1255_s29, %s24_s29  }
   0x2   : > { %p419_p1 = scmp.lt.s32.totalorder %s1163_s29, 3 }
   0x4   : > { %p420_p2 = pnand %p1036_p0, %p419_p1 }
   0x5   : > { %p466_p3 = scmp.lt.s32.totalorder (!%p420_p2), %s1032_s30, 1  ;;  %s1165_s25 = smov (!%p420_p2), 96  }
   0x6   : > { %423 = sbr.rel (%p420_p2) target bundleno = 1889 (0x761), region = 76  ;;  %s1166_s26 = smov (!%p420_p2), 104  }
   0x7   : > { %s1167_s27 = smov (!%p420_p2), 120   ;;  %s1168_s28 = smov (!%p420_p2), 88  }
   0x8   : > { %s1169_s15 = smov (!%p420_p2), 80   ;;  %s1170_s16 = smov (!%p420_p2), 72  }
   0x9   : > { %s1171_s17 = smov (!%p420_p2), 112   ;;  %s1173_s23 = smov (!%p420_p2), 40  }
   0xa   : > { %s1174_s24 = smov (!%p420_p2), 56  }
   0xb   : > { %v1094_v0 = vld [vmem:[%s1387_s2 + $0x8] sm:$0xff]  ;;  %v1093_v1 = vld [vmem:[%s1387_s2] sm:$0xff]  ;;  %s1401_s30 = smov (!%p466_p3, %s1032_s30), 1  ;;  %vm501_vm0 = vcmask 261120   ;;  %vm527_vm1 = vcmask 64512   ;;  %vm564_vm2 = vcmask 1043456  }
   0xc   : > { %511 = vmatpush.bf16.msra.mxu0 %v1094_v0  ;;  %s1037_s19 = sshll.u32 %s1401_s30, 3  ;;  %v1126_v4 = vld [vmem:[%s1388_s3] ss:$0 sm:$0xff]  ;;  %s472_s21 = scalar_lea.vmem %s1386_s1, %s1401_s30  ;;  %vm763_vm3 = vcmask 130048   ;;  %vm765_vm4 = vcmask 195584   ;;  %vm919_vm9 = vcmask 523264  }
   0xd   : > { %s469_s22 = scalar_lea.vmem %s1385_s0, %s1037_s19  ;;  %v1127_v22 = vld [vmem:[%s472_s21] ss:$0 sm:$0xff] }
   0xe   : > { %v1277_v2 = vld [vmem:[%s469_s22] sm:$0xff]  ;;  %s1172_s22 = smov 64  }
   0xf   : > { %v485_v3 = vpack.c.bf16 %v1277_v2, %v1277_v2 }
  0x10   : > { %512 = vmatpush.bf16.msra.mxu0 %v1093_v1 }
  0x13   : > { %1047 = vmatmul.msk.bf16.vlgmr.msra.gmra.mxu0 %vm501_vm0, %v485_v3 }
  0x90   : > { %v514_v5 = vpop.f32.mrf.mxu0 }
  0x91   : > { %v515_v6 = vadd.f32 %v1126_v4, %v514_v5 }
  0x93   : > { %v518_v7 = vmul.f32 0.35355338, %v515_v6  ;;  %v1285_v8 = vpack.c.bf16 %v515_v6, %v515_v6 }
  0x95   : > { %v519_v9 = vpack.c.bf16 %v518_v7, %v518_v7  ;;  %525 = vrot.lane.b32.xlu0 %v1285_v8, %s1165_s25  ;;  %s1175_s25 = smov 48  }
  0x97   : > { %694 = vrot.lane.b32.xlu2 %v519_v9, %s1166_s26  ;;  %582 = vrot.lane.b32.xlu1 %v519_v9, %s1167_s27  ;;  %s1176_s26 = smov 8   ;;  %s1177_s27 = smov 16  }
  0x98   : > { %v516_v10 = vpop.f32.mrf.mxu0 }
  0x9d   : > { %584 = vrot.lane.b32.xlu0 %v1285_v8, %s1168_s28  ;;  %s1178_s28 = smov 24  }
  0x9f   : > { %640 = vrot.lane.b32.xlu2 %v1285_v8, %s1169_s15  ;;  %696 = vrot.lane.b32.xlu1 %v1285_v8, %s1170_s16 }
  0xa5   : > { %638 = vrot.lane.b32.xlu0 %v519_v9, %s1171_s17 }
  0xf1   : > { %v695_v11 = vpop.permute.xlu2 %694 }
  0xf9   : > { %v641_v12 = vpop.permute.xlu2 %640 }
  0xfa   : > { %v646_v13 = vsel %vm527_vm1, %v641_v12, 0 }
  0xfb   : > { %655 = vmatpush.bf16.xpose.msrb.mxu0 %v646_v13 }
 0x107   : > { %v526_v14 = vpop.permute.xlu0 %525 }
 0x108   : > { %v532_v15 = vsel %vm527_vm1, %v526_v14, 0 }
 0x109   : > { %541 = vmatpush.bf16.xpose.msra.mxu1 %v532_v15  ;;  %v583_v16 = vpop.permute.xlu1 %582 }
 0x10f   : > { %v585_v17 = vpop.permute.xlu0 %584 }
 0x110   : > { %1048 = vmatmul.msk.bf16.vlgmr.msra.gmra.mxu1 %vm527_vm1, %v519_v9  ;;  %v590_v18 = vsel %vm527_vm1, %v585_v17, 0 }
 0x111   : > { %599 = vmatpush.bf16.xpose.msra.mxu3 %v590_v18  ;;  %v697_v19 = vpop.permute.xlu1 %696 }
 0x112   : > { %v702_v20 = vsel %vm527_vm1, %v697_v19, 0 }
 0x117   : > { %v639_v21 = vpop.permute.xlu0 %638 }
 0x118   : > { %1050 = vmatmul.msk.bf16.vlgmr.msra.gmra.mxu3 %vm527_vm1, %v583_v16  ;;  %1052 = vmatmul.msk.bf16.vlgmr.msrb.gmra.mxu0 %vm527_vm1, %v639_v21 }
 0x119   : > { %711 = vmatpush.bf16.xpose.msrb.mxu3 %v702_v20 }
 0x128   : > { %1054 = vmatmul.msk.bf16.vlgmr.msrb.gmra.mxu3 %vm527_vm1, %v695_v11 }
 0x18d   : > { %v543_v23 = vpop.f32.mrf.mxu1 }
 0x18e   : > { %v544_v24 = vadd.f32 %v1127_v22, %v543_v23 }
 0x190   : > { %v547_v25 = vsel %vm527_vm1, %v544_v24, -inf }
 0x191   : > { %548 = vmax.xlane.f32.xlu1 %v547_v25 }
 0x195   : > { %v545_v26 = vpop.f32.mrf.mxu1  ;;  %v657_v27 = vpop.f32.mrf.mxu0 }
 0x196   : > { %v658_v32 = vadd.f32 %v1127_v22, %v657_v27 }
 0x198   : > { %v661_v34 = vsel %vm527_vm1, %v658_v32, -inf }
 0x19b   : > { %v601_v28 = vpop.f32.mrf.mxu3 }
 0x19c   : > { %v602_v29 = vadd.f32 %v1127_v22, %v601_v28  ;;  %v1096_v28 = vld [vmem:[%s1389_s4 + $0x8] sm:$0xff] }
 0x19d   : > { %v659_v30 = vpop.f32.mrf.mxu0  ;;  %797 = vmatpush.bf16.msra.mxu0 %v1096_v28 }
 0x19e   : > { %v605_v31 = vsel %vm527_vm1, %v602_v29, -inf }
 0x19f   : > { %606 = vmax.xlane.f32.xlu2 %v605_v31 }
 0x1a3   : > { %v603_v33 = vpop.f32.mrf.mxu3 }
 0x1a7   : > { %662 = vmax.xlane.f32.xlu2 %v661_v34 }
 0x1ab   : > { %v713_v35 = vpop.f32.mrf.mxu3 }
 0x1ac   : > { %v714_v36 = vadd.f32 %v1127_v22, %v713_v35 }
 0x1ae   : > { %v717_v37 = vsel %vm527_vm1, %v714_v36, -inf }
 0x1af   : > { %718 = vmax.xlane.f32.xlu0 %v717_v37  ;;  %v1128_v37 = vld [vmem:[%s1390_s5] ss:$0 sm:$0xff] }
 0x1b3   : > { %v715_v38 = vpop.f32.mrf.mxu3 }
 0x1bf   : > { %559 = vrot.lane.b32.xlu2 %v1285_v8, %s1172_s22  ;;  %s476_s22 = scalar_lea.vmem %s1399_s14, %s1037_s19 }
 0x1c7   : > { %729 = vrot.lane.b32.xlu2 %v1285_v8, %s1173_s23 }
 0x204   : > { %v549_v39 = vpop.xlane.xlu1 %548 }
 0x205   : > { %v550_v40 = vsub.f32 %v544_v24, %v549_v39 }
 0x207   : > { %v551_v41 = vmul.f32 1.442695, %v550_v40 }
 0x209   : > { %1135 = vpow2.f32 %v551_v41 }
 0x20f   : > { %v1136_v42 = vpop.eup %1135 }
 0x210   : > { %v553_v43 = vsel %vm527_vm1, %v1136_v42, 0.0 }
 0x211   : > { %554 = vadd.xlane.f32.xlu1 %v553_v43  ;;  %v1179_v43 = vmov 32.0  }
 0x212   : > { %v607_v44 = vpop.xlane.xlu2 %606 }
 0x213   : > { %v608_v47 = vsub.f32 %v602_v29, %v607_v44  ;;  %v1095_v29 = vld [vmem:[%s1389_s4] sm:$0xff] }
 0x214   : > { %798 = vmatpush.bf16.msra.mxu0 %v1095_v29 }
 0x215   : > { %v609_v49 = vmul.f32 1.442695, %v608_v47 }
 0x21a   : > { %v663_v45 = vpop.xlane.xlu2 %662 }
 0x21b   : > { %v664_v46 = vsub.f32 %v658_v32, %v663_v45 }
 0x21d   : > { %v665_v48 = vmul.f32 1.442695, %v664_v46 }
 0x21f   : > { %1137 = vpow2.f32 %v665_v48 }
 0x220   : > { %1139 = vpow2.f32 %v609_v49 }
 0x222   : > { %v560_v50 = vpop.permute.xlu2 %559  ;;  %v719_v51 = vpop.xlane.xlu0 %718 }
 0x223   : > { %v566_v52 = vsel %vm564_vm2, %v560_v50, 0  ;;  %v720_v54 = vsub.f32 %v714_v36, %v719_v51 }
 0x224   : > { %575 = vmatpush.bf16.msra.mxu2 %v566_v52 }
 0x225   : > { %v1138_v53 = vpop.eup %1137  ;;  %v721_v56 = vmul.f32 1.442695, %v720_v54 }
 0x226   : > { %v667_v55 = vsel %vm527_vm1, %v1138_v53, 0.0  ;;  %v1140_v57 = vpop.eup %1139 }
 0x227   : > { %668 = vadd.xlane.f32.xlu0 %v667_v55  ;;  %1141 = vpow2.f32 %v721_v56  ;;  %v611_v58 = vsel %vm527_vm1, %v1140_v57, 0.0  ;;  %v1097_v55 = vld [vmem:[%s1393_s8] sm:$0xff]  ;;  %v1102_v56 = vld [vmem:[%s1395_s10 + $0x18] sm:$0xff] }
 0x228   : > { %927 = vmatpush.bf16.msra.mxu3 %v1102_v56 }
 0x22a   : > { %617 = vrot.lane.b32.xlu1 %v1285_v8, %s1174_s24  ;;  %v730_v3 = vpop.permute.xlu2 %729 }
 0x22b   : > { %v735_v6 = vsel %vm564_vm2, %v730_v3, 0 }
 0x22d   : > { %v1142_v59 = vpop.eup %1141 }
 0x22e   : > { %v723_v60 = vsel %vm527_vm1, %v1142_v59, 0.0 }
 0x22f   : > { %612 = vadd.xlane.f32.xlu0 %v611_v58 }
 0x237   : > { %724 = vadd.xlane.f32.xlu0 %v723_v60 }
 0x24b   : > { %673 = vrot.lane.b32.xlu0 %v1285_v8, %s1175_s25 }
 0x284   : > { %v555_v61 = vpop.xlane.xlu1 %554 }
 0x285   : > { %1143 = vrcp.f32 %v555_v61  ;;  %v1100_v61 = vld [vmem:[%s1395_s10 + $0x8] sm:$0xff] }
 0x28b   : > { %v1144_v62 = vpop.eup %1143 }
 0x28c   : > { %v557_v63 = vmul.f32 %v1144_v62, %v1136_v42 }
 0x28e   : > { %v558_v0 = vpack.c.bf16 %v557_v63, %v557_v63 }
 0x290   : > { %1049 = vmatmul.msk.bf16.vlgmr.msra.gmra.mxu2 %vm527_vm1, %v558_v0 }
 0x29a   : > { %v669_v1 = vpop.xlane.xlu0 %668 }
 0x29c   : > { %v618_v4 = vpop.permute.xlu1 %617 }
 0x29d   : > { %v623_v5 = vsel %vm564_vm2, %v618_v4, 0 }
 0x29e   : > { %632 = vmatpush.bf16.msrb.mxu2 %v623_v5  ;;  %v1129_v5 = vld [vmem:[%s1391_s6] ss:$0 sm:$0xff] }
 0x2a2   : > { %744 = vmatpush.bf16.msra.mxu2 %v735_v6  ;;  %v613_v7 = vpop.xlane.xlu0 %612 }
 0x2a3   : > { %1145 = vrcp.f32 %v613_v7  ;;  %v1130_v7 = vld [vmem:[%s1392_s7] ss:$0 sm:$0xff] }
 0x2a9   : > { %v1146_v9 = vpop.eup %1145 }
 0x2aa   : > { %v615_v8 = vmul.f32 %v1146_v9, %v1140_v57  ;;  %v725_v10 = vpop.xlane.xlu0 %724 }
 0x2ab   : > { %1147 = vrcp.f32 %v725_v10 }
 0x2ac   : > { %v616_v11 = vpack.c.bf16 %v615_v8, %v615_v8  ;;  %1149 = vrcp.f32 %v669_v1 }
 0x2ad   : > { %1151 = vrcp.f32 %v1179_v43 }
 0x2ae   : > { %1051 = vmatmul.msk.bf16.vlgmr.msrb.gmra.mxu2 %vm527_vm1, %v616_v11 }
 0x2b1   : > { %v1148_v12 = vpop.eup %1147 }
 0x2b2   : > { %v727_v13 = vmul.f32 %v1148_v12, %v1142_v59  ;;  %v1150_v14 = vpop.eup %1149  ;;  %v1101_v59 = vld [vmem:[%s1395_s10 + $0x10] sm:$0xff]  ;;  %v1099_v12 = vld [vmem:[%s1395_s10] sm:$0xff] }
 0x2b3   : > { %v671_v15 = vmul.f32 %v1150_v14, %v1138_v53  ;;  %v1152_v44 = vpop.eup %1151  ;;  %928 = vmatpush.bf16.msra.mxu3 %v1101_v59 }
 0x2b4   : > { %v728_v16 = vpack.c.bf16 %v727_v13, %v727_v13  ;;  %v811_v45 = vmul.f32 32.0, %v1152_v44  ;;  %vm815_vm5 = vweird.f32 %v1152_v44  ;;  %v1131_v13 = vld [vmem:[%s1394_s9] ss:$0 sm:$0xff] }
 0x2b5   : > { %v672_v19 = vpack.c.bf16 %v671_v15, %v671_v15 }
 0x2b6   : > { %v812_v46 = vsub.f32 1.0, %v811_v45 }
 0x2b7   : > { %929 = vmatpush.bf16.msra.mxu3 %v1100_v61 }
 0x2b8   : > { %v813_v47 = vmul.f32 %v1152_v44, %v812_v46 }
 0x2ba   : > { %v814_v48 = vadd.f32 %v1152_v44, %v813_v47 }
 0x2bb   : > { %930 = vmatpush.bf16.msra.mxu3 %v1099_v12 }
 0x2bc   : > { %v816_v49 = vsel %vm815_vm5, %v1152_v44, %v814_v48 }
 0x2bd   : > { %v674_v17 = vpop.permute.xlu0 %673 }
 0x2be   : > { %1055 = vmatmul.msk.bf16.vlgmr.msra.gmra.mxu2 %vm527_vm1, %v728_v16  ;;  %v679_v18 = vsel %vm564_vm2, %v674_v17, 0 }
 0x2bf   : > { %688 = vmatpush.bf16.msrb.mxu1 %v679_v18 }
 0x2c2   : > { %1053 = vmatmul.msk.bf16.vlgmr.msrb.gmra.mxu1 %vm527_vm1, %v672_v19  ;;  %v1132_v19 = vld [vmem:[%s1396_s11] ss:$0 sm:$0xff] }
 0x313   : > { %v577_v20 = vpop.f32.mrf.mxu2 }
 0x31b   : > { %v579_v21 = vpop.f32.mrf.mxu2 }
 0x331   : > { %v634_v22 = vpop.f32.mrf.mxu2 }
 0x332   : > { %751 = vrot.lane.b32.xlu1 %v634_v22, %s1176_s26 }
 0x339   : > { %v636_v23 = vpop.f32.mrf.mxu2 }
 0x33f   : > { %v690_v24 = vpop.f32.mrf.mxu1 }
 0x340   : > { %755 = vrot.lane.b32.xlu2 %v690_v24, %s1177_s27 }
 0x341   : > { %v746_v25 = vpop.f32.mrf.mxu2 }
 0x342   : > { %759 = vrot.lane.b32.xlu1 %v746_v25, %s1178_s28 }
 0x347   : > { %v692_v26 = vpop.f32.mrf.mxu1 }
 0x349   : > { %v748_v27 = vpop.f32.mrf.mxu2 }
 0x39a   : > { %v756_v32 = vpop.permute.xlu2 %755 }
 0x3a4   : > { %v752_v30 = vpop.permute.xlu1 %751 }
 0x3a5   : > { %v762_v31 = vsel %vm527_vm1, %v577_v20, %v752_v30 }
 0x3a6   : > { %v764_v33 = vsel %vm763_vm3, %v762_v31, %v756_v32 }
 0x3b4   : > { %v760_v34 = vpop.permute.xlu1 %759 }
 0x3b5   : > { %v766_v35 = vsel %vm765_vm4, %v764_v33, %v760_v34 }
 0x3b6   : > { %v772_v36 = vpack.c.bf16 %v766_v35, %v766_v35 }
 0x3b8   : > { %1064 = vmatmul.msk.bf16.vlgmr.msra.gmra.mxu0 %vm501_vm0, %v772_v36 }
 0x435   : > { %v800_v38 = vpop.f32.mrf.mxu0 }
 0x436   : > { %v801_v39 = vadd.f32 %v1128_v37, %v800_v38 }
 0x438   : > { %v804_v40 = vadd.f32 %v801_v39, %v1277_v2  ;;  %v1098_v2 = vld [vmem:[%s1393_s8 + $0x8] sm:$0xff]  ;;  %v1133_v39 = vld [vmem:[%s1397_s12] ss:$0 sm:$0xff] }
 0x439   : > { %874 = vmatpush.bf16.msra.mxu1 %v1098_v2 }
 0x43a   : > { %v807_v41 = vsel %vm501_vm0, %v804_v40, 0.0 }
 0x43b   : > { %808 = vadd.xlane.f32.xlu2 %v807_v41  ;;  %v1134_v41 = vld [vmem:[%s1398_s13] ss:$0 sm:$0xff] }
 0x43d   : > { %v802_v42 = vpop.f32.mrf.mxu0  ;;  %875 = vmatpush.bf16.msra.mxu1 %v1097_v55 }
 0x4ae   : > { %v809_v50 = vpop.xlane.xlu2 %808 }
 0x4af   : > { %v817_v51 = vmul.f32 %v816_v49, %v809_v50 }
 0x4b1   : > { %v818_v52 = vsub.f32 %v804_v40, %v817_v51 }
 0x4b3   : > { %v819_v53 = vmul.f32 %v818_v52, %v818_v52 }
 0x4b5   : > { %v820_v54 = vsel %vm501_vm0, %v819_v53, 0.0 }
 0x4b6   : > { %821 = vadd.xlane.f32.xlu1 %v820_v54 }
 0x529   : > { %v822_v57 = vpop.xlane.xlu1 %821 }
 0x52a   : > { %v823_v58 = vmul.f32 %v822_v57, %v816_v49 }
 0x52c   : > { %v824_v60 = vadd.f32 1e-05, %v823_v58 }
 0x52e   : > { %1153 = vrsqrt.f32 %v824_v60  ;;  %vm831_vm7 = vweird.f32 %v824_v60 }
 0x534   : > { %v1154_v62 = vpop.eup %1153 }
 0x535   : > { %v826_v63 = vmul.f32 %v1154_v62, %v824_v60  ;;  %vm832_vm6 = vweird.f32 %v1154_v62 }
 0x536   : > { %vm833_vm8 = vmor %vm831_vm7, %vm832_vm6 }
 0x537   : > { %v827_v0 = vmul.f32 %v1154_v62, %v826_v63 }
 0x539   : > { %v828_v1 = vmul.f32 0.5, %v827_v0 }
 0x53b   : > { %v829_v3 = vsub.f32 1.5, %v828_v1 }
 0x53d   : > { %v830_v4 = vmul.f32 %v1154_v62, %v829_v3 }
 0x53f   : > { %v834_v6 = vsel %vm833_vm8, %v1154_v62, %v830_v4 }
 0x540   : > { %v835_v9 = vmul.f32 %v834_v6, %v818_v52 }
 0x542   : > { %v839_v8 = vmul.f32 %v1129_v5, %v835_v9 }
 0x544   : > { %v843_v10 = vadd.f32 %v1130_v7, %v839_v8 }
 0x546   : > { %v849_v11 = vpack.c.bf16 %v843_v10, %v843_v10 }
 0x548   : > { %1073 = vmatmul.msk.bf16.vlgmr.msra.gmra.mxu1 %vm501_vm0, %v849_v11 }
 0x5c5   : > { %v877_v14 = vpop.f32.mrf.mxu1 }
 0x5c6   : > { %v878_v15 = vadd.f32 %v1131_v13, %v877_v14 }
 0x5c8   : > { %v881_v16 = vmax.f32 %v878_v15, 0.0 }
 0x5ca   : > { %v891_v17 = vpack.c.bf16 %v881_v16, %v881_v16 }
 0x5cc   : > { %1090 = vmatmul.msk.bf16.vlgmr.msra.gmra.mxu3 %vm919_vm9, %v891_v17 }
 0x5cd   : > { %v879_v18 = vpop.f32.mrf.mxu1 }
 0x64f   : > { %v932_v20 = vpop.f32.mrf.mxu3 }
 0x650   : > { %v933_v21 = vadd.f32 %v1132_v19, %v932_v20 }
 0x652   : > { %v936_v22 = vadd.f32 %v933_v21, %v843_v10 }
 0x654   : > { %v939_v23 = vsel %vm501_vm0, %v936_v22, 0.0 }
 0x655   : > { %940 = vadd.xlane.f32.xlu0 %v939_v23 }
 0x657   : > { %v934_v24 = vpop.f32.mrf.mxu3 }
 0x6c8   : > { %v941_v25 = vpop.xlane.xlu0 %940 }
 0x6c9   : > { %v942_v26 = vmul.f32 %v941_v25, %v816_v49 }
 0x6cb   : > { %v943_v27 = vsub.f32 %v936_v22, %v942_v26 }
 0x6cd   : > { %v944_v28 = vmul.f32 %v943_v27, %v943_v27 }
 0x6cf   : > { %v945_v29 = vsel %vm501_vm0, %v944_v28, 0.0 }
 0x6d0   : > { %946 = vadd.xlane.f32.xlu2 %v945_v29 }
 0x743   : > { %v947_v30 = vpop.xlane.xlu2 %946 }
 0x744   : > { %v948_v31 = vmul.f32 %v947_v30, %v816_v49 }
 0x746   : > { %v949_v32 = vadd.f32 1e-05, %v948_v31 }
 0x748   : > { %1155 = vrsqrt.f32 %v949_v32  ;;  %vm956_vm11 = vweird.f32 %v949_v32 }
 0x74e   : > { %v1156_v33 = vpop.eup %1155 }
 0x74f   : > { %v951_v34 = vmul.f32 %v1156_v33, %v949_v32  ;;  %vm957_vm10 = vweird.f32 %v1156_v33 }
 0x750   : > { %vm958_vm12 = vmor %vm956_vm11, %vm957_vm10 }
 0x751   : > { %v952_v35 = vmul.f32 %v1156_v33, %v951_v34 }
 0x753   : > { %v953_v36 = vmul.f32 0.5, %v952_v35 }
 0x755   : > { %v954_v37 = vsub.f32 1.5, %v953_v36 }
 0x757   : > { %v955_v38 = vmul.f32 %v1156_v33, %v954_v37 }
 0x759   : > { %v959_v40 = vsel %vm958_vm12, %v1156_v33, %v955_v38 }
 0x75a   : > { %v960_v42 = vmul.f32 %v959_v40, %v943_v27 }
 0x75c   : > { %v964_v43 = vmul.f32 %v1133_v39, %v960_v42 }
 0x75e   : > { %v968_v44 = vadd.f32 %v1134_v41, %v964_v43 }
 0x760   : > { %969 = vst.msk [vmem:[%s476_s22] sm:$0xff] %vm501_vm0, %v968_v44 }
 0x761 PF: > { %s24_s29 = sadd.s32 1, %s1163_s29  }
 0x762   : > { %p21_p4 = scmp.ge.s32.totalorder %s24_s29, 4  }
 0x764   :  { %23 = sbr.rel (!%p21_p4) target bundleno = 1 (0x1), region = 109 }

// kernel: transformer_nmt_forward.9
= control target key start
LH: loop header
LB: loop body
LE: loop exit
PB: predicated region body
PF: predicated region fallthrough
CT: control target
= control target key end

     0   :  { %s2220_s0 = inlined_call_operand.vmem [shape: f32[2,6,32], index: 0, kind: input, shape index: {}]   ;;  %s2221_s1 = inlined_call_operand.vmem [shape: f32[2,8,32], index: 1, kind: input, shape index: {}]   ;;  %s2222_s2 = inlined_call_operand.vmem [shape: bf16[32,96], index: 2, kind: input, shape index: {}]   ;;  %s2223_s3 = inlined_call_operand.vmem [shape: f32[1,96], index: 3, kind: input, shape index: {}]   ;;  %s2224_s4 = inlined_call_operand.vmem [shape: bf16[32,32], index: 4, kind: input, shape index: {}]   ;;  %s2225_s5 = inlined_call_operand.vmem [shape: f32[1,32], index: 5, kind: input, shape index: {}]   ;;  %s2226_s6 = inlined_call_operand.vmem [shape: f32[1,32], index: 6, kind: input, shape index: {}]   ;;  %s2227_s7 = inlined_call_operand.vmem [shape: f32[1,32], index: 7, kind: input, shape index: {}]   ;;  %s2228_s8 = inlined_call_operand.vmem [shape: bf16[32,32], index: 8, kind: input, shape index: {}]   ;;  %s2229_s9 = inlined_call_operand.vmem [shape: f32[1,32], index: 9, kind: input, shape index: {}]   ;;  %s2230_s10 = inlined_call_operand.vmem [shape: bf16[32,64], index: 10, kind: input, shape index: {}]   ;;  %s2231_s11 = inlined_call_operand.vmem [shape: f32[1,64], index: 11, kind: input, shape index: {}]   ;;  %s2232_s12 = inlined_call_operand.vmem [shape: bf16[32,32], index: 12, kind: input, shape index: {}]   ;;  %s2233_s13 = inlined_call_operand.vmem [shape: f32[1,32], index: 13, kind: input, shape index: {}]   ;;  %s2234_s14 = inlined_call_operand.vmem [shape: f32[1,32], index: 14, kind: input, shape index: {}]   ;;  %s2235_s15 = inlined_call_operand.vmem [shape: f32[1,32], index: 15, kind: input, shape index: {}]   ;;  %s2236_s16 = inlined_call_operand.vmem [shape: bf16[32,64], index: 16, kind: input, shape index: {}]   ;;  %s2237_s17 = inlined_call_operand.vmem [shape: f32[1,64], index: 17, kind: input, shape index: {}]   ;;  %s2238_s18 = inlined_call_operand.vmem [shape: bf16[64,32], index: 18, kind: input, shape index: {}]   ;;  %s2239_s19 = inlined_call_operand.vmem [shape: f32[1,32], index: 19, kind: input, shape index: {}]   ;;  %s2240_s20 = inlined_call_operand.vmem [shape: f32[1,32], index: 20, kind: input, shape index: {}]   ;;  %s2241_s21 = inlined_call_operand.vmem [shape: f32[1,32], index: 21, kind: input, shape index: {}]   ;;  %s2242_s22 = inlined_call_operand.vmem [shape: f32[2,6,32], index: 22, kind: output, shape index: {}]  }
   0x1   :  { %2254 = sst [smem:[#allocation2_spill]] %s2220_s0 }
   0x2   :  { %2255 = sst [smem:[#allocation3_spill]] %s2221_s1 }
   0x3   :  { %2256 = sst [smem:[#allocation4_spill]] %s2222_s2 }
   0x4   :  { %2257 = sst [smem:[#allocation5_spill]] %s2223_s3  ;;  %s1976_s3 = smov 0  }
   0x5   :  { %2258 = sst [smem:[#allocation6_spill]] %s2224_s4 }
   0x6   :  { %2259 = sst [smem:[#allocation7_spill]] %s2225_s5 }
   0x7   :  { %2260 = sst [smem:[#allocation8_spill]] %s2226_s6 }
   0x8 LB: > { %s1649_s28 = sadd.s32 4294967295, %s1844_s3   ;;  %p1653_p0 = scmp.ge.s32.totalorder %s1844_s3, 1  ;;  %s1844_s3 = sphi %s1976_s3, %s32_s3  }
   0x9   : > { %p620_p1 = scmp.lt.s32.totalorder %s1844_s3, 3 }
   0xb   : > { %p621_p2 = pnand %p1653_p0, %p620_p1 }
   0xc   : > { %s2261_s4 = sld [smem:[#allocation4_spill]] (!%p621_p2)  ;;  %p684_p3 = scmp.lt.s32.totalorder (!%p621_p2), %s1649_s28, 1 }
   0xd   : > { %624 = sbr.rel (%p621_p2) target bundleno = 3204 (0xc84), region = 108  ;;  %s2262_s6 = sld [smem:[#allocation2_spill]] (!%p621_p2) }
   0xe   : > { %s2263_s27 = sld [smem:[#allocation5_spill]] (!%p621_p2)  ;;  %s2252_s29 = smov (!%p621_p2), 104  }
   0xf   : > { %s1848_s30 = smov (!%p621_p2), 120   ;;  %s2246_s0 = smov (!%p621_p2), 88  }
  0x10   : > { %s2245_s23 = smov (!%p621_p2), 80   ;;  %s2247_s5 = smov (!%p621_p2), 72  }
  0x11   : > { %s1852_s24 = smov (!%p621_p2), 112   ;;  %s1855_s26 = smov (!%p621_p2), 56  }
  0x12   : > { %v1747_v0 = vld [vmem:[%s2261_s4 + $0x8] sm:$0xff]  ;;  %v1746_v1 = vld [vmem:[%s2261_s4] sm:$0xff]  ;;  %s2277_s28 = smov (!%p684_p3, %s1649_s28), 1  ;;  %vm720_vm0 = vcmask 261120   ;;  %vm748_vm1 = vcmask 64512   ;;  %v737_v22 = vlaneseq  ;;  %vm769_vm3 = vcmask 46080  }
  0x13   : > { %730 = vmatpush.bf16.msra.mxu0 %v1747_v0  ;;  %s1990_s1 = sshll.u32 %s2277_s28, 3  ;;  %s2251_s28 = smov 96   ;;  %vm788_vm4 = vcmask 1042432   ;;  %vm784_vm5 = vcmask 48128   ;;  %vm990_vm6 = vcmask 130048   ;;  %vm992_vm7 = vcmask 195584  }
  0x14   : > { %s687_s25 = scalar_lea.vmem %s2262_s6, %s1990_s1  ;;  %v1785_v4 = vld [vmem:[%s2263_s27] ss:$0 sm:$0xff]  ;;  %v738_v23 = vshrl.u32 %v737_v22, 7  ;;  %v740_v24 = vand.u32 127, %v737_v22  ;;  %s1853_s6 = smov 64   ;;  %vm1034_vm8 = vcmask 259072  }
  0x15   : > { %v1996_v2 = vld [vmem:[%s687_s25] sm:$0x3f]  ;;  %s1854_s25 = smov 40   ;;  %s1856_s2 = smov 48   ;;  %vm1168_vm13 = vcmask 62464   ;;  %vm1187_vm14 = vcmask 1043456  }
  0x16   : > { %v704_v3 = vpack.c.bf16 %v1996_v2, %v1996_v2  ;;  %vm741_vm2 = vcmp.ge.s32.totalorder %v738_v23, %v740_v24  ;;  %s2250_s27 = smov 8  }
  0x17   : > { %731 = vmatpush.bf16.msra.mxu0 %v1746_v1 }
  0x1a   : > { %1665 = vmatmul.msk.bf16.vlgmr.msra.gmra.mxu0 %vm720_vm0, %v704_v3 }
  0x97   : > { %v733_v5 = vpop.f32.mrf.mxu0 }
  0x98   : > { %v734_v6 = vadd.f32 %v1785_v4, %v733_v5 }
  0x9a   : > { %v742_v7 = vmul.f32 0.35355338, %v734_v6  ;;  %v2004_v8 = vpack.c.bf16 %v734_v6, %v734_v6 }
  0x9c   : > { %v743_v9 = vpack.c.bf16 %v742_v7, %v742_v7  ;;  %746 = vrot.lane.b32.xlu0 %v2004_v8, %s2251_s28  ;;  %s2275_s28 = smov 24  }
  0x9e   : > { %920 = vrot.lane.b32.xlu2 %v743_v9, %s2252_s29  ;;  %806 = vrot.lane.b32.xlu1 %v743_v9, %s1848_s30 }
  0x9f   : > { %v735_v10 = vpop.f32.mrf.mxu0 }
  0xa4   : > { %808 = vrot.lane.b32.xlu0 %v2004_v8, %s2246_s0  ;;  %s2265_s0 = sld [smem:[#allocation7_spill]] }
  0xa6   : > { %865 = vrot.lane.b32.xlu2 %v2004_v8, %s2245_s23  ;;  %922 = vrot.lane.b32.xlu1 %v2004_v8, %s2247_s5  ;;  %s2264_s23 = sld [smem:[#allocation6_spill]]  ;;  %s2272_s5 = smov 80  }
  0xac   : > { %863 = vrot.lane.b32.xlu0 %v743_v9, %s1852_s24 }
  0xf8   : > { %v921_v11 = vpop.permute.xlu2 %920 }
 0x100   : > { %v866_v12 = vpop.permute.xlu2 %865 }
 0x101   : > { %v871_v13 = vsel %vm748_vm1, %v866_v12, 0 }
 0x102   : > { %880 = vmatpush.bf16.xpose.msrb.mxu0 %v871_v13 }
 0x10e   : > { %v747_v14 = vpop.permute.xlu0 %746 }
 0x10f   : > { %v753_v15 = vsel %vm748_vm1, %v747_v14, 0 }
 0x110   : > { %762 = vmatpush.bf16.xpose.msra.mxu1 %v753_v15  ;;  %v807_v16 = vpop.permute.xlu1 %806 }
 0x116   : > { %v809_v17 = vpop.permute.xlu0 %808 }
 0x117   : > { %1666 = vmatmul.msk.bf16.vlgmr.msra.gmra.mxu1 %vm748_vm1, %v743_v9  ;;  %v814_v18 = vsel %vm748_vm1, %v809_v17, 0 }
 0x118   : > { %823 = vmatpush.bf16.xpose.msra.mxu3 %v814_v18  ;;  %v923_v19 = vpop.permute.xlu1 %922 }
 0x119   : > { %v928_v20 = vsel %vm748_vm1, %v923_v19, 0 }
 0x11e   : > { %v864_v21 = vpop.permute.xlu0 %863 }
 0x11f   : > { %1668 = vmatmul.msk.bf16.vlgmr.msra.gmra.mxu3 %vm748_vm1, %v807_v16  ;;  %1670 = vmatmul.msk.bf16.vlgmr.msrb.gmra.mxu0 %vm748_vm1, %v864_v21 }
 0x120   : > { %937 = vmatpush.bf16.xpose.msrb.mxu3 %v928_v20 }
 0x12f   : > { %1672 = vmatmul.msk.bf16.vlgmr.msrb.gmra.mxu3 %vm748_vm1, %v921_v11 }
 0x194   : > { %v764_v25 = vpop.f32.mrf.mxu1 }
 0x195   : > { %v768_v26 = vsel %vm741_vm2, %v764_v25, -1e+30 }
 0x196   : > { %v770_v27 = vsel %vm769_vm3, %v768_v26, -inf }
 0x197   : > { %771 = vmax.xlane.f32.xlu1 %v770_v27 }
 0x19c   : > { %v766_v28 = vpop.f32.mrf.mxu1  ;;  %v882_v29 = vpop.f32.mrf.mxu0 }
 0x19d   : > { %v886_v34 = vsel %vm741_vm2, %v882_v29, -1e+30 }
 0x19e   : > { %v887_v36 = vsel %vm769_vm3, %v886_v34, -inf }
 0x1a2   : > { %v825_v30 = vpop.f32.mrf.mxu3 }
 0x1a3   : > { %v829_v31 = vsel %vm741_vm2, %v825_v30, -1e+30  ;;  %v1749_v30 = vld [vmem:[%s2264_s23 + $0x8] sm:$0xff] }
 0x1a4   : > { %v884_v32 = vpop.f32.mrf.mxu0  ;;  %v830_v33 = vsel %vm769_vm3, %v829_v31, -inf  ;;  %1024 = vmatpush.bf16.msra.mxu0 %v1749_v30 }
 0x1a5   : > { %831 = vmax.xlane.f32.xlu2 %v830_v33 }
 0x1aa   : > { %v827_v35 = vpop.f32.mrf.mxu3 }
 0x1ad   : > { %888 = vmax.xlane.f32.xlu2 %v887_v36 }
 0x1b2   : > { %v939_v37 = vpop.f32.mrf.mxu3 }
 0x1b3   : > { %v943_v38 = vsel %vm741_vm2, %v939_v37, -1e+30 }
 0x1b4   : > { %v944_v39 = vsel %vm769_vm3, %v943_v38, -inf }
 0x1b5   : > { %945 = vmax.xlane.f32.xlu0 %v944_v39  ;;  %v1786_v39 = vld [vmem:[%s2265_s0] ss:$0 sm:$0xff]  ;;  %s2271_s0 = smov 88  }
 0x1ba   : > { %v941_v40 = vpop.f32.mrf.mxu3 }
 0x1c5   : > { %782 = vrot.lane.b32.xlu2 %v2004_v8, %s1853_s6  ;;  %s2249_s6 = smov 16  }
 0x1cd   : > { %956 = vrot.lane.b32.xlu2 %v2004_v8, %s1854_s25  ;;  %s2248_s25 = smov 24  }
 0x20a   : > { %v772_v41 = vpop.xlane.xlu1 %771 }
 0x20b   : > { %v773_v42 = vsub.f32 %v768_v26, %v772_v41 }
 0x20d   : > { %v774_v43 = vmul.f32 1.442695, %v773_v42 }
 0x20f   : > { %1798 = vpow2.f32 %v774_v43 }
 0x215   : > { %v1799_v44 = vpop.eup %1798 }
 0x216   : > { %v776_v45 = vsel %vm769_vm3, %v1799_v44, 0.0 }
 0x217   : > { %777 = vadd.xlane.f32.xlu1 %v776_v45  ;;  %v1860_v45 = vmov 32.0  }
 0x218   : > { %v832_v46 = vpop.xlane.xlu2 %831 }
 0x219   : > { %v833_v49 = vsub.f32 %v829_v31, %v832_v46  ;;  %v1748_v31 = vld [vmem:[%s2264_s23] sm:$0xff]  ;;  %v1753_v46 = vld [vmem:[%s2230_s10 + $0x8] sm:$0xff] }
 0x21a   : > { %1025 = vmatpush.bf16.msra.mxu0 %v1748_v31  ;;  %1139 = vmatpush.bf16.msra.mxu3 %v1753_v46 }
 0x21b   : > { %v834_v51 = vmul.f32 1.442695, %v833_v49 }
 0x220   : > { %v889_v47 = vpop.xlane.xlu2 %888 }
 0x221   : > { %v890_v48 = vsub.f32 %v886_v34, %v889_v47 }
 0x223   : > { %v891_v50 = vmul.f32 1.442695, %v890_v48 }
 0x225   : > { %1800 = vpow2.f32 %v891_v50 }
 0x226   : > { %1802 = vpow2.f32 %v834_v51 }
 0x228   : > { %v783_v52 = vpop.permute.xlu2 %782  ;;  %v946_v53 = vpop.xlane.xlu0 %945 }
 0x229   : > { %v790_v54 = vsel %vm788_vm4, %v783_v52, 0  ;;  %v947_v56 = vsub.f32 %v943_v38, %v946_v53 }
 0x22a   : > { %799 = vmatpush.bf16.msra.mxu2 %v790_v54 }
 0x22b   : > { %v1801_v55 = vpop.eup %1800  ;;  %v948_v58 = vmul.f32 1.442695, %v947_v56 }
 0x22c   : > { %v893_v57 = vsel %vm769_vm3, %v1801_v55, 0.0  ;;  %v1803_v59 = vpop.eup %1802 }
 0x22d   : > { %894 = vadd.xlane.f32.xlu0 %v893_v57  ;;  %1804 = vpow2.f32 %v948_v58  ;;  %v836_v60 = vsel %vm769_vm3, %v1803_v59, 0.0 }
 0x230   : > { %842 = vrot.lane.b32.xlu1 %v2004_v8, %s1855_s26  ;;  %v957_v5 = vpop.permute.xlu2 %956  ;;  %s2273_s26 = smov 8  }
 0x231   : > { %v962_v9 = vsel %vm788_vm4, %v957_v5, 0 }
 0x233   : > { %v1805_v61 = vpop.eup %1804 }
 0x234   : > { %v950_v62 = vsel %vm769_vm3, %v1805_v61, 0.0  ;;  %vm1533_vm3 = vcmask 523264  }
 0x235   : > { %837 = vadd.xlane.f32.xlu0 %v836_v60  ;;  %v1751_v60 = vld [vmem:[%s2228_s8 + $0x8] sm:$0xff] }
 0x23d   : > { %951 = vadd.xlane.f32.xlu0 %v950_v62  ;;  %v1789_v62 = vld [vmem:[%s2231_s11] ss:$0 sm:$0xff] }
 0x251   : > { %899 = vrot.lane.b32.xlu0 %v2004_v8, %s1856_s2  ;;  %s2267_s2 = sld [smem:[#allocation8_spill]] }
 0x28a   : > { %v778_v63 = vpop.xlane.xlu1 %777 }
 0x28b   : > { %1806 = vrcp.f32 %v778_v63 }
 0x291   : > { %v1807_v0 = vpop.eup %1806 }
 0x292   : > { %v780_v1 = vmul.f32 %v1807_v0, %v1799_v44 }
 0x294   : > { %v781_v3 = vpack.c.bf16 %v780_v1, %v780_v1 }
 0x296   : > { %1667 = vmatmul.msk.bf16.vlgmr.msra.gmra.mxu2 %vm784_vm5, %v781_v3 }
 0x2a0   : > { %v895_v4 = vpop.xlane.xlu0 %894 }
 0x2a2   : > { %v843_v6 = vpop.permute.xlu1 %842 }
 0x2a3   : > { %v848_v7 = vsel %vm788_vm4, %v843_v6, 0 }
 0x2a4   : > { %857 = vmatpush.bf16.msrb.mxu2 %v848_v7 }
 0x2a8   : > { %971 = vmatpush.bf16.msra.mxu2 %v962_v9  ;;  %v838_v10 = vpop.xlane.xlu0 %837 }
 0x2a9   : > { %1808 = vrcp.f32 %v838_v10 }
 0x2af   : > { %v1809_v8 = vpop.eup %1808 }
 0x2b0   : > { %v840_v11 = vmul.f32 %v1809_v8, %v1803_v59  ;;  %v952_v12 = vpop.xlane.xlu0 %951 }
 0x2b1   : > { %1810 = vrcp.f32 %v952_v12 }
 0x2b2   : > { %v841_v13 = vpack.c.bf16 %v840_v11, %v840_v11  ;;  %1812 = vrcp.f32 %v895_v4 }
 0x2b3   : > { %1814 = vrcp.f32 %v1860_v45 }
 0x2b4   : > { %1669 = vmatmul.msk.bf16.vlgmr.msrb.gmra.mxu2 %vm784_vm5, %v841_v13 }
 0x2b7   : > { %v1811_v14 = vpop.eup %1810 }
 0x2b8   : > { %v954_v15 = vmul.f32 %v1811_v14, %v1805_v61  ;;  %v1813_v16 = vpop.eup %1812  ;;  %v1750_v61 = vld [vmem:[%s2228_s8] sm:$0xff] }
 0x2b9   : > { %v897_v17 = vmul.f32 %v1813_v16, %v1801_v55  ;;  %v1815_v48 = vpop.eup %1814  ;;  %v1787_v14 = vld [vmem:[%s2267_s2] ss:$0 sm:$0xff]  ;;  %s2274_s2 = smov 16  }
 0x2ba   : > { %v955_v18 = vpack.c.bf16 %v954_v15, %v954_v15  ;;  %v1039_v50 = vmul.f32 32.0, %v1815_v48  ;;  %vm1043_vm9 = vweird.f32 %v1815_v48  ;;  %v1788_v16 = vld [vmem:[%s2227_s7] ss:$0 sm:$0xff] }
 0x2bb   : > { %v898_v21 = vpack.c.bf16 %v897_v17, %v897_v17 }
 0x2bc   : > { %v1040_v51 = vsub.f32 1.0, %v1039_v50 }
 0x2be   : > { %v1041_v52 = vmul.f32 %v1815_v48, %v1040_v51 }
 0x2c0   : > { %v1042_v53 = vadd.f32 %v1815_v48, %v1041_v52 }
 0x2c2   : > { %v2078_v54 = vsel %vm1043_vm9, %v1815_v48, %v1042_v53 }
 0x2c3   : > { %v900_v19 = vpop.permute.xlu0 %899 }
 0x2c4   : > { %1673 = vmatmul.msk.bf16.vlgmr.msra.gmra.mxu2 %vm784_vm5, %v955_v18  ;;  %v905_v20 = vsel %vm788_vm4, %v900_v19, 0 }
 0x2c5   : > { %914 = vmatpush.bf16.msrb.mxu1 %v905_v20 }
 0x2c8   : > { %1671 = vmatmul.msk.bf16.vlgmr.msrb.gmra.mxu1 %vm784_vm5, %v898_v21 }
 0x2c9   : > { %1102 = vmatpush.bf16.msra.mxu1 %v1751_v60 }
 0x2cd   : > { %1103 = vmatpush.bf16.msra.mxu1 %v1750_v61 }
 0x319   : > { %v801_v22 = vpop.f32.mrf.mxu2 }
 0x321   : > { %v803_v23 = vpop.f32.mrf.mxu2 }
 0x322   : > { %v1790_v23 = vld [vmem:[%s2229_s9] ss:$0 sm:$0xff] }
 0x337   : > { %v859_v24 = vpop.f32.mrf.mxu2 }
 0x338   : > { %978 = vrot.lane.b32.xlu1 %v859_v24, %s2250_s27 }
 0x33f   : > { %v861_v25 = vpop.f32.mrf.mxu2 }
 0x345   : > { %v916_v26 = vpop.f32.mrf.mxu1 }
 0x346   : > { %982 = vrot.lane.b32.xlu2 %v916_v26, %s2249_s6  ;;  %s2266_s6 = sld [smem:[#allocation3_spill]] }
 0x347   : > { %v973_v27 = vpop.f32.mrf.mxu2 }
 0x348   : > { %986 = vrot.lane.b32.xlu1 %v973_v27, %s2248_s25  ;;  %s2268_s25 = smov 104  }
 0x34c   : > { %s691_s27 = scalar_lea.vmem %s2266_s6, %s1990_s1 }
 0x34d   : > { %v918_v28 = vpop.f32.mrf.mxu1  ;;  %v698_v47 = vld [vmem:[%s691_s27] sm:$0xff] }
 0x34e   : > { %v1114_v49 = vpack.c.bf16 %v698_v47, %v698_v47 }
 0x34f   : > { %v975_v29 = vpop.f32.mrf.mxu2 }
 0x3a0   : > { %v983_v34 = vpop.permute.xlu2 %982 }
 0x3aa   : > { %v979_v32 = vpop.permute.xlu1 %978 }
 0x3ab   : > { %v989_v33 = vsel %vm748_vm1, %v801_v22, %v979_v32 }
 0x3ac   : > { %v991_v36 = vsel %vm990_vm6, %v989_v33, %v983_v34 }
 0x3ba   : > { %v987_v35 = vpop.permute.xlu1 %986 }
 0x3bb   : > { %v993_v37 = vsel %vm992_vm7, %v991_v36, %v987_v35 }
 0x3bc   : > { %v999_v38 = vpack.c.bf16 %v993_v37, %v993_v37 }
 0x3be   : > { %1682 = vmatmul.msk.bf16.vlgmr.msra.gmra.mxu0 %vm720_vm0, %v999_v38 }
 0x43b   : > { %v1027_v40 = vpop.f32.mrf.mxu0 }
 0x43c   : > { %v1028_v41 = vadd.f32 %v1786_v39, %v1027_v40 }
 0x43e   : > { %v1031_v42 = vadd.f32 %v1028_v41, %v1996_v2  ;;  %v1752_v2 = vld [vmem:[%s2230_s10] sm:$0xff] }
 0x43f   : > { %1140 = vmatpush.bf16.msra.mxu3 %v1752_v2 }
 0x440   : > { %v1035_v43 = vsel %vm1034_vm8, %v1031_v42, 0.0 }
 0x441   : > { %1036 = vadd.xlane.f32.xlu2 %v1035_v43 }
 0x442   : > { %1700 = vmatmul.msk.bf16.vlgmr.msra.gmra.mxu3 %vm720_vm0, %v1114_v49 }
 0x443   : > { %v1029_v44 = vpop.f32.mrf.mxu0 }
 0x4b4   : > { %v1037_v55 = vpop.xlane.xlu2 %1036 }
 0x4b5   : > { %v1045_v56 = vmul.f32 %v2078_v54, %v1037_v55 }
 0x4b7   : > { %v1046_v57 = vsub.f32 %v1031_v42, %v1045_v56 }
 0x4b9   : > { %v1047_v58 = vmul.f32 %v1046_v57, %v1046_v57 }
 0x4bb   : > { %v1048_v59 = vsel %vm1034_vm8, %v1047_v58, 0.0 }
 0x4bc   : > { %1049 = vadd.xlane.f32.xlu1 %v1048_v59 }
 0x4c5   : > { %v1142_v63 = vpop.f32.mrf.mxu3 }
 0x4c6   : > { %v1143_v3 = vadd.f32 %v1789_v62, %v1142_v63 }
 0x4c8   : > { %v2092_v5 = vpack.c.bf16 %v1143_v3, %v1143_v3 }
 0x4ca   : > { %1207 = vrot.lane.b32.xlu0 %v2092_v5, %s1848_s30  ;;  %v1153_v6 = vsel %vm748_vm1, %v2092_v5, 0 }
 0x4cb   : > { %1162 = vmatpush.bf16.xpose.msrb.mxu2 %v1153_v6 }
 0x4cd   : > { %v1144_v7 = vpop.f32.mrf.mxu3 }
 0x4d2   : > { %1263 = vrot.lane.b32.xlu0 %v2092_v5, %s1852_s24 }
 0x52f   : > { %v1050_v0 = vpop.xlane.xlu1 %1049 }
 0x530   : > { %v1051_v1 = vmul.f32 %v1050_v0, %v2078_v54 }
 0x532   : > { %v1052_v4 = vadd.f32 1e-05, %v1051_v1 }
 0x534   : > { %1816 = vrsqrt.f32 %v1052_v4  ;;  %vm1059_vm11 = vweird.f32 %v1052_v4 }
 0x53a   : > { %v1817_v9 = vpop.eup %1816 }
 0x53b   : > { %v1054_v10 = vmul.f32 %v1817_v9, %v1052_v4  ;;  %vm1060_vm10 = vweird.f32 %v1817_v9 }
 0x53c   : > { %vm1061_vm12 = vmor %vm1059_vm11, %vm1060_vm10  ;;  %v1208_v21 = vpop.permute.xlu0 %1207 }
 0x53d   : > { %v1055_v8 = vmul.f32 %v1817_v9, %v1054_v10  ;;  %v1213_v22 = vsel %vm748_vm1, %v1208_v21, 0 }
 0x53e   : > { %1222 = vmatpush.bf16.xpose.msrb.mxu1 %v1213_v22 }
 0x53f   : > { %v1056_v11 = vmul.f32 0.5, %v1055_v8 }
 0x541   : > { %v1057_v12 = vsub.f32 1.5, %v1056_v11 }
 0x543   : > { %v1058_v13 = vmul.f32 %v1817_v9, %v1057_v12 }
 0x544   : > { %v1264_v29 = vpop.permute.xlu0 %1263 }
 0x545   : > { %v1062_v15 = vsel %vm1061_vm12, %v1817_v9, %v1058_v13  ;;  %v1269_v30 = vsel %vm748_vm1, %v1264_v29, 0 }
 0x546   : > { %v1063_v17 = vmul.f32 %v1062_v15, %v1046_v57  ;;  %1278 = vmatpush.bf16.xpose.msra.mxu2 %v1269_v30 }
 0x548   : > { %v1067_v18 = vmul.f32 %v1787_v14, %v1063_v17 }
 0x54a   : > { %v2106_v19 = vadd.f32 %v1788_v16, %v1067_v18 }
 0x54c   : > { %v1077_v20 = vpack.c.bf16 %v2106_v19, %v2106_v19 }
 0x54e   : > { %1691 = vmatmul.msk.bf16.vlgmr.msra.gmra.mxu1 %vm720_vm0, %v1077_v20 }
 0x5cb   : > { %v1105_v24 = vpop.f32.mrf.mxu1 }
 0x5cc   : > { %v1106_v25 = vadd.f32 %v1790_v23, %v1105_v24 }
 0x5ce   : > { %v1146_v26 = vmul.f32 0.35355338, %v1106_v25 }
 0x5d0   : > { %v1147_v27 = vpack.c.bf16 %v1146_v26, %v1146_v26 }
 0x5d2   : > { %1317 = vrot.lane.b32.xlu2 %v1147_v27, %s2268_s25  ;;  %1205 = vrot.lane.b32.xlu0 %v1147_v27, %s1848_s30  ;;  %s2269_s30 = smov 96  }
 0x5d3   : > { %1701 = vmatmul.msk.bf16.vlgmr.msrb.gmra.mxu2 %vm748_vm1, %v1147_v27  ;;  %v1107_v28 = vpop.f32.mrf.mxu1 }
 0x5da   : > { %1319 = vrot.lane.b32.xlu0 %v2092_v5, %s2268_s25 }
 0x5e2   : > { %1261 = vrot.lane.b32.xlu0 %v1147_v27, %s1852_s24  ;;  %s2270_s24 = smov 72  }
 0x62c   : > { %v1318_v34 = vpop.permute.xlu2 %1317 }
 0x644   : > { %v1206_v31 = vpop.permute.xlu0 %1205 }
 0x645   : > { %1703 = vmatmul.msk.bf16.vlgmr.msrb.gmra.mxu1 %vm748_vm1, %v1206_v31 }
 0x64c   : > { %v1320_v32 = vpop.permute.xlu0 %1319 }
 0x64d   : > { %v1325_v33 = vsel %vm748_vm1, %v1320_v32, 0 }
 0x64e   : > { %1334 = vmatpush.bf16.xpose.msra.mxu1 %v1325_v33 }
 0x654   : > { %v1262_v35 = vpop.permute.xlu0 %1261 }
 0x655   : > { %1705 = vmatmul.msk.bf16.vlgmr.msra.gmra.mxu2 %vm748_vm1, %v1262_v35  ;;  %1707 = vmatmul.msk.bf16.vlgmr.msra.gmra.mxu1 %vm748_vm1, %v1318_v34 }
 0x656   : > { %v1164_v36 = vpop.f32.mrf.mxu2 }
 0x657   : > { %v1169_v37 = vsel %vm1168_vm13, %v1164_v36, -inf }
 0x658   : > { %1170 = vmax.xlane.f32.xlu0 %v1169_v37 }
 0x65e   : > { %v1166_v38 = vpop.f32.mrf.mxu2 }
 0x65f   : > { %v1755_v38 = vld [vmem:[%s2232_s12 + $0x8] sm:$0xff] }
 0x660   : > { %1418 = vmatpush.bf16.msrb.mxu2 %v1755_v38 }
 0x66c   : > { %1182 = vrot.lane.b32.xlu0 %v2092_v5, %s2269_s30 }
 0x674   : > { %1352 = vrot.lane.b32.xlu0 %v2092_v5, %s2270_s24 }
 0x6c2   : > { %v1224_v39 = vpop.f32.mrf.mxu1 }
 0x6c3   : > { %v1228_v40 = vsel %vm1168_vm13, %v1224_v39, -inf }
 0x6c4   : > { %1229 = vmax.xlane.f32.xlu1 %v1228_v40 }
 0x6ca   : > { %v1226_v41 = vpop.f32.mrf.mxu1 }
 0x6cb   : > { %v1171_v43 = vpop.xlane.xlu0 %1170 }
 0x6cc   : > { %v1172_v44 = vsub.f32 %v1164_v36, %v1171_v43 }
 0x6ce   : > { %v1173_v2 = vmul.f32 1.442695, %v1172_v44 }
 0x6d0   : > { %1818 = vpow2.f32 %v1173_v2 }
 0x6d2   : > { %v1336_v42 = vpop.f32.mrf.mxu1 }
 0x6d3   : > { %v1340_v51 = vsel %vm1168_vm13, %v1336_v42, -inf }
 0x6d6   : > { %v1819_v52 = vpop.eup %1818 }
 0x6d7   : > { %v1175_v53 = vsel %vm1168_vm13, %v1819_v52, 0.0 }
 0x6d8   : > { %v1280_v45 = vpop.f32.mrf.mxu2 }
 0x6d9   : > { %v1284_v46 = vsel %vm1168_vm13, %v1280_v45, -inf }
 0x6da   : > { %v1338_v47 = vpop.f32.mrf.mxu1  ;;  %1285 = vmax.xlane.f32.xlu1 %v1284_v46 }
 0x6db   : > { %v1791_v47 = vld [vmem:[%s2233_s13] ss:$0 sm:$0xff] }
 0x6de   : > { %v1183_v48 = vpop.permute.xlu0 %1182 }
 0x6df   : > { %v1189_v49 = vsel %vm1187_vm14, %v1183_v48, 0 }
 0x6e0   : > { %1198 = vmatpush.bf16.msrb.mxu0 %v1189_v49  ;;  %v1282_v50 = vpop.f32.mrf.mxu2 }
 0x6e2   : > { %1341 = vmax.xlane.f32.xlu1 %v1340_v51 }
 0x6e6   : > { %v1353_v12 = vpop.permute.xlu0 %1352 }
 0x6e7   : > { %v1358_v15 = vsel %vm1187_vm14, %v1353_v12, 0 }
 0x6ea   : > { %1176 = vadd.xlane.f32.xlu1 %v1175_v53 }
 0x703   : > { %1240 = vrot.lane.b32.xlu1 %v2092_v5, %s2271_s0 }
 0x737   : > { %v1230_v55 = vpop.xlane.xlu1 %1229 }
 0x738   : > { %v1231_v56 = vsub.f32 %v1224_v39, %v1230_v55  ;;  %v1754_v39 = vld [vmem:[%s2232_s12] sm:$0xff] }
 0x739   : > { %1419 = vmatpush.bf16.msrb.mxu2 %v1754_v39 }
 0x73a   : > { %v1232_v57 = vmul.f32 1.442695, %v1231_v56 }
 0x73c   : > { %1820 = vpow2.f32 %v1232_v57 }
 0x742   : > { %v1821_v58 = vpop.eup %1820 }
 0x743   : > { %v1234_v59 = vsel %vm1168_vm13, %v1821_v58, 0.0 }
 0x744   : > { %1235 = vadd.xlane.f32.xlu2 %v1234_v59  ;;  %v1761_v59 = vld [vmem:[%s2238_s18 + $0x18] sm:$0xff] }
 0x745   : > { %1541 = vmatpush.bf16.msrb.mxu1 %v1761_v59 }
 0x74d   : > { %v1286_v60 = vpop.xlane.xlu1 %1285 }
 0x74e   : > { %v1287_v61 = vsub.f32 %v1280_v45, %v1286_v60 }
 0x750   : > { %v1288_v62 = vmul.f32 1.442695, %v1287_v61 }
 0x752   : > { %1822 = vpow2.f32 %v1288_v62  ;;  %v1760_v62 = vld [vmem:[%s2238_s18 + $0x10] sm:$0xff] }
 0x753   : > { %1542 = vmatpush.bf16.msrb.mxu1 %v1760_v62 }
 0x755   : > { %v1342_v63 = vpop.xlane.xlu1 %1341 }
 0x756   : > { %v1343_v0 = vsub.f32 %v1336_v42, %v1342_v63 }
 0x758   : > { %v1823_v1 = vpop.eup %1822  ;;  %v1344_v3 = vmul.f32 1.442695, %v1343_v0 }
 0x759   : > { %v1290_v4 = vsel %vm1168_vm13, %v1823_v1, 0.0 }
 0x75a   : > { %1824 = vpow2.f32 %v1344_v3  ;;  %1291 = vadd.xlane.f32.xlu2 %v1290_v4 }
 0x75d   : > { %v1177_v6 = vpop.xlane.xlu1 %1176 }
 0x75e   : > { %1826 = vrcp.f32 %v1177_v6 }
 0x760   : > { %v1825_v7 = vpop.eup %1824 }
 0x761   : > { %v1346_v9 = vsel %vm1168_vm13, %v1825_v7, 0.0 }
 0x762   : > { %1347 = vadd.xlane.f32.xlu1 %v1346_v9  ;;  %v1792_v9 = vld [vmem:[%s2234_s14] ss:$0 sm:$0xff] }
 0x764   : > { %v1827_v10 = vpop.eup %1826 }
 0x765   : > { %v1179_v8 = vmul.f32 %v1827_v10, %v1819_v52 }
 0x767   : > { %v1180_v11 = vpack.c.bf16 %v1179_v8, %v1179_v8  ;;  %v1793_v8 = vld [vmem:[%s2235_s15] ss:$0 sm:$0xff] }
 0x769   : > { %1702 = vmatmul.msk.bf16.vlgmr.msrb.gmra.mxu0 %vm748_vm1, %v1180_v11 }
 0x772   : > { %1296 = vrot.lane.b32.xlu2 %v2092_v5, %s2272_s5 }
 0x775   : > { %v1241_v13 = vpop.permute.xlu1 %1240 }
 0x776   : > { %v1246_v14 = vsel %vm1187_vm14, %v1241_v13, 0 }
 0x777   : > { %1255 = vmatpush.bf16.msrb.mxu3 %v1246_v14 }
 0x77b   : > { %1367 = vmatpush.bf16.msra.mxu3 %v1358_v15  ;;  %v1759_v15 = vld [vmem:[%s2238_s18 + $0x8] sm:$0xff] }
 0x77c   : > { %1543 = vmatpush.bf16.msrb.mxu1 %v1759_v15 }
 0x7b7   : > { %v1236_v16 = vpop.xlane.xlu2 %1235 }
 0x7b8   : > { %1828 = vrcp.f32 %v1236_v16  ;;  %v1758_v16 = vld [vmem:[%s2238_s18] sm:$0xff] }
 0x7b9   : > { %1544 = vmatpush.bf16.msrb.mxu1 %v1758_v16 }
 0x7be   : > { %v1829_v17 = vpop.eup %1828 }
 0x7bf   : > { %v1238_v18 = vmul.f32 %v1829_v17, %v1821_v58  ;;  %v1757_v58 = vld [vmem:[%s2236_s16 + $0x8] sm:$0xff]  ;;  %v1794_v17 = vld [vmem:[%s2237_s17] ss:$0 sm:$0xff] }
 0x7c1   : > { %v1239_v20 = vpack.c.bf16 %v1238_v18, %v1238_v18 }
 0x7c3   : > { %1704 = vmatmul.msk.bf16.vlgmr.msrb.gmra.mxu3 %vm748_vm1, %v1239_v20 }
 0x7cd   : > { %v1292_v21 = vpop.xlane.xlu2 %1291 }
 0x7ce   : > { %1830 = vrcp.f32 %v1292_v21 }
 0x7d4   : > { %v1831_v22 = vpop.eup %1830 }
 0x7d5   : > { %v1294_v23 = vmul.f32 %v1831_v22, %v1823_v1  ;;  %v1297_v5 = vpop.permute.xlu2 %1296  ;;  %v1348_v24 = vpop.xlane.xlu1 %1347 }
 0x7d6   : > { %v1302_v25 = vsel %vm1187_vm14, %v1297_v5, 0  ;;  %1832 = vrcp.f32 %v1348_v24  ;;  %v1795_v5 = vld [vmem:[%s2239_s19] ss:$0 sm:$0xff] }
 0x7d7   : > { %v1295_v26 = vpack.c.bf16 %v1294_v23, %v1294_v23  ;;  %1311 = vmatpush.bf16.msra.mxu0 %v1302_v25 }
 0x7da   : > { %1706 = vmatmul.msk.bf16.vlgmr.msra.gmra.mxu0 %vm748_vm1, %v1295_v26 }
 0x7db   : > { %1488 = vmatpush.bf16.msrb.mxu0 %v1757_v58 }
 0x7dc   : > { %v1833_v27 = vpop.eup %1832 }
 0x7dd   : > { %v1350_v28 = vmul.f32 %v1833_v27, %v1825_v7 }
 0x7df   : > { %v1351_v29 = vpack.c.bf16 %v1350_v28, %v1350_v28 }
 0x7e1   : > { %1708 = vmatmul.msk.bf16.vlgmr.msra.gmra.mxu3 %vm748_vm1, %v1351_v29 }
 0x7e6   : > { %v1200_v30 = vpop.f32.mrf.mxu0 }
 0x7ee   : > { %v1202_v31 = vpop.f32.mrf.mxu0 }
 0x846   : > { %v1257_v32 = vpop.f32.mrf.mxu3 }
 0x847   : > { %1374 = vrot.lane.b32.xlu0 %v1257_v32, %s2273_s26 }
 0x84e   : > { %v1259_v33 = vpop.f32.mrf.mxu3 }
 0x857   : > { %v1313_v34 = vpop.f32.mrf.mxu0 }
 0x858   : > { %1378 = vrot.lane.b32.xlu0 %v1313_v34, %s2274_s2 }
 0x85f   : > { %v1315_v35 = vpop.f32.mrf.mxu0 }
 0x864   : > { %v1369_v36 = vpop.f32.mrf.mxu3 }
 0x865   : > { %1382 = vrot.lane.b32.xlu0 %v1369_v36, %s2275_s28  ;;  %s695_s28 = scalar_lea.vmem %s2242_s22, %s1990_s1 }
 0x86c   : > { %v1371_v37 = vpop.f32.mrf.mxu3 }
 0x8b9   : > { %v1375_v40 = vpop.permute.xlu0 %1374 }
 0x8ba   : > { %v1385_v42 = vsel %vm748_vm1, %v1200_v30, %v1375_v40 }
 0x8ca   : > { %v1379_v41 = vpop.permute.xlu0 %1378 }
 0x8cb   : > { %v1386_v43 = vsel %vm990_vm6, %v1385_v42, %v1379_v41 }
 0x8d7   : > { %v1383_v44 = vpop.permute.xlu0 %1382 }
 0x8d8   : > { %v1387_v45 = vsel %vm992_vm7, %v1386_v43, %v1383_v44  ;;  %v1796_v43 = vld [vmem:[%s2240_s20] ss:$0 sm:$0xff] }
 0x8d9   : > { %v1393_v46 = vpack.c.bf16 %v1387_v45, %v1387_v45 }
 0x8db   : > { %1717 = vmatmul.msk.bf16.vlgmr.msrb.gmra.mxu2 %vm720_vm0, %v1393_v46 }
 0x95e   : > { %v1421_v2 = vpop.f32.mrf.mxu2 }
 0x95f   : > { %v1422_v48 = vadd.f32 %v1791_v47, %v1421_v2 }
 0x961   : > { %v1425_v49 = vadd.f32 %v1422_v48, %v2106_v19  ;;  %v1756_v19 = vld [vmem:[%s2236_s16] sm:$0xff] }
 0x962   : > { %1489 = vmatpush.bf16.msrb.mxu0 %v1756_v19 }
 0x963   : > { %v1428_v50 = vsel %vm1034_vm8, %v1425_v49, 0.0 }
 0x964   : > { %1429 = vadd.xlane.f32.xlu2 %v1428_v50 }
 0x966   : > { %v1423_v51 = vpop.f32.mrf.mxu2 }
 0x9d7   : > { %v1430_v52 = vpop.xlane.xlu2 %1429 }
 0x9d8   : > { %v1431_v53 = vmul.f32 %v1430_v52, %v2078_v54 }
 0x9da   : > { %v1432_v55 = vsub.f32 %v1425_v49, %v1431_v53 }
 0x9dc   : > { %v1433_v56 = vmul.f32 %v1432_v55, %v1432_v55 }
 0x9de   : > { %v1434_v57 = vsel %vm1034_vm8, %v1433_v56, 0.0 }
 0x9df   : > { %1435 = vadd.xlane.f32.xlu0 %v1434_v57 }
 0xa52   : > { %v1436_v60 = vpop.xlane.xlu0 %1435 }
 0xa53   : > { %v1437_v61 = vmul.f32 %v1436_v60, %v2078_v54 }
 0xa55   : > { %v1438_v63 = vadd.f32 1e-05, %v1437_v61 }
 0xa57   : > { %1834 = vrsqrt.f32 %v1438_v63  ;;  %vm1445_vm1 = vweird.f32 %v1438_v63 }
 0xa5d   : > { %v1835_v0 = vpop.eup %1834 }
 0xa5e   : > { %v1440_v1 = vmul.f32 %v1835_v0, %v1438_v63  ;;  %vm1446_vm15 = vweird.f32 %v1835_v0 }
 0xa5f   : > { %vm1447_vm2 = vmor %vm1445_vm1, %vm1446_vm15 }
 0xa60   : > { %v1441_v3 = vmul.f32 %v1835_v0, %v1440_v1 }
 0xa62   : > { %v1442_v4 = vmul.f32 0.5, %v1441_v3 }
 0xa64   : > { %v1443_v6 = vsub.f32 1.5, %v1442_v4 }
 0xa66   : > { %v1444_v7 = vmul.f32 %v1835_v0, %v1443_v6 }
 0xa68   : > { %v1448_v10 = vsel %vm1447_vm2, %v1835_v0, %v1444_v7 }
 0xa69   : > { %v1449_v11 = vmul.f32 %v1448_v10, %v1432_v55 }
 0xa6b   : > { %v1453_v12 = vmul.f32 %v1792_v9, %v1449_v11 }
 0xa6d   : > { %v1457_v13 = vadd.f32 %v1793_v8, %v1453_v12 }
 0xa6f   : > { %v1463_v14 = vpack.c.bf16 %v1457_v13, %v1457_v13 }
 0xa71   : > { %1726 = vmatmul.msk.bf16.vlgmr.msrb.gmra.mxu0 %vm720_vm0, %v1463_v14 }
 0xaee   : > { %v1491_v18 = vpop.f32.mrf.mxu0 }
 0xaef   : > { %v1492_v20 = vadd.f32 %v1794_v17, %v1491_v18 }
 0xaf1   : > { %v1495_v21 = vmax.f32 %v1492_v20, 0.0 }
 0xaf3   : > { %v1505_v22 = vpack.c.bf16 %v1495_v21, %v1495_v21 }
 0xaf5   : > { %1743 = vmatmul.msk.bf16.vlgmr.msrb.gmra.mxu1 %vm1533_vm3, %v1505_v22 }
 0xaf6   : > { %v1493_v23 = vpop.f32.mrf.mxu0 }
 0xb72   : > { %v1546_v24 = vpop.f32.mrf.mxu1 }
 0xb73   : > { %v1547_v25 = vadd.f32 %v1795_v5, %v1546_v24 }
 0xb75   : > { %v1550_v26 = vadd.f32 %v1547_v25, %v1457_v13 }
 0xb77   : > { %v1553_v27 = vsel %vm1034_vm8, %v1550_v26, 0.0 }
 0xb78   : > { %1554 = vadd.xlane.f32.xlu1 %v1553_v27 }
 0xb7a   : > { %v1548_v28 = vpop.f32.mrf.mxu1 }
 0xbeb   : > { %v1555_v29 = vpop.xlane.xlu1 %1554 }
 0xbec   : > { %v1556_v30 = vmul.f32 %v1555_v29, %v2078_v54 }
 0xbee   : > { %v1557_v31 = vsub.f32 %v1550_v26, %v1556_v30 }
 0xbf0   : > { %v1558_v32 = vmul.f32 %v1557_v31, %v1557_v31 }
 0xbf2   : > { %v1559_v33 = vsel %vm1034_vm8, %v1558_v32, 0.0 }
 0xbf3   : > { %1560 = vadd.xlane.f32.xlu1 %v1559_v33 }
 0xc66   : > { %v1561_v34 = vpop.xlane.xlu1 %1560 }
 0xc67   : > { %v1562_v35 = vmul.f32 %v1561_v34, %v2078_v54  ;;  %v1797_v54 = vld [vmem:[%s2241_s21] ss:$0 sm:$0xff] }
 0xc69   : > { %v1563_v36 = vadd.f32 1e-05, %v1562_v35 }
 0xc6b   : > { %1836 = vrsqrt.f32 %v1563_v36  ;;  %vm1570_vm4 = vweird.f32 %v1563_v36 }
 0xc71   : > { %v1837_v37 = vpop.eup %1836 }
 0xc72   : > { %v1565_v38 = vmul.f32 %v1837_v37, %v1563_v36  ;;  %vm1571_vm0 = vweird.f32 %v1837_v37 }
 0xc73   : > { %vm1572_vm5 = vmor %vm1570_vm4, %vm1571_vm0 }
 0xc74   : > { %v1566_v39 = vmul.f32 %v1837_v37, %v1565_v38 }
 0xc76   : > { %v1567_v40 = vmul.f32 0.5, %v1566_v39 }
 0xc78   : > { %v1568_v41 = vsub.f32 1.5, %v1567_v40 }
 0xc7a   : > { %v1569_v42 = vmul.f32 %v1837_v37, %v1568_v41 }
 0xc7c   : > { %v1573_v44 = vsel %vm1572_vm5, %v1837_v37, %v1569_v42 }
 0xc7d   : > { %v1574_v45 = vmul.f32 %v1573_v44, %v1557_v31 }
 0xc7f   : > { %v1578_v46 = vmul.f32 %v1796_v43, %v1574_v45 }
 0xc81   : > { %v1582_v47 = vadd.f32 %v1797_v54, %v1578_v46 }
 0xc83   : > { %1583 = vst.msk [vmem:[%s695_s28] sm:$0x3f] %vm1034_vm8, %v1582_v47 }
 0xc84 PF: > { %s32_s3 = sadd.s32 1, %s1844_s3  }
 0xc85   : > { %p29_p4 = scmp.ge.s32.totalorder %s32_s3, 4  }
 0xc87   :  { %31 = sbr.rel (!%p29_p4) target bundleno = 8 (0x8), region = 141 }

</bundles_post_ra>
